<compile_context>
chip_gen: v7x
topology: tpu7x:2x2x1
jax: 0.10.0
libtpu: 0.0.40
codegen_flags: <defaults>
</compile_context>

<pallas_src>
import jax
import jax.numpy as jnp
from jax.experimental import pallas as pl
from jax.experimental.pallas import tpu as pltpu

EPS = 1e-5  # nn.InstanceNorm2d default


def _reflect_pad_1(v, H, W):
    """v: (H, W, C) -> (H+2, W+2, C), 1-pixel reflection pad, built in VMEM."""
    v = jnp.concatenate([v[:, 1:2, :], v, v[:, W - 2:W - 1, :]], axis=1)
    v = jnp.concatenate([v[1:2, :, :], v, v[H - 2:H - 1, :, :]], axis=0)
    return v


def _conv3x3_instnorm(v_bf16, w_ref, H, W, C):
    """v_bf16: (H, W, C) bf16 (unpadded); w_ref: Ref of shape (3,3,C,C) bf16.

    ReflectionPad(1) -> Conv3x3 (bf16 MXU, f32 accumulation) -> InstanceNorm.
    The Conv2d bias is intentionally omitted: InstanceNorm(affine=False)
    subtracts the per-channel mean, which cancels a per-channel constant
    exactly (variance unchanged).  Returns (H, W, C) f32.
    """
    vp = _reflect_pad_1(v_bf16, H, W)                  # (H+2, W+2, C) bf16
    acc = jnp.zeros((H * W, C), jnp.float32)
    for dw in range(3):
        # One W-shifted window per dw, flattened once (bf16 halves the bytes
        # of this materialization); the dh row slices below are cheap
        # leading-dim slices at offsets that are multiples of W.
        win = vp[:, dw:dw + W, :].reshape((H + 2) * W, C)
        for dh in range(3):
            slab = win[dh * W:dh * W + H * W, :]
            # Weight slab read straight from the Ref -> the whole (3,3,C,C)
            # tensor is never held as a value.
            acc = acc + jnp.dot(slab, w_ref[dh, dw],
                                preferred_element_type=jnp.float32)
    # InstanceNorm2d (affine=False): biased variance over spatial dims,
    # single-pass E[x], E[x^2] statistics, eps=1e-5, all in f32.
    inv_n = jnp.float32(1.0 / (H * W))
    mean = jnp.sum(acc, axis=0, keepdims=True) * inv_n
    ex2 = jnp.sum(acc * acc, axis=0, keepdims=True) * inv_n
    var = ex2 - mean * mean
    y = (acc - mean) * jax.lax.rsqrt(var + EPS)
    return y.reshape(H, W, C)


def resnet_block_kernel(x_ref, w1_ref, w2_ref, o_ref):
    # x_ref/o_ref: (1, H, W, C) f32; w*_ref: (3, 3, C, C) bf16 Refs.
    _, H, W, C = o_ref.shape
    x = x_ref[0]                                                 # (H, W, C) f32
    h = _conv3x3_instnorm(x.astype(jnp.bfloat16), w1_ref, H, W, C)
    # ReLU compare in f32; intermediate stored bf16 (feeds the MXU anyway).
    h = jnp.maximum(h, 0.0).astype(jnp.bfloat16)
    z = _conv3x3_instnorm(h, w2_ref, H, W, C)
    o_ref[...] = (x + z).reshape(1, H, W, C)                     # residual, f32


def _vmem_limit_bytes():
    """Generation-aware VMEM budget: capacity minus headroom, capped at 100 MiB.
    v7x (64 MiB physical) -> ~52 MiB; v5e/v6e (128 MiB physical) -> 100 MiB."""
    try:
        cap = int(pltpu.get_tpu_info().vmem_capacity_bytes)
    except Exception:
        cap = 128 * 1024 * 1024
    return int(min(cap - 12 * 1024 * 1024, 100 * 1024 * 1024))


def _const_spec(shape):
    """Grid-invariant BlockSpec; single-buffered where the API supports it."""
    index_map = lambda n: (0,) * len(shape)
    if hasattr(pl, "Buffered"):
        return pl.BlockSpec(shape, index_map, pipeline_mode=pl.Buffered(1))
    return pl.BlockSpec(shape, index_map)


def resnet_block_forward_nhwc(x_nhwc, w1, w2):
    """Native NHWC entry point.  Use this across a stack of ResnetBlocks so no
    NCHW<->NHWC transposes are inserted between blocks (transpose once at the
    network boundary instead).

    x_nhwc: (N,H,W,C) float; w1, w2: (3,3,C,C) HWIO.  Returns (N,H,W,C) f32.
    """
    N, H, W, C = x_nhwc.shape
    x = x_nhwc.astype(jnp.float32)
    # bf16 weights at the pallas_call boundary (halves weight DMA bytes; the
    # MXU multiplies bf16 with f32 accumulation inside the kernel).
    w1b = w1.astype(jnp.bfloat16)
    w2b = w2.astype(jnp.bfloat16)

    img_spec = pl.BlockSpec((1, H, W, C), lambda n: (n, 0, 0, 0))
    w_spec = _const_spec((3, 3, C, C))

    # TODO(synk): for v7x at production pix2pixHD sizes (e.g. 64x128x1024,
    # ~32 MiB/image), row-tile the grid over (N, H) with a two-pass streamed
    # InstanceNorm (or split at the norm boundary via a bf16 HBM intermediate)
    # so the working set fits 64 MiB VMEM and batch-1 still feeds both
    # TensorCores; whole-image blocks are kept here because InstanceNorm needs
    # full-spatial statistics and the fused single-call form is simplest.
    out = pl.pallas_call(
        resnet_block_kernel,
        out_shape=jax.ShapeDtypeStruct((N, H, W, C), jnp.float32),
        grid=(N,),
        in_specs=[img_spec, w_spec, w_spec],
        out_specs=img_spec,
        compiler_params=pltpu.CompilerParams(
            dimension_semantics=("parallel",),
            vmem_limit_bytes=_vmem_limit_bytes()),
    )(x, w1b, w2b)
    return out


def resnet_block_forward(x_nchw, w1, b1, w2, b2):
    """NCHW wrapper mirroring the PyTorch module's parameter set.

    b1/b2 (Conv2d biases) are accepted for parity but unused: a per-channel
    bias is mathematically cancelled by the following InstanceNorm2d
    (affine=False), so the output is identical without it.
    """
    del b1, b2
    x = jnp.transpose(x_nchw, (0, 2, 3, 1))              # NCHW -> NHWC (once)
    out = resnet_block_forward_nhwc(x, w1, w2)
    return jnp.transpose(out, (0, 3, 1, 2))              # NHWC -> NCHW (once)


# -------- pure-JAX reference (mirrors kernel numerics: bf16 MXU inputs,
# -------- f32 accumulation / statistics).  Biases ARE applied here to show
# -------- they cancel through InstanceNorm.  Correctness check only. --------
def _ref_forward(x_nchw, w1, b1, w2, b2):
    x = jnp.transpose(x_nchw, (0, 2, 3, 1)).astype(jnp.float32)

    def conv(v, w, b):
        vp = jnp.pad(v, ((0, 0), (1, 1), (1, 1), (0, 0)), mode="reflect")
        y = jax.lax.conv_general_dilated(
            vp.astype(jnp.bfloat16), w.astype(jnp.bfloat16), (1, 1), "VALID",
            dimension_numbers=("NHWC", "HWIO", "NHWC"),
            preferred_element_type=jnp.float32)
        return y + b

    def inorm(v):
        m = jnp.mean(v, axis=(1, 2), keepdims=True)
        s = jnp.mean((v - m) ** 2, axis=(1, 2), keepdims=True)
        return (v - m) * jax.lax.rsqrt(s + EPS)

    h = jnp.maximum(inorm(conv(x, w1, b1)), 0.0)
    h = inorm(conv(h, w2, b2))
    return jnp.transpose(x + h, (0, 3, 1, 2))


if __name__ == "__main__":
    N, C, H, W = 2, 4, 16, 16
    key = jax.random.PRNGKey(0)
    k1, k2, k3, k4, k5 = jax.random.split(key, 5)

    x = jax.random.normal(k1, (N, C, H, W), jnp.float32)

    # Deterministic Conv2d-like init: U(-1/sqrt(fan_in), 1/sqrt(fan_in)), HWIO.
    fan_in = C * 3 * 3
    scale = 1.0 / jnp.sqrt(jnp.float32(fan_in))
    w1 = jax.random.uniform(k2, (3, 3, C, C), jnp.float32, -scale, scale)
    b1 = jax.random.uniform(k3, (C,), jnp.float32, -scale, scale)
    w2 = jax.random.uniform(k4, (3, 3, C, C), jnp.float32, -scale, scale)
    b2 = jax.random.uniform(k5, (C,), jnp.float32, -scale, scale)

    out = jax.jit(resnet_block_forward)(x, w1, b1, w2, b2)
    out = jax.block_until_ready(out)

    ref = _ref_forward(x, w1, b1, w2, b2)
    assert out.shape == (N, C, H, W)
    max_err = float(jnp.max(jnp.abs(out - ref)))
    assert jnp.allclose(out, ref, atol=2e-3, rtol=2e-3), max_err

    print("KERNEL_OK")
</pallas_src>

<mosaic_0001>
module attributes {stable_mosaic.version = 11 : i64} {
  func.func @resnet_block_kernel(%arg0: i32, %arg1: memref<1x16x16x4xf32, #tpu.memory_space<vmem>>, %arg2: memref<3x3x4x4xbf16, #tpu.memory_space<vmem>>, %arg3: memref<3x3x4x4xbf16, #tpu.memory_space<vmem>>, %arg4: memref<1x16x16x4xf32, #tpu.memory_space<vmem>>) attributes {dimension_semantics = [#tpu.dimension_semantics<parallel>], iteration_bounds = array<i64: 2>, scalar_prefetch = 0 : i64, scratch_operands = 0 : i64, tpu.core_type = #tpu.core_type<tc>, window_params = [{transform_indices = @transform_0, window_bounds = array<i64: 1, 16, 16, 4>}, {pipeline_mode = #tpu.pipeline_mode<synchronous>, transform_indices = @transform_1, window_bounds = array<i64: 3, 3, 4, 4>}, {pipeline_mode = #tpu.pipeline_mode<synchronous>, transform_indices = @transform_2, window_bounds = array<i64: 3, 3, 4, 4>}, {transform_indices = @transform_3, window_bounds = array<i64: 1, 16, 16, 4>}]} {
    %c0 = arith.constant 0 : index
    %c0_0 = arith.constant 0 : index
    %c0_1 = arith.constant 0 : index
    %c0_2 = arith.constant 0 : index
    %0 = vector.load %arg1[%c0, %c0_0, %c0_1, %c0_2] : memref<1x16x16x4xf32, #tpu.memory_space<vmem>>, vector<1x16x16x4xf32>
    %1 = vector.shape_cast %0 : vector<1x16x16x4xf32> to vector<16x16x4xf32>
    %2 = arith.truncf %1 : vector<16x16x4xf32> to vector<16x16x4xbf16>
    %3 = vector.extract_strided_slice %2 {offsets = [0, 1, 0], sizes = [16, 1, 4], strides = [1, 1, 1]} : vector<16x16x4xbf16> to vector<16x1x4xbf16>
    %4 = vector.extract_strided_slice %2 {offsets = [0, 14, 0], sizes = [16, 1, 4], strides = [1, 1, 1]} : vector<16x16x4xbf16> to vector<16x1x4xbf16>
    %5 = tpu.concatenate %3, %2, %4 in 1 : vector<16x1x4xbf16>, vector<16x16x4xbf16>, vector<16x1x4xbf16> -> vector<16x18x4xbf16>
    %6 = vector.extract_strided_slice %5 {offsets = [1, 0, 0], sizes = [1, 18, 4], strides = [1, 1, 1]} : vector<16x18x4xbf16> to vector<1x18x4xbf16>
    %7 = vector.extract_strided_slice %5 {offsets = [14, 0, 0], sizes = [1, 18, 4], strides = [1, 1, 1]} : vector<16x18x4xbf16> to vector<1x18x4xbf16>
    %8 = tpu.concatenate %6, %5, %7 in 0 : vector<1x18x4xbf16>, vector<16x18x4xbf16>, vector<1x18x4xbf16> -> vector<18x18x4xbf16>
    %cst = arith.constant 0.000000e+00 : f32
    %9 = vector.broadcast %cst : f32 to vector<256x4xf32>
    %10 = vector.extract_strided_slice %8 {offsets = [0, 0, 0], sizes = [18, 16, 4], strides = [1, 1, 1]} : vector<18x18x4xbf16> to vector<18x16x4xbf16>
    %11 = vector.shape_cast %10 : vector<18x16x4xbf16> to vector<288x4xbf16>
    %12 = vector.extract_strided_slice %11 {offsets = [0, 0], sizes = [256, 4], strides = [1, 1]} : vector<288x4xbf16> to vector<256x4xbf16>
    %c0_3 = arith.constant 0 : index
    %c0_4 = arith.constant 0 : index
    %c0_5 = arith.constant 0 : index
    %c0_6 = arith.constant 0 : index
    %13 = vector.load %arg2[%c0_3, %c0_4, %c0_5, %c0_6] : memref<3x3x4x4xbf16, #tpu.memory_space<vmem>>, vector<1x1x4x4xbf16>
    %14 = vector.shape_cast %13 : vector<1x1x4x4xbf16> to vector<4x4xbf16>
    %cst_7 = arith.constant dense<0.000000e+00> : vector<256x4xf32>
    %15 = tpu.matmul %12, %14, %cst_7 {dimension_numbers = #tpu.dot_dimension_numbers<[1], [0], [0], [1], [0, 0, 1, 1], [], []>} : vector<256x4xbf16>, vector<4x4xbf16>, vector<256x4xf32> -> vector<256x4xf32>
    %16 = arith.addf %9, %15 : vector<256x4xf32>
    %17 = vector.extract_strided_slice %11 {offsets = [16, 0], sizes = [256, 4], strides = [1, 1]} : vector<288x4xbf16> to vector<256x4xbf16>
    %c1 = arith.constant 1 : index
    %c0_8 = arith.constant 0 : index
    %c0_9 = arith.constant 0 : index
    %c0_10 = arith.constant 0 : index
    %18 = vector.load %arg2[%c1, %c0_8, %c0_9, %c0_10] : memref<3x3x4x4xbf16, #tpu.memory_space<vmem>>, vector<1x1x4x4xbf16>
    %19 = vector.shape_cast %18 : vector<1x1x4x4xbf16> to vector<4x4xbf16>
    %cst_11 = arith.constant dense<0.000000e+00> : vector<256x4xf32>
    %20 = tpu.matmul %17, %19, %cst_11 {dimension_numbers = #tpu.dot_dimension_numbers<[1], [0], [0], [1], [0, 0, 1, 1], [], []>} : vector<256x4xbf16>, vector<4x4xbf16>, vector<256x4xf32> -> vector<256x4xf32>
    %21 = arith.addf %16, %20 : vector<256x4xf32>
    %22 = vector.extract_strided_slice %11 {offsets = [32, 0], sizes = [256, 4], strides = [1, 1]} : vector<288x4xbf16> to vector<256x4xbf16>
    %c2 = arith.constant 2 : index
    %c0_12 = arith.constant 0 : index
    %c0_13 = arith.constant 0 : index
    %c0_14 = arith.constant 0 : index
    %23 = vector.load %arg2[%c2, %c0_12, %c0_13, %c0_14] : memref<3x3x4x4xbf16, #tpu.memory_space<vmem>>, vector<1x1x4x4xbf16>
    %24 = vector.shape_cast %23 : vector<1x1x4x4xbf16> to vector<4x4xbf16>
    %cst_15 = arith.constant dense<0.000000e+00> : vector<256x4xf32>
    %25 = tpu.matmul %22, %24, %cst_15 {dimension_numbers = #tpu.dot_dimension_numbers<[1], [0], [0], [1], [0, 0, 1, 1], [], []>} : vector<256x4xbf16>, vector<4x4xbf16>, vector<256x4xf32> -> vector<256x4xf32>
    %26 = arith.addf %21, %25 : vector<256x4xf32>
    %27 = vector.extract_strided_slice %8 {offsets = [0, 1, 0], sizes = [18, 16, 4], strides = [1, 1, 1]} : vector<18x18x4xbf16> to vector<18x16x4xbf16>
    %28 = vector.shape_cast %27 : vector<18x16x4xbf16> to vector<288x4xbf16>
    %29 = vector.extract_strided_slice %28 {offsets = [0, 0], sizes = [256, 4], strides = [1, 1]} : vector<288x4xbf16> to vector<256x4xbf16>
    %c0_16 = arith.constant 0 : index
    %c1_17 = arith.constant 1 : index
    %c0_18 = arith.constant 0 : index
    %c0_19 = arith.constant 0 : index
    %30 = vector.load %arg2[%c0_16, %c1_17, %c0_18, %c0_19] : memref<3x3x4x4xbf16, #tpu.memory_space<vmem>>, vector<1x1x4x4xbf16>
    %31 = vector.shape_cast %30 : vector<1x1x4x4xbf16> to vector<4x4xbf16>
    %cst_20 = arith.constant dense<0.000000e+00> : vector<256x4xf32>
    %32 = tpu.matmul %29, %31, %cst_20 {dimension_numbers = #tpu.dot_dimension_numbers<[1], [0], [0], [1], [0, 0, 1, 1], [], []>} : vector<256x4xbf16>, vector<4x4xbf16>, vector<256x4xf32> -> vector<256x4xf32>
    %33 = arith.addf %26, %32 : vector<256x4xf32>
    %34 = vector.extract_strided_slice %28 {offsets = [16, 0], sizes = [256, 4], strides = [1, 1]} : vector<288x4xbf16> to vector<256x4xbf16>
    %c1_21 = arith.constant 1 : index
    %c1_22 = arith.constant 1 : index
    %c0_23 = arith.constant 0 : index
    %c0_24 = arith.constant 0 : index
    %35 = vector.load %arg2[%c1_21, %c1_22, %c0_23, %c0_24] : memref<3x3x4x4xbf16, #tpu.memory_space<vmem>>, vector<1x1x4x4xbf16>
    %36 = vector.shape_cast %35 : vector<1x1x4x4xbf16> to vector<4x4xbf16>
    %cst_25 = arith.constant dense<0.000000e+00> : vector<256x4xf32>
    %37 = tpu.matmul %34, %36, %cst_25 {dimension_numbers = #tpu.dot_dimension_numbers<[1], [0], [0], [1], [0, 0, 1, 1], [], []>} : vector<256x4xbf16>, vector<4x4xbf16>, vector<256x4xf32> -> vector<256x4xf32>
    %38 = arith.addf %33, %37 : vector<256x4xf32>
    %39 = vector.extract_strided_slice %28 {offsets = [32, 0], sizes = [256, 4], strides = [1, 1]} : vector<288x4xbf16> to vector<256x4xbf16>
    %c2_26 = arith.constant 2 : index
    %c1_27 = arith.constant 1 : index
    %c0_28 = arith.constant 0 : index
    %c0_29 = arith.constant 0 : index
    %40 = vector.load %arg2[%c2_26, %c1_27, %c0_28, %c0_29] : memref<3x3x4x4xbf16, #tpu.memory_space<vmem>>, vector<1x1x4x4xbf16>
    %41 = vector.shape_cast %40 : vector<1x1x4x4xbf16> to vector<4x4xbf16>
    %cst_30 = arith.constant dense<0.000000e+00> : vector<256x4xf32>
    %42 = tpu.matmul %39, %41, %cst_30 {dimension_numbers = #tpu.dot_dimension_numbers<[1], [0], [0], [1], [0, 0, 1, 1], [], []>} : vector<256x4xbf16>, vector<4x4xbf16>, vector<256x4xf32> -> vector<256x4xf32>
    %43 = arith.addf %38, %42 : vector<256x4xf32>
    %44 = vector.extract_strided_slice %8 {offsets = [0, 2, 0], sizes = [18, 16, 4], strides = [1, 1, 1]} : vector<18x18x4xbf16> to vector<18x16x4xbf16>
    %45 = vector.shape_cast %44 : vector<18x16x4xbf16> to vector<288x4xbf16>
    %46 = vector.extract_strided_slice %45 {offsets = [0, 0], sizes = [256, 4], strides = [1, 1]} : vector<288x4xbf16> to vector<256x4xbf16>
    %c0_31 = arith.constant 0 : index
    %c2_32 = arith.constant 2 : index
    %c0_33 = arith.constant 0 : index
    %c0_34 = arith.constant 0 : index
    %47 = vector.load %arg2[%c0_31, %c2_32, %c0_33, %c0_34] : memref<3x3x4x4xbf16, #tpu.memory_space<vmem>>, vector<1x1x4x4xbf16>
    %48 = vector.shape_cast %47 : vector<1x1x4x4xbf16> to vector<4x4xbf16>
    %cst_35 = arith.constant dense<0.000000e+00> : vector<256x4xf32>
    %49 = tpu.matmul %46, %48, %cst_35 {dimension_numbers = #tpu.dot_dimension_numbers<[1], [0], [0], [1], [0, 0, 1, 1], [], []>} : vector<256x4xbf16>, vector<4x4xbf16>, vector<256x4xf32> -> vector<256x4xf32>
    %50 = arith.addf %43, %49 : vector<256x4xf32>
    %51 = vector.extract_strided_slice %45 {offsets = [16, 0], sizes = [256, 4], strides = [1, 1]} : vector<288x4xbf16> to vector<256x4xbf16>
    %c1_36 = arith.constant 1 : index
    %c2_37 = arith.constant 2 : index
    %c0_38 = arith.constant 0 : index
    %c0_39 = arith.constant 0 : index
    %52 = vector.load %arg2[%c1_36, %c2_37, %c0_38, %c0_39] : memref<3x3x4x4xbf16, #tpu.memory_space<vmem>>, vector<1x1x4x4xbf16>
    %53 = vector.shape_cast %52 : vector<1x1x4x4xbf16> to vector<4x4xbf16>
    %cst_40 = arith.constant dense<0.000000e+00> : vector<256x4xf32>
    %54 = tpu.matmul %51, %53, %cst_40 {dimension_numbers = #tpu.dot_dimension_numbers<[1], [0], [0], [1], [0, 0, 1, 1], [], []>} : vector<256x4xbf16>, vector<4x4xbf16>, vector<256x4xf32> -> vector<256x4xf32>
    %55 = arith.addf %50, %54 : vector<256x4xf32>
    %56 = vector.extract_strided_slice %45 {offsets = [32, 0], sizes = [256, 4], strides = [1, 1]} : vector<288x4xbf16> to vector<256x4xbf16>
    %c2_41 = arith.constant 2 : index
    %c2_42 = arith.constant 2 : index
    %c0_43 = arith.constant 0 : index
    %c0_44 = arith.constant 0 : index
    %57 = vector.load %arg2[%c2_41, %c2_42, %c0_43, %c0_44] : memref<3x3x4x4xbf16, #tpu.memory_space<vmem>>, vector<1x1x4x4xbf16>
    %58 = vector.shape_cast %57 : vector<1x1x4x4xbf16> to vector<4x4xbf16>
    %cst_45 = arith.constant dense<0.000000e+00> : vector<256x4xf32>
    %59 = tpu.matmul %56, %58, %cst_45 {dimension_numbers = #tpu.dot_dimension_numbers<[1], [0], [0], [1], [0, 0, 1, 1], [], []>} : vector<256x4xbf16>, vector<4x4xbf16>, vector<256x4xf32> -> vector<256x4xf32>
    %60 = arith.addf %55, %59 : vector<256x4xf32>
    %cst_46 = arith.constant dense<0.000000e+00> : vector<4xf32>
    %61 = vector.multi_reduction <add>, %60, %cst_46 [0] : vector<256x4xf32> to vector<4xf32>
    %62 = vector.shape_cast %61 : vector<4xf32> to vector<1x4xf32>
    %cst_47 = arith.constant 3.906250e-03 : f32
    %63 = vector.broadcast %cst_47 : f32 to vector<1x4xf32>
    %64 = arith.mulf %62, %63 : vector<1x4xf32>
    %65 = arith.mulf %60, %60 : vector<256x4xf32>
    %cst_48 = arith.constant dense<0.000000e+00> : vector<4xf32>
    %66 = vector.multi_reduction <add>, %65, %cst_48 [0] : vector<256x4xf32> to vector<4xf32>
    %67 = vector.shape_cast %66 : vector<4xf32> to vector<1x4xf32>
    %cst_49 = arith.constant 3.906250e-03 : f32
    %68 = vector.broadcast %cst_49 : f32 to vector<1x4xf32>
    %69 = arith.mulf %67, %68 : vector<1x4xf32>
    %70 = arith.mulf %64, %64 : vector<1x4xf32>
    %71 = arith.subf %69, %70 : vector<1x4xf32>
    %72 = vector.broadcast %64 : vector<1x4xf32> to vector<256x4xf32>
    %73 = arith.subf %60, %72 : vector<256x4xf32>
    %cst_50 = arith.constant 9.99999974E-6 : f32
    %74 = vector.broadcast %cst_50 : f32 to vector<1x4xf32>
    %75 = arith.addf %71, %74 : vector<1x4xf32>
    %76 = math.rsqrt %75 : vector<1x4xf32>
    %77 = vector.broadcast %76 : vector<1x4xf32> to vector<256x4xf32>
    %78 = arith.mulf %73, %77 : vector<256x4xf32>
    %79 = vector.shape_cast %78 : vector<256x4xf32> to vector<16x16x4xf32>
    %cst_51 = arith.constant 0.000000e+00 : f32
    %80 = vector.broadcast %cst_51 : f32 to vector<16x16x4xf32>
    %81 = arith.maximumf %79, %80 : vector<16x16x4xf32>
    %82 = arith.truncf %81 : vector<16x16x4xf32> to vector<16x16x4xbf16>
    %83 = vector.extract_strided_slice %82 {offsets = [0, 1, 0], sizes = [16, 1, 4], strides = [1, 1, 1]} : vector<16x16x4xbf16> to vector<16x1x4xbf16>
    %84 = vector.extract_strided_slice %82 {offsets = [0, 14, 0], sizes = [16, 1, 4], strides = [1, 1, 1]} : vector<16x16x4xbf16> to vector<16x1x4xbf16>
    %85 = tpu.concatenate %83, %82, %84 in 1 : vector<16x1x4xbf16>, vector<16x16x4xbf16>, vector<16x1x4xbf16> -> vector<16x18x4xbf16>
    %86 = vector.extract_strided_slice %85 {offsets = [1, 0, 0], sizes = [1, 18, 4], strides = [1, 1, 1]} : vector<16x18x4xbf16> to vector<1x18x4xbf16>
    %87 = vector.extract_strided_slice %85 {offsets = [14, 0, 0], sizes = [1, 18, 4], strides = [1, 1, 1]} : vector<16x18x4xbf16> to vector<1x18x4xbf16>
    %88 = tpu.concatenate %86, %85, %87 in 0 : vector<1x18x4xbf16>, vector<16x18x4xbf16>, vector<1x18x4xbf16> -> vector<18x18x4xbf16>
    %cst_52 = arith.constant 0.000000e+00 : f32
    %89 = vector.broadcast %cst_52 : f32 to vector<256x4xf32>
    %90 = vector.extract_strided_slice %88 {offsets = [0, 0, 0], sizes = [18, 16, 4], strides = [1, 1, 1]} : vector<18x18x4xbf16> to vector<18x16x4xbf16>
    %91 = vector.shape_cast %90 : vector<18x16x4xbf16> to vector<288x4xbf16>
    %92 = vector.extract_strided_slice %91 {offsets = [0, 0], sizes = [256, 4], strides = [1, 1]} : vector<288x4xbf16> to vector<256x4xbf16>
    %c0_53 = arith.constant 0 : index
    %c0_54 = arith.constant 0 : index
    %c0_55 = arith.constant 0 : index
    %c0_56 = arith.constant 0 : index
    %93 = vector.load %arg3[%c0_53, %c0_54, %c0_55, %c0_56] : memref<3x3x4x4xbf16, #tpu.memory_space<vmem>>, vector<1x1x4x4xbf16>
    %94 = vector.shape_cast %93 : vector<1x1x4x4xbf16> to vector<4x4xbf16>
    %cst_57 = arith.constant dense<0.000000e+00> : vector<256x4xf32>
    %95 = tpu.matmul %92, %94, %cst_57 {dimension_numbers = #tpu.dot_dimension_numbers<[1], [0], [0], [1], [0, 0, 1, 1], [], []>} : vector<256x4xbf16>, vector<4x4xbf16>, vector<256x4xf32> -> vector<256x4xf32>
    %96 = arith.addf %89, %95 : vector<256x4xf32>
    %97 = vector.extract_strided_slice %91 {offsets = [16, 0], sizes = [256, 4], strides = [1, 1]} : vector<288x4xbf16> to vector<256x4xbf16>
    %c1_58 = arith.constant 1 : index
    %c0_59 = arith.constant 0 : index
    %c0_60 = arith.constant 0 : index
    %c0_61 = arith.constant 0 : index
    %98 = vector.load %arg3[%c1_58, %c0_59, %c0_60, %c0_61] : memref<3x3x4x4xbf16, #tpu.memory_space<vmem>>, vector<1x1x4x4xbf16>
    %99 = vector.shape_cast %98 : vector<1x1x4x4xbf16> to vector<4x4xbf16>
    %cst_62 = arith.constant dense<0.000000e+00> : vector<256x4xf32>
    %100 = tpu.matmul %97, %99, %cst_62 {dimension_numbers = #tpu.dot_dimension_numbers<[1], [0], [0], [1], [0, 0, 1, 1], [], []>} : vector<256x4xbf16>, vector<4x4xbf16>, vector<256x4xf32> -> vector<256x4xf32>
    %101 = arith.addf %96, %100 : vector<256x4xf32>
    %102 = vector.extract_strided_slice %91 {offsets = [32, 0], sizes = [256, 4], strides = [1, 1]} : vector<288x4xbf16> to vector<256x4xbf16>
    %c2_63 = arith.constant 2 : index
    %c0_64 = arith.constant 0 : index
    %c0_65 = arith.constant 0 : index
    %c0_66 = arith.constant 0 : index
    %103 = vector.load %arg3[%c2_63, %c0_64, %c0_65, %c0_66] : memref<3x3x4x4xbf16, #tpu.memory_space<vmem>>, vector<1x1x4x4xbf16>
    %104 = vector.shape_cast %103 : vector<1x1x4x4xbf16> to vector<4x4xbf16>
    %cst_67 = arith.constant dense<0.000000e+00> : vector<256x4xf32>
    %105 = tpu.matmul %102, %104, %cst_67 {dimension_numbers = #tpu.dot_dimension_numbers<[1], [0], [0], [1], [0, 0, 1, 1], [], []>} : vector<256x4xbf16>, vector<4x4xbf16>, vector<256x4xf32> -> vector<256x4xf32>
    %106 = arith.addf %101, %105 : vector<256x4xf32>
    %107 = vector.extract_strided_slice %88 {offsets = [0, 1, 0], sizes = [18, 16, 4], strides = [1, 1, 1]} : vector<18x18x4xbf16> to vector<18x16x4xbf16>
    %108 = vector.shape_cast %107 : vector<18x16x4xbf16> to vector<288x4xbf16>
    %109 = vector.extract_strided_slice %108 {offsets = [0, 0], sizes = [256, 4], strides = [1, 1]} : vector<288x4xbf16> to vector<256x4xbf16>
    %c0_68 = arith.constant 0 : index
    %c1_69 = arith.constant 1 : index
    %c0_70 = arith.constant 0 : index
    %c0_71 = arith.constant 0 : index
    %110 = vector.load %arg3[%c0_68, %c1_69, %c0_70, %c0_71] : memref<3x3x4x4xbf16, #tpu.memory_space<vmem>>, vector<1x1x4x4xbf16>
    %111 = vector.shape_cast %110 : vector<1x1x4x4xbf16> to vector<4x4xbf16>
    %cst_72 = arith.constant dense<0.000000e+00> : vector<256x4xf32>
    %112 = tpu.matmul %109, %111, %cst_72 {dimension_numbers = #tpu.dot_dimension_numbers<[1], [0], [0], [1], [0, 0, 1, 1], [], []>} : vector<256x4xbf16>, vector<4x4xbf16>, vector<256x4xf32> -> vector<256x4xf32>
    %113 = arith.addf %106, %112 : vector<256x4xf32>
    %114 = vector.extract_strided_slice %108 {offsets = [16, 0], sizes = [256, 4], strides = [1, 1]} : vector<288x4xbf16> to vector<256x4xbf16>
    %c1_73 = arith.constant 1 : index
    %c1_74 = arith.constant 1 : index
    %c0_75 = arith.constant 0 : index
    %c0_76 = arith.constant 0 : index
    %115 = vector.load %arg3[%c1_73, %c1_74, %c0_75, %c0_76] : memref<3x3x4x4xbf16, #tpu.memory_space<vmem>>, vector<1x1x4x4xbf16>
    %116 = vector.shape_cast %115 : vector<1x1x4x4xbf16> to vector<4x4xbf16>
    %cst_77 = arith.constant dense<0.000000e+00> : vector<256x4xf32>
    %117 = tpu.matmul %114, %116, %cst_77 {dimension_numbers = #tpu.dot_dimension_numbers<[1], [0], [0], [1], [0, 0, 1, 1], [], []>} : vector<256x4xbf16>, vector<4x4xbf16>, vector<256x4xf32> -> vector<256x4xf32>
    %118 = arith.addf %113, %117 : vector<256x4xf32>
    %119 = vector.extract_strided_slice %108 {offsets = [32, 0], sizes = [256, 4], strides = [1, 1]} : vector<288x4xbf16> to vector<256x4xbf16>
    %c2_78 = arith.constant 2 : index
    %c1_79 = arith.constant 1 : index
    %c0_80 = arith.constant 0 : index
    %c0_81 = arith.constant 0 : index
    %120 = vector.load %arg3[%c2_78, %c1_79, %c0_80, %c0_81] : memref<3x3x4x4xbf16, #tpu.memory_space<vmem>>, vector<1x1x4x4xbf16>
    %121 = vector.shape_cast %120 : vector<1x1x4x4xbf16> to vector<4x4xbf16>
    %cst_82 = arith.constant dense<0.000000e+00> : vector<256x4xf32>
    %122 = tpu.matmul %119, %121, %cst_82 {dimension_numbers = #tpu.dot_dimension_numbers<[1], [0], [0], [1], [0, 0, 1, 1], [], []>} : vector<256x4xbf16>, vector<4x4xbf16>, vector<256x4xf32> -> vector<256x4xf32>
    %123 = arith.addf %118, %122 : vector<256x4xf32>
    %124 = vector.extract_strided_slice %88 {offsets = [0, 2, 0], sizes = [18, 16, 4], strides = [1, 1, 1]} : vector<18x18x4xbf16> to vector<18x16x4xbf16>
    %125 = vector.shape_cast %124 : vector<18x16x4xbf16> to vector<288x4xbf16>
    %126 = vector.extract_strided_slice %125 {offsets = [0, 0], sizes = [256, 4], strides = [1, 1]} : vector<288x4xbf16> to vector<256x4xbf16>
    %c0_83 = arith.constant 0 : index
    %c2_84 = arith.constant 2 : index
    %c0_85 = arith.constant 0 : index
    %c0_86 = arith.constant 0 : index
    %127 = vector.load %arg3[%c0_83, %c2_84, %c0_85, %c0_86] : memref<3x3x4x4xbf16, #tpu.memory_space<vmem>>, vector<1x1x4x4xbf16>
    %128 = vector.shape_cast %127 : vector<1x1x4x4xbf16> to vector<4x4xbf16>
    %cst_87 = arith.constant dense<0.000000e+00> : vector<256x4xf32>
    %129 = tpu.matmul %126, %128, %cst_87 {dimension_numbers = #tpu.dot_dimension_numbers<[1], [0], [0], [1], [0, 0, 1, 1], [], []>} : vector<256x4xbf16>, vector<4x4xbf16>, vector<256x4xf32> -> vector<256x4xf32>
    %130 = arith.addf %123, %129 : vector<256x4xf32>
    %131 = vector.extract_strided_slice %125 {offsets = [16, 0], sizes = [256, 4], strides = [1, 1]} : vector<288x4xbf16> to vector<256x4xbf16>
    %c1_88 = arith.constant 1 : index
    %c2_89 = arith.constant 2 : index
    %c0_90 = arith.constant 0 : index
    %c0_91 = arith.constant 0 : index
    %132 = vector.load %arg3[%c1_88, %c2_89, %c0_90, %c0_91] : memref<3x3x4x4xbf16, #tpu.memory_space<vmem>>, vector<1x1x4x4xbf16>
    %133 = vector.shape_cast %132 : vector<1x1x4x4xbf16> to vector<4x4xbf16>
    %cst_92 = arith.constant dense<0.000000e+00> : vector<256x4xf32>
    %134 = tpu.matmul %131, %133, %cst_92 {dimension_numbers = #tpu.dot_dimension_numbers<[1], [0], [0], [1], [0, 0, 1, 1], [], []>} : vector<256x4xbf16>, vector<4x4xbf16>, vector<256x4xf32> -> vector<256x4xf32>
    %135 = arith.addf %130, %134 : vector<256x4xf32>
    %136 = vector.extract_strided_slice %125 {offsets = [32, 0], sizes = [256, 4], strides = [1, 1]} : vector<288x4xbf16> to vector<256x4xbf16>
    %c2_93 = arith.constant 2 : index
    %c2_94 = arith.constant 2 : index
    %c0_95 = arith.constant 0 : index
    %c0_96 = arith.constant 0 : index
    %137 = vector.load %arg3[%c2_93, %c2_94, %c0_95, %c0_96] : memref<3x3x4x4xbf16, #tpu.memory_space<vmem>>, vector<1x1x4x4xbf16>
    %138 = vector.shape_cast %137 : vector<1x1x4x4xbf16> to vector<4x4xbf16>
    %cst_97 = arith.constant dense<0.000000e+00> : vector<256x4xf32>
    %139 = tpu.matmul %136, %138, %cst_97 {dimension_numbers = #tpu.dot_dimension_numbers<[1], [0], [0], [1], [0, 0, 1, 1], [], []>} : vector<256x4xbf16>, vector<4x4xbf16>, vector<256x4xf32> -> vector<256x4xf32>
    %140 = arith.addf %135, %139 : vector<256x4xf32>
    %cst_98 = arith.constant dense<0.000000e+00> : vector<4xf32>
    %141 = vector.multi_reduction <add>, %140, %cst_98 [0] : vector<256x4xf32> to vector<4xf32>
    %142 = vector.shape_cast %141 : vector<4xf32> to vector<1x4xf32>
    %cst_99 = arith.constant 3.906250e-03 : f32
    %143 = vector.broadcast %cst_99 : f32 to vector<1x4xf32>
    %144 = arith.mulf %142, %143 : vector<1x4xf32>
    %145 = arith.mulf %140, %140 : vector<256x4xf32>
    %cst_100 = arith.constant dense<0.000000e+00> : vector<4xf32>
    %146 = vector.multi_reduction <add>, %145, %cst_100 [0] : vector<256x4xf32> to vector<4xf32>
    %147 = vector.shape_cast %146 : vector<4xf32> to vector<1x4xf32>
    %cst_101 = arith.constant 3.906250e-03 : f32
    %148 = vector.broadcast %cst_101 : f32 to vector<1x4xf32>
    %149 = arith.mulf %147, %148 : vector<1x4xf32>
    %150 = arith.mulf %144, %144 : vector<1x4xf32>
    %151 = arith.subf %149, %150 : vector<1x4xf32>
    %152 = vector.broadcast %144 : vector<1x4xf32> to vector<256x4xf32>
    %153 = arith.subf %140, %152 : vector<256x4xf32>
    %cst_102 = arith.constant 9.99999974E-6 : f32
    %154 = vector.broadcast %cst_102 : f32 to vector<1x4xf32>
    %155 = arith.addf %151, %154 : vector<1x4xf32>
    %156 = math.rsqrt %155 : vector<1x4xf32>
    %157 = vector.broadcast %156 : vector<1x4xf32> to vector<256x4xf32>
    %158 = arith.mulf %153, %157 : vector<256x4xf32>
    %159 = vector.shape_cast %158 : vector<256x4xf32> to vector<16x16x4xf32>
    %160 = arith.addf %1, %159 : vector<16x16x4xf32>
    %161 = vector.shape_cast %160 : vector<16x16x4xf32> to vector<1x16x16x4xf32>
    %c0_103 = arith.constant 0 : index
    %c0_104 = arith.constant 0 : index
    %c0_105 = arith.constant 0 : index
    %c0_106 = arith.constant 0 : index
    %162 = vector.load %arg4[%c0_103, %c0_104, %c0_105, %c0_106] : memref<1x16x16x4xf32, #tpu.memory_space<vmem>>, vector<1x16x16x4xf32>
    tpu.vector_store %arg4[%c0_103, %c0_104, %c0_105, %c0_106], %161 {strides = array<i32>} : memref<1x16x16x4xf32, #tpu.memory_space<vmem>>, vector<1x16x16x4xf32>,
    return
  }
  func.func @transform_0(%arg0: i32) -> (i32, i32, i32, i32) {
    %c0_i32 = arith.constant 0 : i32
    %c0_i32_0 = arith.constant 0 : i32
    %c0_i32_1 = arith.constant 0 : i32
    %c0_i32_2 = arith.constant 0 : i32
    return %arg0, %c0_i32, %c0_i32_0, %c0_i32_1 : i32, i32, i32, i32
  }
  func.func @transform_1(%arg0: i32) -> (i32, i32, i32, i32) {
    %c0_i32 = arith.constant 0 : i32
    %c0_i32_0 = arith.constant 0 : i32
    %c0_i32_1 = arith.constant 0 : i32
    %c0_i32_2 = arith.constant 0 : i32
    %c0_i32_3 = arith.constant 0 : i32
    return %c0_i32, %c0_i32_0, %c0_i32_1, %c0_i32_2 : i32, i32, i32, i32
  }
  func.func @transform_2(%arg0: i32) -> (i32, i32, i32, i32) {
    %c0_i32 = arith.constant 0 : i32
    %c0_i32_0 = arith.constant 0 : i32
    %c0_i32_1 = arith.constant 0 : i32
    %c0_i32_2 = arith.constant 0 : i32
    %c0_i32_3 = arith.constant 0 : i32
    return %c0_i32, %c0_i32_0, %c0_i32_1, %c0_i32_2 : i32, i32, i32, i32
  }
  func.func @transform_3(%arg0: i32) -> (i32, i32, i32, i32) {
    %c0_i32 = arith.constant 0 : i32
    %c0_i32_0 = arith.constant 0 : i32
    %c0_i32_1 = arith.constant 0 : i32
    %c0_i32_2 = arith.constant 0 : i32
    return %arg0, %c0_i32, %c0_i32_0, %c0_i32_1 : i32, i32, i32, i32
  }
}

</mosaic_0001>

<bundles_post_ra>
// kernel: resnet_block_forward.1
= control target key start
LH: loop header
LB: loop body
LE: loop exit
PB: predicated region body
PF: predicated region fallthrough
CT: control target
= control target key end

     0   :  { %8 = vsyncpa [#allocation3], 0  ;;  %s10053_s0 = inlined_call_operand.hbm [shape: f32[2,16,16,4], index: 0, kind: input, shape index: {}]   ;;  %s10054_s1 = inlined_call_operand.hbm [shape: bf16[3,3,4,4], index: 1, kind: input, shape index: {}]   ;;  %s10055_s2 = inlined_call_operand.hbm [shape: bf16[3,3,4,4], index: 2, kind: input, shape index: {}]   ;;  %s10056_s3 = inlined_call_operand.hbm [shape: f32[2,16,16,4], index: 3, kind: output, shape index: {}]  }
   0x1   :  { %10 = vsyncpa [#allocation3 + $0x1], 0 }
   0x2   :  { %11 = vsyncpa [#allocation6], 0 }
   0x3   :  { %12 = vsyncpa [#allocation4], 0 }
   0x4   :  { %14 = vsyncpa [#allocation4 + $0x1], 0  ;;  %s7707_s12 = smov 0   ;;  %s7709_s13 = smov 0  }
   0x5   :  { %s7711_s14 = smov 0   ;;  %s7713_s15 = smov 0  }
   0x6 LB: > { %s7728_s16 = sadd.s32 4294967295, %s7675_s15   ;;  %s5654_s17 = sadd.s32 4294967294, %s7675_s15   ;;  %s7675_s15 = sphi %s7713_s15, %s10101_s15   ;;  %s7671_s14 = sphi %s7711_s14, %s10100_s14   ;;  %s7667_s13 = sphi %s7709_s13, %s10099_s13   ;;  %s7663_s12 = sphi %s7707_s12, %s10098_s12  }
   0x7   : > { %p40_p0 = scmp.ne.s32.totalorder %s7667_s13, %s7663_s12  ;;  %p10057_p1 = scmp.eq.s32.totalorder %s7728_s16, 0 }
   0x8   : > { %p112_p3 = scmp.eq.s32.totalorder %s5654_s17, 1  ;;  %p5655_p5 = scmp.ge.s32.totalorder %s7675_s15, 1 }
   0x9   : > { %p7737_p4 = por %p10057_p1, %p40_p0  ;;  %p119_p7 = scmp.lt.s32.totalorder %s7675_s15, 3 }
   0xa   : > { %p7742_p6 = por %p112_p3, %p40_p0  ;;  %s7677_s21 = smov [#allocation5]  }
   0xb   : > { %s10071_s18 = scalar_select %p7737_p4, 1, 0 }
   0xc   : > { %s10072_s19 = scalar_select %p7742_p6, 1, 0 }
   0xd   : > { %p7747_p8 = pnand %p5655_p5, %p119_p7  ;;  %s131_s22 = sshll.u32 %s7677_s21, 4  ;;  %s7751_s22 = int_to_ptr.vmem [resolvable:$true] %s131_s22 }
   0xe   : > { %s7678_s24 = smov [#allocation7]   ;;  %s7519_s28 = scalar_lea.hbm %s10054_s1, 288 }
   0xf   : > { %p7422_p9 = pneg %p7747_p8  ;;  %s144_s25 = sshll.u32 %s7678_s24, 4  ;;  %s7762_s25 = int_to_ptr.vmem [resolvable:$true] %s144_s25 }
  0x10   : > { %p7520_p12 = scmp.ne.s32.totalorder %s10054_s1, %s7519_s28  ;;  %p7526_p5 = scmp.lt.u32.totalorder %s7519_s28, %s10054_s1 }
  0x11   : > { %p7758_p11 = pnand %p7422_p9, %p10057_p1 }
  0x13   : > { %p7521_p13 = pneg %p7758_p11 }
  0x15   : > { %p7522_p0 = pnand %p7521_p13, %p7520_p12 }
  0x17   : > { %p7523_p3 = pneg %p7522_p0 }
  0x19   : > { %p7528_p7 = pnand %p7526_p5, %p7523_p3 }
  0x1b   : > { %7531 = shalt.err (!%p7528_p7)
}
  0x1c   : > { %s7532_s6 = scalar_lea.vmem %s7751_s22, 288  ;;  %p7540_p2 = scmp.lt.s32.totalorder %s7751_s22, %s7751_s22 }
  0x1d   : > { %p7533_p9 = scmp.ne.s32.totalorder %s7751_s22, %s7532_s6  ;;  %p7541_p12 = scmp.lt.s32.totalorder %s7532_s6, %s7532_s6 }
  0x1f   : > { %p7535_p10 = pnand %p7533_p9, %p7521_p13  ;;  %p7542_p0 = por %p7541_p12, %p7540_p2 }
  0x21   : > { %p7536_p1 = pneg %p7535_p10 }
  0x23   : > { %p7543_p6 = pnand %p7542_p0, %p7536_p1 }
  0x25   : > { %7546 = shalt.err (!%p7543_p6)
}
  0x26   : > { %s7679_s7 = smov 32   ;;  %s7680_s8 = smov 2  }
  0x27   : > { %7425 = dma.hbm_to_vmem [thread:$0]  (!%p7758_p11), %s10054_s1, 288, %s7751_s22, [#allocation6], %s7679_s7, %s7679_s7, %s7680_s8  }
  0x28   : > { %s7547_s21 = scalar_lea.hbm %s10055_s2, 288 }
  0x29   : > { %p7548_p2 = scmp.ne.s32.totalorder %s10055_s2, %s7547_s21  ;;  %p7554_p10 = scmp.lt.u32.totalorder %s7547_s21, %s10055_s2 }
  0x2b   : > { %p7550_p1 = pnand %p7548_p2, %p7521_p13 }
  0x2d   : > { %p7551_p6 = pneg %p7550_p1 }
  0x2f   : > { %p7556_p3 = pnand %p7554_p10, %p7551_p6 }
  0x31   : > { %7559 = shalt.err (!%p7556_p3)
}
  0x32   : > { %s7560_s22 = scalar_lea.vmem %s7762_s25, 288  ;;  %p7568_p12 = scmp.lt.s32.totalorder %s7762_s25, %s7762_s25 }
  0x33   : > { %p7561_p5 = scmp.ne.s32.totalorder %s7762_s25, %s7560_s22  ;;  %p7569_p0 = scmp.lt.s32.totalorder %s7560_s22, %s7560_s22 }
  0x35   : > { %p7563_p7 = pnand %p7561_p5, %p7521_p13  ;;  %p7570_p2 = por %p7569_p0, %p7568_p12 }
  0x37   : > { %p7564_p9 = pneg %p7563_p7 }
  0x39   : > { %p7571_p1 = pnand %p7570_p2, %p7564_p9 }
  0x3b   : > { %7574 = shalt.err (!%p7571_p1)
}
  0x3c   : > { %7428 = dma.hbm_to_vmem [thread:$0]  (!%p7758_p11), %s10055_s2, 288, %s7762_s25, [#allocation6], %s7679_s7, %s7679_s7, %s7680_s8  }
  0x3d   : > { %s7817_s4 = sadd.s32 1, %s7675_s15   ;;  %s27_s23 = sadd.s32 1, %s7671_s14 }
  0x3e   : > { %s24_s5 = ssub.s32 %s7675_s15, %s7817_s4  ;;  %p34_p13 = scmp.ne.s32.totalorder %s7671_s14, %s7667_s13 }
  0x3f   : > { %p25_p6 = scmp.eq.s32.totalorder %s24_s5, 0  ;;  %p35_p10 = scmp.eq.s32.totalorder %s7675_s15, 0 }
  0x40   : > { %p10075_p3 = scmp.eq.s32.totalorder %s7728_s16, 1  ;;  %p7439_p7 = scmp.lt.s32.totalorder %s7675_s15, 2 }
  0x41   : > { %s7833_s9 = scalar_select %p25_p6, %s7671_s14, %s27_s23  }
  0x42   : > { %p7827_p5 = por %p10075_p3, %p34_p13  ;;  %p36_p9 = por %p35_p10, %p34_p13 }
  0x43   : > { %s158_s10 = sand.u32 1, %s7671_s14   ;;  %s5960_s25 = sshll.u32 %s7675_s15, 12 }
  0x44   : > { %s10076_s6 = scalar_select %p7827_p5, 1, 0 }
  0x45   : > { %s5659_s11 = sshll.u32 %s158_s10, 8  ;;  %s7840_s17 = scalar_lea.hbm %s10053_s0, %s5960_s25 }
  0x46   : > { %s162_s21 = scalar_lea.vmem [#allocation2], %s5659_s11  ;;  %p7844_p11 = pnand %p7439_p7, %p36_p9 }
  0x47   : > { %s169_s24 = sshll.u32 %s162_s21, 4  ;;  %s7848_s27 = scalar_lea.sflag [#allocation3], %s158_s10  ;;  %s7842_s24 = int_to_ptr.vmem [resolvable:$true] %s169_s24 }
  0x48   : > { %s7575_s28 = scalar_lea.hbm %s7840_s17, 4096  ;;  %p7577_p0 = pneg %p7844_p11 }
  0x49   : > { %p7576_p12 = scmp.ne.s32.totalorder %s7840_s17, %s7575_s28  ;;  %s7580_s30 = scalar_lea.hbm %s10053_s0, 8192 }
  0x4a   : > { %p7581_p13 = scmp.lt.u32.totalorder %s7840_s17, %s10053_s0  ;;  %p7582_p6 = scmp.lt.u32.totalorder %s7580_s30, %s7575_s28 }
  0x4b   : > { %p7578_p2 = pnand %p7577_p0, %p7576_p12  ;;  %p7584_p3 = scmp.lt.u32.totalorder %s7575_s28, %s7840_s17 }
  0x4c   : > { %p7583_p10 = por %p7582_p6, %p7581_p13 }
  0x4d   : > { %p7579_p1 = pneg %p7578_p2 }
  0x4e   : > { %p7585_p7 = por %p7584_p3, %p7583_p10 }
  0x50   : > { %p7586_p9 = pnand %p7585_p7, %p7579_p1 }
  0x52   : > { %7589 = shalt.err (!%p7586_p9)
}
  0x53   : > { %s7590_s10 = scalar_lea.vmem %s7842_s24, 4096  ;;  %s7681_s11 = smov [#allocation2]  }
  0x54   : > { %p7591_p12 = scmp.ne.s32.totalorder %s7842_s24, %s7590_s10  ;;  %s7595_s25 = sshll.u32 %s7681_s11, 4  ;;  %s7596_s25 = int_to_ptr.vmem [resolvable:$false] %s7595_s25 }
  0x55   : > { %s7597_s7 = scalar_lea.vmem %s7596_s25, 8192  ;;  %p7598_p4 = scmp.lt.s32.totalorder %s7842_s24, %s7596_s25 }
  0x56   : > { %p7593_p2 = pnand %p7591_p12, %p7577_p0  ;;  %p7599_p13 = scmp.lt.s32.totalorder %s7597_s7, %s7590_s10 }
  0x58   : > { %p7594_p5 = pneg %p7593_p2  ;;  %p7600_p6 = por %p7599_p13, %p7598_p4 }
  0x5a   : > { %p7601_p10 = pnand %p7600_p6, %p7594_p5 }
  0x5c   : > { %7604 = shalt.err (!%p7601_p10)
}
  0x5d   : > { %s7682_s8 = smov 128   ;;  %s7683_s21 = smov 8  }
  0x5e   : > { %7432 = dma.hbm_to_vmem [thread:$0]  (!%p7844_p11), %s7840_s17, 4096, %s7842_s24, %s7848_s27, %s7682_s8, %s7682_s8, %s7683_s21  }
  0x5f   : > { %181 = sbr.rel (%p7747_p8) target bundleno = 1831 (0x727), region = 32 }
  0x66   : > { %s7879_s28 = sand.u32 1, %s7667_s13   ;;  %p10078_p4 = scmp.ne.s32.totalorder %s10071_s18, 0 }
  0x67   : > { %s5663_s22 = sshll.u32 %s7879_s28, 8  ;;  %s184_s29 = scalar_lea.sflag [#allocation3], %s7879_s28 }
  0x68   : > { %s7885_s30 = scalar_lea.vmem [#allocation2], %s5663_s22 }
  0x69   : > { %7650 = dma.done.wait (%p10078_p4), %s184_s29, 4096  }
  0x6a   : > { %7652 = vsyncadd (%p10078_p4), %s184_s29, 4294963200  ;;  %p10079_p5 = scmp.eq.s32.totalorder %s7728_s16, 0 }
  0x6c   : > { %7654 = dma.done.wait (%p10079_p5), [#allocation6], 576   ;;  %p10080_p8 = pmov %p10079_p5 }
  0x6d   : > { %vm546_vm0 = vcmask 1041408   ;;  %v496_v0 = vld [vmem:[#allocation5 + $0x6] sm:$0x3]  ;;  %v220_v2 = vld [vmem:[%s7885_s30 + $0x8] sm:$0xff]  ;;  %v494_v5 = vld [vmem:[#allocation5] sm:$0x3] }
  0x6e   : > { %7656 = vsyncadd (%p10080_p8), [#allocation6], 4294966720  ;;  %v219_v1 = vld [vmem:[%s7885_s30] sm:$0xff]  ;;  %7392 = vmatprep.subr.msk.bf16.mxu0 %vm546_vm0, %v496_v0  ;;  %v548_v3 = vsel %vm546_vm0, %v496_v0, 0  ;;  %v221_v6 = vld [vmem:[%s7885_s30 + $0x10] sm:$0xff]  ;;  %vm459_vm2 = vcmask 1040384  }
  0x6f   : > { %v7899_v4 = vpack.c.bf16 %v220_v2, %v219_v1  ;;  %v222_v7 = vld [vmem:[%s7885_s30 + $0x18] sm:$0xff]  ;;  %6269 = vmatpush3.bf16.msra.mxu0 %v548_v3  ;;  %vm460_vm1 = vsmask.f32 256  ;;  %v223_v9 = vld [vmem:[%s7885_s30 + $0x20] sm:$0xff]  ;;  %v224_v10 = vld [vmem:[%s7885_s30 + $0x28] sm:$0xff]  ;;  %vm497_vm4 = vcmask 31744  }
  0x70   : > { %v7903_v8 = vpack.c.bf16 %v222_v7, %v221_v6  ;;  %v225_v11 = vld [vmem:[%s7885_s30 + $0x30] sm:$0xff]  ;;  %7393 = vmatprep.subr.msk.bf16.mxu0 %vm546_vm0, %v494_v5  ;;  %v7911_v14 = vpack.c.bf16 %v224_v10, %v223_v9  ;;  %v226_v15 = vld [vmem:[%s7885_s30 + $0x38] sm:$0xff]  ;;  %v227_v16 = vld [vmem:[%s7885_s30 + $0x40] sm:$0xff]  ;;  %v712_v34 = vsel %vm546_vm0, %v494_v5, 0  ;;  %vm1073_vm5 = vsmask.f32 7424 }
  0x71   : > { %v268_v12 = vshrl.u32 %v7899_v4, 16  ;;  %v332_v13 = vshll.u32 %v7899_v4, 16  ;;  %v228_v17 = vld [vmem:[%s7885_s30 + $0x48] sm:$0xff]  ;;  %v7918_v20 = vpack.c.bf16 %v226_v15, %v225_v11  ;;  %v229_v25 = vld [vmem:[%s7885_s30 + $0x50] sm:$0xff]  ;;  %v230_v26 = vld [vmem:[%s7885_s30 + $0x58] sm:$0xff]  ;;  %vm1924_vm6 = vcmask 1046528  }
  0x72   : > { %v271_v18 = vshrl.u32 %v7903_v8, 16  ;;  %v336_v19 = vshll.u32 %v7903_v8, 16  ;;  %v7920_v21 = vpack.c.bf16 %v228_v17, %v227_v16  ;;  %v274_v23 = vshrl.u32 %v7911_v14, 16  ;;  %vm7930_vm3 = vmand %vm459_vm2, %vm460_vm1  ;;  %v231_v31 = vld [vmem:[%s7885_s30 + $0x60] sm:$0xff]  ;;  %v232_v32 = vld [vmem:[%s7885_s30 + $0x68] sm:$0xff]  ;;  %s9865_s18 = scalar_lea.vmem [#allocation8], %s5663_s22 }
  0x73   : > { %v7922_v22 = vrot.slane %v268_v12, 7  ;;  %v340_v24 = vshll.u32 %v7911_v14, 16  ;;  %v277_v29 = vshrl.u32 %v7918_v20, 16  ;;  %v344_v36 = vshll.u32 %v7918_v20, 16  ;;  %v7984_v49 = vld [vmem:[#allocation5 + $0xc] sm:$0x3] }
  0x74   : > { %v7934_v28 = vrot.slane %v271_v18, 7  ;;  %v280_v30 = vshrl.u32 %v7920_v21, 16  ;;  %v7944_v35 = vrot.slane %v274_v23, 7  ;;  %v348_v39 = vshll.u32 %v7920_v21, 16  ;;  %v233_v52 = vld [vmem:[%s7885_s30 + $0x70] sm:$0xff]  ;;  %v234_v53 = vld [vmem:[%s7885_s30 + $0x78] sm:$0xff] }
  0x75   : > { %v334_v33 = vor.u32 %v332_v13, %v7922_v22  ;;  %v7950_v38 = vrot.slane %v277_v29, 7  ;;  %v7953_v40 = vpack.c.bf16 %v230_v26, %v229_v25  ;;  %v7964_v44 = vpack.c.bf16 %v232_v32, %v231_v31  ;;  %v235_v54 = vld [vmem:[%s7885_s30 + $0x80] sm:$0xff]  ;;  %v236_v55 = vld [vmem:[%s7885_s30 + $0x88] sm:$0xff]  ;;  %v237_v5 = vld [vmem:[%s7885_s30 + $0x90] sm:$0xff]  ;;  %s5961_s20 = sshll.u32 %s7728_s16, 12  ;;  %s5562_s17 = sshll.u32 %s9865_s18, 4  ;;  %s9977_s17 = int_to_ptr.vmem [resolvable:$true] %s5562_s17 }
  0x76   : > { %v338_v37 = vor.u32 %v336_v19, %v7934_v28  ;;  %v342_v42 = vor.u32 %v340_v24, %v7944_v35  ;;  %v7962_v43 = vrot.slane %v280_v30, 7  ;;  %v8003_v59 = vpack.c.bf16 %v234_v53, %v233_v52  ;;  %v238_v6 = vld [vmem:[%s7885_s30 + $0x98] sm:$0xff]  ;;  %v239_v7 = vld [vmem:[%s7885_s30 + $0xa0] sm:$0xff]  ;;  %v240_v9 = vld [vmem:[%s7885_s30 + $0xa8] sm:$0xff]  ;;  %s9973_s27 = scalar_lea.hbm %s10056_s3, %s5961_s20  ;;  %s5549_s16 = scalar_lea.sflag [#allocation4], %s7879_s28 }
  0x77   : > { %v7957_v41 = vsel %vm7930_vm3, %v268_v12, %v334_v33  ;;  %v346_v47 = vor.u32 %v344_v36, %v7950_v38  ;;  %v283_v48 = vshrl.u32 %v7953_v40, 16  ;;  %v286_v51 = vshrl.u32 %v7964_v44, 16  ;;  %v241_v31 = vld [vmem:[%s7885_s30 + $0xb0] sm:$0xff]  ;;  %v242_v32 = vld [vmem:[%s7885_s30 + $0xb8] sm:$0xff]  ;;  %v243_v33 = vld [vmem:[%s7885_s30 + $0xc0] sm:$0xff]  ;;  %s7605_s23 = scalar_lea.vmem %s9977_s17, 4096 }
  0x78   : > { %6270 = vmatprep.mubr.msk.bf16.mxu0 %vm497_vm4, %v7957_v41  ;;  %v7970_v45 = vsel %vm7930_vm3, %v271_v18, %v338_v37  ;;  %v7976_v46 = vsel %vm7930_vm3, %v274_v23, %v342_v42  ;;  %v350_v50 = vor.u32 %v348_v39, %v7962_v43  ;;  %v352_v58 = vshll.u32 %v7953_v40, 16  ;;  %p7606_p11 = scmp.ne.s32.totalorder %s9977_s17, %s7605_s23  ;;  %p10095_p0 = scmp.ne.s32.totalorder %s10076_s6, 0 }
  0x79   : > { %6271 = vmatmul.mubr.msk.bf16.vlgmr.msra.gmra.mrb[0].mxu0 %vm497_vm4, %v7970_v45  ;;  %v7998_v56 = vsel %vm7930_vm3, %v277_v29, %v346_v47  ;;  %v8000_v57 = vrot.slane %v283_v48, 7  ;;  %v8009_v61 = vrot.slane %v286_v51, 7  ;;  %v10069_v62 = vshll.u32 %v7964_v44, 16  ;;  %s7684_s5 = smov [#allocation8]  }
  0x7a   : > { %6303 = vmatpush3.bf16.msra.mxu0 %v712_v34  ;;  %6274 = vmatprep.mubr.msk.bf16.mxu0 %vm497_vm4, %v7976_v46  ;;  %v8007_v60 = vsel %vm7930_vm3, %v280_v30, %v350_v50  ;;  %v8012_v63 = vpack.c.bf16 %v236_v55, %v235_v54  ;;  %v289_v1 = vshrl.u32 %v8003_v59, 16  ;;  %v10065_v12 = vshll.u32 %v8003_v59, 16  ;;  %v244_v34 = vld [vmem:[%s7885_s30 + $0xc8] sm:$0xff]  ;;  %p7607_p1 = pnand %p7606_p11, %p10095_p0  ;;  %s7609_s10 = sshll.u32 %s7684_s5, 4  ;;  %s7610_s10 = int_to_ptr.vmem [resolvable:$false] %s7609_s10 }
  0x7b   : > { %7394 = vmatprep.subr.msk.bf16.mxu0 %vm546_vm0, %v7984_v49  ;;  %v354_v0 = vor.u32 %v352_v58, %v8000_v57  ;;  %v358_v2 = vor.u32 %v10069_v62, %v8009_v61  ;;  %v8037_v15 = vpack.c.bf16 %v238_v6, %v237_v5  ;;  %v8046_v23 = vpack.c.bf16 %v240_v9, %v239_v7  ;;  %v247_v5 = vld [vmem:[%s7885_s30 + $0xe0] sm:$0xff]  ;;  %v248_v6 = vld [vmem:[%s7885_s30 + $0xe8] sm:$0xff]  ;;  %s7611_s11 = scalar_lea.vmem %s7610_s10, 8192  ;;  %p7612_p7 = scmp.lt.s32.totalorder %s9977_s17, %s7610_s10 }
  0x7c   : > { %v292_v3 = vshrl.u32 %v8012_v63, 16  ;;  %v8034_v11 = vrot.slane %v289_v1, 7  ;;  %v10063_v18 = vshll.u32 %v8012_v63, 16  ;;  %v8080_v53 = vpack.c.bf16 %v244_v34, %v243_v33  ;;  %p7608_p3 = pneg %p7607_p1  ;;  %p7613_p9 = scmp.lt.s32.totalorder %s7611_s11, %s7605_s23 }
  0x7d   : > { %v8032_v10 = vsel %vm7930_vm3, %v283_v48, %v354_v0  ;;  %v8041_v16 = vsel %vm7930_vm3, %v286_v51, %v358_v2  ;;  %v295_v26 = vshrl.u32 %v8037_v15, 16  ;;  %v298_v30 = vshrl.u32 %v8046_v23, 16  ;;  %v245_v2 = vld [vmem:[%s7885_s30 + $0xd0] sm:$0xff] }
  0x7e   : > { %v8043_v17 = vrot.slane %v292_v3, 7  ;;  %v362_v25 = vor.u32 %v10065_v12, %v8034_v11  ;;  %v10061_v47 = vshll.u32 %v8037_v15, 16  ;;  %v8071_v48 = vpack.c.bf16 %v242_v32, %v241_v31  ;;  %p7614_p12 = por %p7613_p9, %p7612_p7 }
  0x7f   : > { %v8068_v42 = vrot.slane %v295_v26, 7  ;;  %v8077_v51 = vrot.slane %v298_v30, 7  ;;  %v10060_v52 = vshll.u32 %v8046_v23, 16  ;;  %v10064_v33 = vshll.u32 %v8080_v53, 16 }
  0x80   : > { %v366_v29 = vor.u32 %v10063_v18, %v8043_v17  ;;  %v8066_v37 = vsel %vm7930_vm3, %v289_v1, %v362_v25  ;;  %v301_v55 = vshrl.u32 %v8071_v48, 16  ;;  %v304_v1 = vshrl.u32 %v8080_v53, 16  ;;  %p7615_p2 = pnand %p7614_p12, %p7608_p3 }
  0x81   : > { %6275 = vmatmul.mubr.msk.bf16.gmra.mrb[4].mxu0 %vm497_vm4, %v7998_v56  ;;  %v370_v54 = vor.u32 %v10061_v47, %v8068_v42  ;;  %v374_v0 = vor.u32 %v10060_v52, %v8077_v51  ;;  %v10062_v25 = vshll.u32 %v8071_v48, 16  ;;  %v8114_v34 = vpack.c.bf16 %v248_v6, %v247_v5 }
  0x82   : > { %6278 = vmatprep.mubr.msk.bf16.mxu0 %vm497_vm4, %v8007_v60  ;;  %v8075_v50 = vsel %vm7930_vm3, %v292_v3, %v366_v29  ;;  %v246_v3 = vld [vmem:[%s7885_s30 + $0xd8] sm:$0xff]  ;;  %v8102_v9 = vrot.slane %v301_v55, 7  ;;  %v8111_v32 = vrot.slane %v304_v1, 7  ;;  %v878_v8 = vsel %vm546_vm0, %v7984_v49, 0 }
  0x83   : > { %v8100_v7 = vsel %vm7930_vm3, %v295_v26, %v370_v54  ;;  %v8105_v29 = vpack.c.bf16 %v246_v3, %v245_v2  ;;  %v8109_v31 = vsel %vm7930_vm3, %v298_v30, %v374_v0  ;;  %v310_v0 = vshrl.u32 %v8114_v34, 16  ;;  %v249_v2 = vld [vmem:[%s7885_s30 + $0xf0] sm:$0xff]  ;;  %v250_v3 = vld [vmem:[%s7885_s30 + $0xf8] sm:$0xff] }
  0x84   : > { %v378_v26 = vor.u32 %v10062_v25, %v8102_v9  ;;  %v382_v30 = vor.u32 %v10064_v33, %v8111_v32  ;;  %v8137_v47 = vpack.c.bf16 %v250_v3, %v249_v2  ;;  %v10066_v33 = vshll.u32 %v8114_v34, 16 }
  0x85   : > { %v307_v54 = vshrl.u32 %v8105_v29, 16  ;;  %v10068_v52 = vshll.u32 %v8105_v29, 16  ;;  %v8143_v18 = vrot.slane %v310_v0, 7  ;;  %v1074_v49 = vshrl.u32 %v7970_v45, 16 }
  0x86   : > { %v8132_v5 = vsel %vm7930_vm3, %v301_v55, %v378_v26  ;;  %v8141_v25 = vsel %vm7930_vm3, %v304_v1, %v382_v30  ;;  %v313_v26 = vshrl.u32 %v8137_v47, 16  ;;  %v10067_v3 = vshll.u32 %v8137_v47, 16 }
  0x87   : > { %v8134_v6 = vrot.slane %v307_v54, 7  ;;  %v390_v1 = vor.u32 %v10066_v33, %v8143_v18  ;;  %v430_v62 = vrot.slane %v344_v36, 7  ;;  %v1096_v36 = vshrl.u32 %v7976_v46, 16 }
  0x88   : > { %v8161_v2 = vrot.slane %v313_v26, 7 }
  0x89   : > { %6279 = vmatmul.mubr.msk.bf16.gmra.mrb[8].mxu0 %vm497_vm4, %v8032_v10  ;;  %v386_v55 = vor.u32 %v10068_v52, %v8134_v6  ;;  %v8166_v12 = vsel %vm7930_vm3, %v310_v0, %v390_v1  ;;  %v428_v0 = vrot.slane %v336_v19, 7  ;;  %v8289_v20 = vsel %vm7930_vm3, %v7950_v38, %v430_v62  ;;  %v8303_v62 = vld [vmem:[#allocation5 + $0xe] sm:$0x3] }
  0x8a   : > { %6282 = vmatprep.mubr.msk.bf16.mxu0 %vm497_vm4, %v8041_v16  ;;  %v394_v33 = vor.u32 %v10067_v3, %v8161_v2  ;;  %v432_v38 = vrot.slane %v352_v58, 7 }
  0x8b   : > { %v8159_v30 = vsel %vm7930_vm3, %v307_v54, %v386_v55  ;;  %v427_v54 = vrot.slane %v332_v13, 7  ;;  %v8190_v1 = vsel %vm7930_vm3, %v7934_v28, %v428_v0  ;;  %v1251_v13 = vld [vmem:[#allocation5 + $0x2] sm:$0x3]  ;;  %v1076_v28 = vshll.u32 %v7970_v45, 16 }
  0x8c   : > { %v8179_v55 = vsel %vm7930_vm3, %v313_v26, %v394_v33  ;;  %v1298_v19 = vsel %vm546_vm0, %v1251_v13, 0  ;;  %v1081_v26 = vshll.u32 %v8190_v1, 16  ;;  %v8321_v40 = vsel %vm7930_vm3, %v8000_v57, %v432_v38 }
  0x8d   : > { %v8195_v4 = vsel %vm7930_vm3, %v7922_v22, %v427_v54  ;;  %v1494_v22 = vld [vmem:[#allocation5 + $0x8] sm:$0x3]  ;;  %v1078_v33 = vrot.slane %v1076_v28, 1  ;;  %v1087_v54 = vshll.u32 %v7957_v41, 16  ;;  %v429_v28 = vrot.slane %v340_v24, 7 }
  0x8e   : > { %v1092_v3 = vshll.u32 %v8195_v4, 16  ;;  %v1109_v24 = vshll.u32 %v7998_v56, 16  ;;  %v1136_v57 = vshll.u32 %v8321_v40, 16 }
  0x8f   : > { %v1079_v0 = vor.u32 %v1078_v33, %v1074_v49  ;;  %v1098_v49 = vshll.u32 %v7976_v46, 16  ;;  %v8283_v14 = vsel %vm7930_vm3, %v7944_v35, %v429_v28  ;;  %v1114_v35 = vshll.u32 %v8289_v20, 16 }
  0x90   : > { %v431_v28 = vrot.slane %v348_v39, 7  ;;  %v1131_v39 = vshll.u32 %v8032_v10, 16 }
  0x91   : > { %6283 = vmatmul.mubr.msk.bf16.gmra.mrb[12].mxu0 %vm497_vm4, %v8066_v37 }
  0x92   : > { %6286 = vmatprep.mubr.msk.bf16.mxu0 %vm497_vm4, %v8075_v50  ;;  %v8313_v21 = vsel %vm7930_vm3, %v7962_v43, %v431_v28  ;;  %v10084_v28 = vshll.u32 %v8003_v59, 16  ;;  %v1138_v59 = vrot.slane %v1136_v57, 1  ;;  %v10087_v57 = vshll.u32 %v8037_v15, 16 }
  0x93   : > { %v1175_v15 = vshll.u32 %v8100_v7, 16 }
  0x94   : > { %v434_v38 = vrot.slane %v10084_v28, 7 }
  0x99   : > { %6287 = vmatmul.mubr.msk.bf16.gmra.mrb[16].mxu0 %vm497_vm4, %v8100_v7 }
  0x9a   : > { %6290 = vmatprep.mubr.msk.bf16.mxu0 %vm497_vm4, %v8109_v31 }
  0xa1   : > { %6291 = vmatmul.mubr.msk.bf16.gmra.mrb[20].mxu0 %vm497_vm4, %v8132_v5 }
  0xa2   : > { %6294 = vmatprep.mubr.msk.bf16.mxu0 %vm497_vm4, %v8141_v25 }
  0xa9   : > { %6295 = vmatmul.mubr.msk.bf16.gmra.mrb[24].mxu0 %vm497_vm4, %v8159_v30 }
  0xaa   : > { %6298 = vmatprep.mubr.msk.bf16.mxu0 %vm497_vm4, %v8166_v12 }
  0xb1   : > { %6299 = vmatmul.mubr.msk.bf16.gmra.mrb[28].mxu0 %vm497_vm4, %v8179_v55 }
  0xb2   : > { %6304 = vmatprep.mubr.msk.bf16.mxu0 %vm497_vm4, %v7970_v45 }
  0xb9   : > { %6305 = vmatmul.mubr.msk.bf16.vlgmr.msra.gmra.mrb[0].mxu0 %vm497_vm4, %v7957_v41 }
  0xba   : > { %6337 = vmatpush3.bf16.msra.mxu0 %v878_v8  ;;  %6308 = vmatprep.mubr.msk.bf16.mxu0 %vm497_vm4, %v7970_v45  ;;  %v1083_v8 = vrot.slane %v1081_v26, 1  ;;  %v1094_v26 = vrot.slane %v1092_v3, 1  ;;  %v1107_v3 = vshrl.u32 %v7998_v56, 16 }
  0xbb   : > { %7395 = vmatprep.subr.msk.bf16.mxu0 %vm546_vm0, %v1251_v13  ;;  %v1085_v13 = vshrl.u32 %v7957_v41, 16 }
  0xbc   : > { %v8271_v52 = vsel %vm1073_vm5, %v1079_v0, %v1083_v8  ;;  %v1103_v0 = vshll.u32 %v8283_v14, 16 }
  0xc1   : > { %6309 = vmatmul.mubr.msk.bf16.gmra.mrb[4].mxu0 %vm497_vm4, %v7976_v46 }
  0xc2   : > { %6312 = vmatprep.mubr.msk.bf16.mxu0 %vm497_vm4, %v7998_v56 }
  0xc9   : > { %6313 = vmatmul.mubr.msk.bf16.gmra.mrb[8].mxu0 %vm497_vm4, %v8007_v60 }
  0xca   : > { %6316 = vmatprep.mubr.msk.bf16.mxu0 %vm497_vm4, %v8032_v10 }
  0xd1   : > { %6317 = vmatmul.mubr.msk.bf16.gmra.mrb[12].mxu0 %vm497_vm4, %v8041_v16 }
  0xd2   : > { %6320 = vmatprep.mubr.msk.bf16.mxu0 %vm497_vm4, %v8066_v37 }
  0xd9   : > { %6321 = vmatmul.mubr.msk.bf16.gmra.mrb[16].mxu0 %vm497_vm4, %v8075_v50 }
  0xda   : > { %6324 = vmatprep.mubr.msk.bf16.mxu0 %vm497_vm4, %v8100_v7 }
  0xe1   : > { %6325 = vmatmul.mubr.msk.bf16.gmra.mrb[20].mxu0 %vm497_vm4, %v8109_v31 }
  0xe2   : > { %6328 = vmatprep.mubr.msk.bf16.mxu0 %vm497_vm4, %v8132_v5 }
  0xe9   : > { %6329 = vmatmul.mubr.msk.bf16.gmra.mrb[24].mxu0 %vm497_vm4, %v8141_v25 }
  0xea   : > { %6332 = vmatprep.mubr.msk.bf16.mxu0 %vm497_vm4, %v8159_v30 }
  0xf1   : > { %6333 = vmatmul.mubr.msk.bf16.gmra.mrb[28].mxu0 %vm497_vm4, %v8166_v12 }
  0xf2   : > { %6338 = vmatprep.mubr.msk.bf16.mxu0 %vm497_vm4, %v7970_v45 }
  0xf9   : > { %6339 = vmatmul.mubr.msk.bf16.vlgmr.msra.gmra.mrb[0].mxu0 %vm497_vm4, %v7976_v46 }
  0xfa   : > { %6371 = vmatpush3.bf16.msra.mxu0 %v1298_v19  ;;  %6342 = vmatprep.mubr.msk.bf16.mxu0 %vm497_vm4, %v7998_v56  ;;  %v1089_v19 = vrot.slane %v1087_v54, 1  ;;  %v1100_v54 = vrot.slane %v1098_v49, 1 }
  0xfb   : > { %7396 = vmatprep.subr.msk.bf16.mxu0 %vm546_vm0, %v1494_v22 }
  0xfc   : > { %v1090_v33 = vor.u32 %v1089_v19, %v1085_v13  ;;  %v1111_v13 = vrot.slane %v1109_v24, 1  ;;  %v1499_v19 = vsel %vm546_vm0, %v1494_v22, 0  ;;  %v1101_v49 = vor.u32 %v1100_v54, %v1096_v36 }
  0xfd   : > { %v1116_v24 = vrot.slane %v1114_v35, 1  ;;  %v1120_v22 = vshll.u32 %v8007_v60, 16  ;;  %v1118_v36 = vshrl.u32 %v8007_v60, 16  ;;  %v1129_v35 = vshrl.u32 %v8032_v10, 16 }
  0xfe   : > { %v8294_v8 = vsel %vm1073_vm5, %v1090_v33, %v1094_v26  ;;  %v1105_v33 = vrot.slane %v1103_v0, 1  ;;  %v1112_v26 = vor.u32 %v1111_v13, %v1107_v3  ;;  %v1125_v0 = vshll.u32 %v8313_v21, 16 }
  0xff   : > { %v1122_v43 = vrot.slane %v1120_v22, 1  ;;  %v10083_v3 = vshll.u32 %v7964_v44, 16 }
 0x100   : > { %v8324_v58 = vsel %vm1073_vm5, %v1101_v49, %v1105_v33  ;;  %v8328_v54 = vsel %vm1073_vm5, %v1112_v26, %v1116_v24  ;;  %v1142_v49 = vshll.u32 %v8041_v16, 16  ;;  %v1127_v26 = vrot.slane %v1125_v0, 1 }
 0x101   : > { %6343 = vmatmul.mubr.msk.bf16.gmra.mrb[4].mxu0 %vm497_vm4, %v8007_v60  ;;  %v433_v13 = vrot.slane %v10083_v3, 7  ;;  %v1123_v33 = vor.u32 %v1122_v43, %v1118_v36  ;;  %v1153_v24 = vshll.u32 %v8066_v37, 16  ;;  %v1140_v3 = vshrl.u32 %v8041_v16, 16 }
 0x102   : > { %6346 = vmatprep.mubr.msk.bf16.mxu0 %vm497_vm4, %v8032_v10  ;;  %v1144_v28 = vrot.slane %v1142_v49, 1 }
 0x103   : > { %v8345_v44 = vsel %vm7930_vm3, %v8009_v61, %v433_v13  ;;  %v8356_v43 = vsel %vm1073_vm5, %v1123_v33, %v1127_v26  ;;  %v1151_v61 = vshrl.u32 %v8066_v37, 16  ;;  %v1155_v0 = vrot.slane %v1153_v24, 1 }
 0x104   : > { %v1147_v36 = vshll.u32 %v8345_v44, 16  ;;  %v1145_v49 = vor.u32 %v1144_v28, %v1140_v3  ;;  %v1162_v3 = vshrl.u32 %v8075_v50, 16 }
 0x105   : > { %v1156_v26 = vor.u32 %v1155_v0, %v1151_v61 }
 0x106   : > { %v1149_v33 = vrot.slane %v1147_v36, 1 }
 0x109   : > { %6347 = vmatmul.mubr.msk.bf16.gmra.mrb[8].mxu0 %vm497_vm4, %v8041_v16 }
 0x10a   : > { %6350 = vmatprep.mubr.msk.bf16.mxu0 %vm497_vm4, %v8066_v37 }
 0x111   : > { %6351 = vmatmul.mubr.msk.bf16.gmra.mrb[12].mxu0 %vm497_vm4, %v8075_v50 }
 0x112   : > { %6354 = vmatprep.mubr.msk.bf16.mxu0 %vm497_vm4, %v8100_v7 }
 0x119   : > { %6355 = vmatmul.mubr.msk.bf16.gmra.mrb[16].mxu0 %vm497_vm4, %v8109_v31 }
 0x11a   : > { %6358 = vmatprep.mubr.msk.bf16.mxu0 %vm497_vm4, %v8132_v5 }
 0x121   : > { %6359 = vmatmul.mubr.msk.bf16.gmra.mrb[20].mxu0 %vm497_vm4, %v8141_v25 }
 0x122   : > { %6362 = vmatprep.mubr.msk.bf16.mxu0 %vm497_vm4, %v8159_v30 }
 0x129   : > { %6363 = vmatmul.mubr.msk.bf16.gmra.mrb[24].mxu0 %vm497_vm4, %v8166_v12 }
 0x12a   : > { %6366 = vmatprep.mubr.msk.bf16.mxu0 %vm497_vm4, %v8179_v55 }
 0x131   : > { %6367 = vmatmul.mubr.msk.bf16.gmra.mrb[28].mxu0 %vm497_vm4, %v8166_v12 }
 0x132   : > { %6372 = vmatprep.mubr.msk.bf16.mxu0 %vm497_vm4, %v8271_v52 }
 0x139   : > { %6373 = vmatmul.mubr.msk.bf16.vlgmr.msra.gmra.mrb[0].mxu0 %vm497_vm4, %v8294_v8 }
 0x13a   : > { %6405 = vmatpush3.bf16.msra.mxu0 %v1499_v19  ;;  %6376 = vmatprep.mubr.msk.bf16.mxu0 %vm497_vm4, %v8271_v52  ;;  %v1133_v19 = vrot.slane %v1131_v39, 1  ;;  %v8351_v39 = vsel %vm7930_vm3, %v8034_v11, %v434_v38  ;;  %v436_v38 = vrot.slane %v10087_v57, 7 }
 0x13b   : > { %7397 = vmatprep.subr.msk.bf16.mxu0 %vm546_vm0, %v8303_v62  ;;  %10085 = vst [vmem:[#allocation12_spill] sm:$0xff] %v8351_v39  ;;  %v1158_v13 = vshll.u32 %v8351_v39, 16  ;;  %v1164_v39 = vshll.u32 %v8075_v50, 16 }
 0x13c   : > { %v1134_v22 = vor.u32 %v1133_v19, %v1129_v35  ;;  %v10086_v19 = vshll.u32 %v8012_v63, 16 }
 0x13d   : > { %v1160_v24 = vrot.slane %v1158_v13, 1  ;;  %v1166_v36 = vrot.slane %v1164_v39, 1  ;;  %v1173_v13 = vshrl.u32 %v8100_v7, 16 }
 0x13e   : > { %v8361_v35 = vsel %vm1073_vm5, %v1134_v22, %v1138_v59  ;;  %v435_v11 = vrot.slane %v10086_v19, 7  ;;  %v8381_v22 = vsel %vm7930_vm3, %v8068_v42, %v436_v38  ;;  %v8384_v59 = vsel %vm1073_vm5, %v1145_v49, %v1149_v33 }
 0x13f   : > { %v8388_v28 = vsel %vm1073_vm5, %v1156_v26, %v1160_v24  ;;  %v1177_v19 = vrot.slane %v1175_v15, 1  ;;  %v1180_v42 = vshll.u32 %v8381_v22, 16  ;;  %v1186_v38 = vshll.u32 %v8109_v31, 16 }
 0x140   : > { %v8375_v63 = vsel %vm7930_vm3, %v8043_v17, %v435_v11  ;;  %v10088_v17 = vshll.u32 %v8046_v23, 16  ;;  %v10089_v11 = vshll.u32 %v8071_v48, 16  ;;  %v1167_v39 = vor.u32 %v1166_v36, %v1162_v3 }
 0x141   : > { %6377 = vmatmul.mubr.msk.bf16.gmra.mrb[4].mxu0 %vm497_vm4, %v8324_v58  ;;  %v1169_v61 = vshll.u32 %v8375_v63, 16  ;;  %v1197_v33 = vshll.u32 %v8132_v5, 16  ;;  %v1178_v26 = vor.u32 %v1177_v19, %v1173_v13  ;;  %v1182_v48 = vrot.slane %v1180_v42, 1 }
 0x142   : > { %6380 = vmatprep.mubr.msk.bf16.mxu0 %vm497_vm4, %v8328_v54  ;;  %v437_v0 = vrot.slane %v10088_v17, 7  ;;  %v438_v57 = vrot.slane %v10089_v11, 7  ;;  %v1184_v15 = vshrl.u32 %v8109_v31, 16  ;;  %v1188_v17 = vrot.slane %v1186_v38, 1 }
 0x143   : > { %v1171_v49 = vrot.slane %v1169_v61, 1  ;;  %v1199_v61 = vrot.slane %v1197_v33, 1  ;;  %v8421_v13 = vsel %vm1073_vm5, %v1178_v26, %v1182_v48  ;;  %v10090_v19 = vshll.u32 %v8080_v53, 16 }
 0x144   : > { %v8405_v23 = vsel %vm7930_vm3, %v8077_v51, %v437_v0  ;;  %v8411_v24 = vsel %vm7930_vm3, %v8102_v9, %v438_v57  ;;  %v1195_v51 = vshrl.u32 %v8132_v5, 16  ;;  %v10091_v42 = vshll.u32 %v8105_v29, 16 }
 0x145   : > { %v1191_v3 = vshll.u32 %v8405_v23, 16  ;;  %v8416_v36 = vsel %vm1073_vm5, %v1167_v39, %v1171_v49  ;;  %v1202_v0 = vshll.u32 %v8411_v24, 16  ;;  %v439_v9 = vrot.slane %v10090_v19, 7 }
 0x146   : > { %v440_v11 = vrot.slane %v10091_v42, 7  ;;  %v1189_v57 = vor.u32 %v1188_v17, %v1184_v15  ;;  %v1200_v39 = vor.u32 %v1199_v61, %v1195_v51  ;;  %v1208_v33 = vshll.u32 %v8141_v25, 16 }
 0x147   : > { %v1193_v38 = vrot.slane %v1191_v3, 1  ;;  %v1204_v49 = vrot.slane %v1202_v0, 1  ;;  %v8435_v53 = vsel %vm7930_vm3, %v8111_v32, %v439_v9  ;;  %v1219_v29 = vshll.u32 %v8159_v30, 16 }
 0x148   : > { %v8441_v26 = vsel %vm7930_vm3, %v8134_v6, %v440_v11  ;;  %v1206_v17 = vshrl.u32 %v8141_v25, 16  ;;  %v1210_v3 = vrot.slane %v1208_v33, 1  ;;  %v1213_v51 = vshll.u32 %v8435_v53, 16 }
 0x149   : > { %6381 = vmatmul.mubr.msk.bf16.gmra.mrb[8].mxu0 %vm497_vm4, %v8356_v43  ;;  %v8444_v48 = vsel %vm1073_vm5, %v1189_v57, %v1193_v38  ;;  %v8447_v15 = vsel %vm1073_vm5, %v1200_v39, %v1204_v49  ;;  %v1217_v32 = vshrl.u32 %v8159_v30, 16  ;;  %v1221_v61 = vrot.slane %v1219_v29, 1 }
 0x14a   : > { %6384 = vmatprep.mubr.msk.bf16.mxu0 %vm497_vm4, %v8361_v35  ;;  %v1224_v0 = vshll.u32 %v8441_v26, 16  ;;  %v10092_v19 = vshll.u32 %v8114_v34, 16  ;;  %v1211_v9 = vor.u32 %v1210_v3, %v1206_v17  ;;  %v1215_v42 = vrot.slane %v1213_v51, 1 }
 0x14b   : > { %v1230_v11 = vshll.u32 %v8166_v12, 16  ;;  %v1222_v57 = vor.u32 %v1221_v61, %v1217_v32  ;;  %v1228_v49 = vshrl.u32 %v8166_v12, 16  ;;  %v1974_v32 = vld [vmem:[#allocation5 + $0x4] sm:$0x3]  ;;  %v1241_v61 = vshll.u32 %v8179_v55, 16 }
 0x14c   : > { %v441_v6 = vrot.slane %v10092_v19, 7  ;;  %v1226_v38 = vrot.slane %v1224_v0, 1  ;;  %v1216_v34 = vsel %vm1073_vm5, %v1211_v9, %v1215_v42 }
 0x14d   : > { %v1232_v33 = vrot.slane %v1230_v11, 1  ;;  %v1243_v9 = vrot.slane %v1241_v61, 1 }
 0x14e   : > { %v8463_v39 = vsel %vm7930_vm3, %v8143_v18, %v441_v6  ;;  %v1227_v19 = vsel %vm1073_vm5, %v1222_v57, %v1226_v38  ;;  %v1697_v18 = vsel %vm546_vm0, %v8303_v62, 0  ;;  %v1239_v6 = vshrl.u32 %v8179_v55, 16  ;;  %v2217_v38 = vld [vmem:[#allocation5 + $0xa] sm:$0x3] }
 0x14f   : > { %v1235_v29 = vshll.u32 %v8463_v39, 16  ;;  %v1233_v17 = vor.u32 %v1232_v33, %v1228_v49  ;;  %v10094_v49 = vld [vmem:[#allocation12_spill] sm:$0xff]  ;;  %v1968_v61 = vrot.slane %v8463_v39, 1 }
 0x151   : > { %6385 = vmatmul.mubr.msk.bf16.gmra.mrb[12].mxu0 %vm497_vm4, %v8384_v59  ;;  %v1237_v3 = vrot.slane %v1235_v29, 1 }
 0x152   : > { %6388 = vmatprep.mubr.msk.bf16.mxu0 %vm497_vm4, %v8388_v28 }
 0x153   : > { %v1238_v51 = vsel %vm1073_vm5, %v1233_v17, %v1237_v3  ;;  %v1950_v17 = vrot.slane %v8375_v63, 1  ;;  %v1959_v63 = vrot.slane %v8411_v24, 1 }
 0x159   : > { %6389 = vmatmul.mubr.msk.bf16.gmra.mrb[16].mxu0 %vm497_vm4, %v8416_v36 }
 0x15a   : > { %6392 = vmatprep.mubr.msk.bf16.mxu0 %vm497_vm4, %v8421_v13 }
 0x161   : > { %6393 = vmatmul.mubr.msk.bf16.gmra.mrb[20].mxu0 %vm497_vm4, %v8444_v48 }
 0x162   : > { %6396 = vmatprep.mubr.msk.bf16.mxu0 %vm497_vm4, %v8447_v15 }
 0x169   : > { %6397 = vmatmul.mubr.msk.bf16.gmra.mrb[24].mxu0 %vm497_vm4, %v1216_v34 }
 0x16a   : > { %6400 = vmatprep.mubr.msk.bf16.mxu0 %vm497_vm4, %v1227_v19 }
 0x171   : > { %6401 = vmatmul.mubr.msk.bf16.gmra.mrb[28].mxu0 %vm497_vm4, %v1238_v51 }
 0x172   : > { %6406 = vmatprep.mubr.msk.bf16.mxu0 %vm497_vm4, %v8294_v8  ;;  %v10093_v8 = vshll.u32 %v8137_v47, 16  ;;  %v1244_v47 = vor.u32 %v1243_v9, %v1239_v6 }
 0x174   : > { %v442_v62 = vrot.slane %v10093_v8, 7  ;;  %v1962_v8 = vrot.slane %v8435_v53, 1 }
 0x176   : > { %v8507_v0 = vsel %vm7930_vm3, %v8161_v2, %v442_v62  ;;  %v2021_v2 = vsel %vm546_vm0, %v1974_v32, 0  ;;  %v1967_v62 = vrot.slane %v8166_v12, 1  ;;  %v1970_v12 = vrot.slane %v8179_v55, 1 }
 0x177   : > { %v1246_v42 = vshll.u32 %v8507_v0, 16  ;;  %v1971_v53 = vrot.slane %v8507_v0, 1 }
 0x179   : > { %6407 = vmatmul.mubr.msk.bf16.vlgmr.msra.gmra.mrb[0].mxu0 %vm497_vm4, %v8271_v52  ;;  %v1248_v11 = vrot.slane %v1246_v42, 1 }
 0x17a   : > { %6439 = vmatpush3.bf16.msra.mxu0 %v1697_v18  ;;  %6410 = vmatprep.mubr.msk.bf16.mxu0 %vm497_vm4, %v8324_v58  ;;  %v1956_v18 = vrot.slane %v8405_v23, 1  ;;  %v1965_v23 = vrot.slane %v8441_v26, 1  ;;  %v1972_v26 = vsel %vm1924_vm6, %v1970_v12, %v1971_v53 }
 0x17b   : > { %7398 = vmatprep.subr.msk.bf16.mxu0 %vm546_vm0, %v1974_v32  ;;  %v1249_v57 = vsel %vm1073_vm5, %v1244_v47, %v1248_v11  ;;  %v1961_v32 = vrot.slane %v8141_v25, 1  ;;  %v1969_v25 = vsel %vm1924_vm6, %v1967_v62, %v1968_v61 }
 0x181   : > { %6411 = vmatmul.mubr.msk.bf16.gmra.mrb[4].mxu0 %vm497_vm4, %v8328_v54 }
 0x182   : > { %6414 = vmatprep.mubr.msk.bf16.mxu0 %vm497_vm4, %v8356_v43 }
 0x189   : > { %6415 = vmatmul.mubr.msk.bf16.gmra.mrb[8].mxu0 %vm497_vm4, %v8361_v35 }
 0x18a   : > { %6418 = vmatprep.mubr.msk.bf16.mxu0 %vm497_vm4, %v8384_v59 }
 0x191   : > { %6419 = vmatmul.mubr.msk.bf16.gmra.mrb[12].mxu0 %vm497_vm4, %v8388_v28 }
 0x192   : > { %6422 = vmatprep.mubr.msk.bf16.mxu0 %vm497_vm4, %v8416_v36 }
 0x199   : > { %6423 = vmatmul.mubr.msk.bf16.gmra.mrb[16].mxu0 %vm497_vm4, %v8421_v13 }
 0x19a   : > { %6426 = vmatprep.mubr.msk.bf16.mxu0 %vm497_vm4, %v8444_v48 }
 0x1a1   : > { %6427 = vmatmul.mubr.msk.bf16.gmra.mrb[20].mxu0 %vm497_vm4, %v8447_v15 }
 0x1a2   : > { %6430 = vmatprep.mubr.msk.bf16.mxu0 %vm497_vm4, %v1216_v34 }
 0x1a9   : > { %6431 = vmatmul.mubr.msk.bf16.gmra.mrb[24].mxu0 %vm497_vm4, %v1227_v19 }
 0x1aa   : > { %6434 = vmatprep.mubr.msk.bf16.mxu0 %vm497_vm4, %v1238_v51 }
 0x1b1   : > { %6435 = vmatmul.mubr.msk.bf16.gmra.mrb[28].mxu0 %vm497_vm4, %v1249_v57 }
 0x1b2   : > { %6440 = vmatprep.mubr.msk.bf16.mxu0 %vm497_vm4, %v8271_v52  ;;  %v1925_v52 = vrot.slane %v7970_v45, 1  ;;  %v2418_v45 = vld [vmem:[#allocation5 + $0x10] sm:$0x3] }
 0x1b9   : > { %6441 = vmatmul.mubr.msk.bf16.vlgmr.msra.gmra.mrb[0].mxu0 %vm497_vm4, %v8324_v58  ;;  %v1926_v58 = vrot.slane %v8190_v1, 1  ;;  %v1931_v1 = vrot.slane %v7976_v46, 1  ;;  %v1937_v46 = vrot.slane %v8007_v60, 1  ;;  %v1943_v60 = vrot.slane %v8041_v16, 1 }
 0x1ba   : > { %6473 = vmatpush3.bf16.msra.mxu0 %v2021_v2  ;;  %6444 = vmatprep.mubr.msk.bf16.mxu0 %vm497_vm4, %v8328_v54  ;;  %v1952_v16 = vrot.slane %v8100_v7, 1 }
 0x1bb   : > { %7399 = vmatprep.subr.msk.bf16.mxu0 %vm546_vm0, %v2217_v38  ;;  %v8546_v54 = vsel %vm1924_vm6, %v1925_v52, %v1926_v58 }
 0x1c1   : > { %6445 = vmatmul.mubr.msk.bf16.gmra.mrb[4].mxu0 %vm497_vm4, %v8356_v43  ;;  %v1928_v43 = vrot.slane %v7957_v41, 1  ;;  %v1932_v41 = vrot.slane %v8283_v14, 1  ;;  %v1940_v14 = vrot.slane %v8032_v10, 1  ;;  %v1946_v10 = vrot.slane %v8066_v37, 1 }
 0x1c2   : > { %6448 = vmatprep.mubr.msk.bf16.mxu0 %vm497_vm4, %v8361_v35  ;;  %v1929_v35 = vrot.slane %v8195_v4, 1 }
 0x1c3   : > { %v8564_v4 = vsel %vm1924_vm6, %v1931_v1, %v1932_v41 }
 0x1c9   : > { %6449 = vmatmul.mubr.msk.bf16.gmra.mrb[8].mxu0 %vm497_vm4, %v8384_v59  ;;  %v1930_v59 = vsel %vm1924_vm6, %v1928_v43, %v1929_v35 }
 0x1ca   : > { %6452 = vmatprep.mubr.msk.bf16.mxu0 %vm497_vm4, %v8388_v28  ;;  %v2222_v28 = vsel %vm546_vm0, %v2217_v38, 0 }
 0x1d1   : > { %6453 = vmatmul.mubr.msk.bf16.gmra.mrb[12].mxu0 %vm497_vm4, %v8416_v36  ;;  %v1934_v36 = vrot.slane %v7998_v56, 1  ;;  %v1938_v56 = vrot.slane %v8313_v21, 1  ;;  %v1944_v21 = vrot.slane %v8345_v44, 1  ;;  %v1953_v44 = vrot.slane %v8381_v22, 1 }
 0x1d2   : > { %6456 = vmatprep.mubr.msk.bf16.mxu0 %vm497_vm4, %v8421_v13  ;;  %v1935_v13 = vrot.slane %v8289_v20, 1  ;;  %v1941_v20 = vrot.slane %v8321_v40, 1  ;;  %v1947_v40 = vrot.slane %v10094_v49, 1 }
 0x1d3   : > { %v1945_v33 = vsel %vm1924_vm6, %v1943_v60, %v1944_v21  ;;  %v1954_v3 = vsel %vm1924_vm6, %v1952_v16, %v1953_v44  ;;  %v8723_v16 = vld [vmem:[#allocation7] sm:$0x3] }
 0x1d4   : > { %v1948_v29 = vsel %vm1924_vm6, %v1946_v10, %v1947_v40 }
 0x1d9   : > { %6457 = vmatmul.mubr.msk.bf16.gmra.mrb[16].mxu0 %vm497_vm4, %v8444_v48  ;;  %v8567_v48 = vsel %vm1924_vm6, %v1934_v36, %v1935_v13  ;;  %v3129_v13 = vld [vmem:[#allocation7 + $0x6] sm:$0x3] }
 0x1da   : > { %6460 = vmatprep.mubr.msk.bf16.mxu0 %vm497_vm4, %v8447_v15  ;;  %v8578_v15 = vsel %vm1924_vm6, %v1937_v46, %v1938_v56  ;;  %7401 = vmatprep.subr.msk.bf16.mxu1 %vm546_vm0, %v3129_v13 }
 0x1e1   : > { %6461 = vmatmul.mubr.msk.bf16.gmra.mrb[20].mxu0 %vm497_vm4, %v1216_v34  ;;  %v8581_v34 = vsel %vm1924_vm6, %v1940_v14, %v1941_v20  ;;  %v3179_v14 = vsel %vm546_vm0, %v3129_v13, 0 }
 0x1e2   : > { %6464 = vmatprep.mubr.msk.bf16.mxu0 %vm497_vm4, %v1227_v19  ;;  %v1949_v19 = vrot.slane %v8075_v50, 1  ;;  %v1958_v50 = vrot.slane %v8132_v5, 1  ;;  %v1963_v5 = vsel %vm1924_vm6, %v1961_v32, %v1962_v8  ;;  %6575 = vmatpush3.bf16.msra.mxu1 %v3179_v14 }
 0x1e3   : > { %7402 = vmatprep.subr.msk.bf16.mxu1 %vm546_vm0, %v8723_v16 }
 0x1e4   : > { %v1951_v37 = vsel %vm1924_vm6, %v1949_v19, %v1950_v17  ;;  %v1960_v22 = vsel %vm1924_vm6, %v1958_v50, %v1959_v63 }
 0x1e9   : > { %6465 = vmatmul.mubr.msk.bf16.gmra.mrb[24].mxu0 %vm497_vm4, %v1238_v51 }
 0x1ea   : > { %6468 = vmatprep.mubr.msk.bf16.mxu0 %vm497_vm4, %v1249_v57 }
 0x1f1   : > { %6469 = vmatmul.mubr.msk.bf16.gmra.mrb[28].mxu0 %vm497_vm4, %v1238_v51  ;;  %v1955_v51 = vrot.slane %v8109_v31, 1  ;;  %v1964_v31 = vrot.slane %v8159_v30, 1  ;;  %v2420_v30 = vsel %vm546_vm0, %v2418_v45, 0 }
 0x1f2   : > { %6474 = vmatprep.mubr.msk.bf16.mxu0 %vm497_vm4, %v8546_v54 }
 0x1f3   : > { %v1957_v7 = vsel %vm1924_vm6, %v1955_v51, %v1956_v18  ;;  %v1966_v24 = vsel %vm1924_vm6, %v1964_v31, %v1965_v23 }
 0x1f9   : > { %6475 = vmatmul.mubr.msk.bf16.vlgmr.msra.gmra.mrb[0].mxu0 %vm497_vm4, %v1930_v59 }
 0x1fa   : > { %6507 = vmatpush3.bf16.msra.mxu0 %v2222_v28  ;;  %6478 = vmatprep.mubr.msk.bf16.mxu0 %vm497_vm4, %v8546_v54 }
 0x1fb   : > { %7400 = vmatprep.subr.msk.bf16.mxu0 %vm546_vm0, %v2418_v45 }
 0x201   : > { %6479 = vmatmul.mubr.msk.bf16.gmra.mrb[4].mxu0 %vm497_vm4, %v8564_v4 }
 0x202   : > { %6482 = vmatprep.mubr.msk.bf16.mxu0 %vm497_vm4, %v8567_v48 }
 0x209   : > { %6483 = vmatmul.mubr.msk.bf16.gmra.mrb[8].mxu0 %vm497_vm4, %v8578_v15 }
 0x20a   : > { %6486 = vmatprep.mubr.msk.bf16.mxu0 %vm497_vm4, %v8581_v34 }
 0x211   : > { %6487 = vmatmul.mubr.msk.bf16.gmra.mrb[12].mxu0 %vm497_vm4, %v1945_v33 }
 0x212   : > { %6490 = vmatprep.mubr.msk.bf16.mxu0 %vm497_vm4, %v1948_v29 }
 0x219   : > { %6491 = vmatmul.mubr.msk.bf16.gmra.mrb[16].mxu0 %vm497_vm4, %v1951_v37 }
 0x21a   : > { %6494 = vmatprep.mubr.msk.bf16.mxu0 %vm497_vm4, %v1954_v3 }
 0x221   : > { %6495 = vmatmul.mubr.msk.bf16.gmra.mrb[20].mxu0 %vm497_vm4, %v1957_v7 }
 0x222   : > { %6498 = vmatprep.mubr.msk.bf16.mxu0 %vm497_vm4, %v1960_v22 }
 0x229   : > { %6499 = vmatmul.mubr.msk.bf16.gmra.mrb[24].mxu0 %vm497_vm4, %v1963_v5 }
 0x22a   : > { %6502 = vmatprep.mubr.msk.bf16.mxu0 %vm497_vm4, %v1966_v24 }
 0x231   : > { %6503 = vmatmul.mubr.msk.bf16.gmra.mrb[28].mxu0 %vm497_vm4, %v1969_v25 }
 0x232   : > { %6508 = vmatprep.mubr.msk.bf16.mxu0 %vm497_vm4, %v1930_v59 }
 0x239   : > { %6509 = vmatmul.mubr.msk.bf16.vlgmr.msra.gmra.mrb[0].mxu0 %vm497_vm4, %v8546_v54 }
 0x23a   : > { %6541 = vmatpush3.bf16.msra.mxu0 %v2420_v30  ;;  %6512 = vmatprep.mubr.msk.bf16.mxu0 %vm497_vm4, %v8564_v4 }
 0x241   : > { %6513 = vmatmul.mubr.msk.bf16.gmra.mrb[4].mxu0 %vm497_vm4, %v8567_v48 }
 0x242   : > { %6516 = vmatprep.mubr.msk.bf16.mxu0 %vm497_vm4, %v8578_v15 }
 0x249   : > { %6517 = vmatmul.mubr.msk.bf16.gmra.mrb[8].mxu0 %vm497_vm4, %v8581_v34 }
 0x24a   : > { %6520 = vmatprep.mubr.msk.bf16.mxu0 %vm497_vm4, %v1945_v33 }
 0x251   : > { %6521 = vmatmul.mubr.msk.bf16.gmra.mrb[12].mxu0 %vm497_vm4, %v1948_v29 }
 0x252   : > { %6524 = vmatprep.mubr.msk.bf16.mxu0 %vm497_vm4, %v1951_v37 }
 0x259   : > { %6525 = vmatmul.mubr.msk.bf16.gmra.mrb[16].mxu0 %vm497_vm4, %v1954_v3 }
 0x25a   : > { %6528 = vmatprep.mubr.msk.bf16.mxu0 %vm497_vm4, %v1957_v7 }
 0x261   : > { %6529 = vmatmul.mubr.msk.bf16.gmra.mrb[20].mxu0 %vm497_vm4, %v1960_v22 }
 0x262   : > { %6532 = vmatprep.mubr.msk.bf16.mxu0 %vm497_vm4, %v1963_v5 }
 0x269   : > { %6533 = vmatmul.mubr.msk.bf16.gmra.mrb[24].mxu0 %vm497_vm4, %v1966_v24 }
 0x26a   : > { %6536 = vmatprep.mubr.msk.bf16.mxu0 %vm497_vm4, %v1969_v25 }
 0x271   : > { %6537 = vmatmul.mubr.msk.bf16.gmra.mrb[28].mxu0 %vm497_vm4, %v1972_v26 }
 0x272   : > { %6542 = vmatprep.mubr.msk.bf16.mxu0 %vm497_vm4, %v8546_v54 }
 0x279   : > { %6543 = vmatmul.mubr.msk.bf16.vlgmr.msra.gmra.mrb[0].mxu0 %vm497_vm4, %v8564_v4 }
 0x27a   : > { %6546 = vmatprep.mubr.msk.bf16.mxu0 %vm497_vm4, %v8567_v48 }
 0x281   : > { %6547 = vmatmul.mubr.msk.bf16.gmra.mrb[4].mxu0 %vm497_vm4, %v8578_v15 }
 0x282   : > { %6550 = vmatprep.mubr.msk.bf16.mxu0 %vm497_vm4, %v8581_v34 }
 0x289   : > { %6551 = vmatmul.mubr.msk.bf16.gmra.mrb[8].mxu0 %vm497_vm4, %v1945_v33 }
 0x28a   : > { %6554 = vmatprep.mubr.msk.bf16.mxu0 %vm497_vm4, %v1948_v29 }
 0x291   : > { %6555 = vmatmul.mubr.msk.bf16.gmra.mrb[12].mxu0 %vm497_vm4, %v1951_v37 }
 0x292   : > { %6558 = vmatprep.mubr.msk.bf16.mxu0 %vm497_vm4, %v1954_v3 }
 0x299   : > { %6559 = vmatmul.mubr.msk.bf16.gmra.mrb[16].mxu0 %vm497_vm4, %v1957_v7 }
 0x29a   : > { %6562 = vmatprep.mubr.msk.bf16.mxu0 %vm497_vm4, %v1960_v22 }
 0x2a1   : > { %6563 = vmatmul.mubr.msk.bf16.gmra.mrb[20].mxu0 %vm497_vm4, %v1963_v5 }
 0x2a2   : > { %6566 = vmatprep.mubr.msk.bf16.mxu0 %vm497_vm4, %v1966_v24 }
 0x2a9   : > { %6567 = vmatmul.mubr.msk.bf16.gmra.mrb[24].mxu0 %vm497_vm4, %v1969_v25 }
 0x2aa   : > { %6570 = vmatprep.mubr.msk.bf16.mxu0 %vm497_vm4, %v1972_v26 }
 0x2b1   : > { %6571 = vmatmul.mubr.msk.bf16.gmra.mrb[28].mxu0 %vm497_vm4, %v1969_v25 }
 0x34c   : > { %v8669_v55 = vpop.f32.mrb[0].mxu0 }
 0x34d   : > { %v8671_v39 = vpop.f32.mrb[1].mxu0  ;;  %v2687_v42 = vmul.f32 %v8669_v55, %v8669_v55  ;;  %v2618_v38 = vsel %vm497_vm4, %v8669_v55, 0.0 }
 0x34e   : > { %v2685_v0 = vmul.f32 %v8671_v39, %v8671_v39  ;;  %v8675_v6 = vpop.f32.mrb[2].mxu0  ;;  %v2615_v47 = vsel %vm497_vm4, %v8671_v39, 0.0 }
 0x34f   : > { %v8677_v9 = vpop.f32.mrb[3].mxu0  ;;  %v2688_v58 = vmul.f32 %v8675_v6, %v8675_v6  ;;  %v2720_v59 = vsel %vm497_vm4, %v2687_v42, 0.0  ;;  %v2620_v28 = vsel %vm497_vm4, %v8675_v6, 0.0 }
 0x350   : > { %v2616_v11 = vsel %vm497_vm4, %v8677_v9, 0.0  ;;  %v2686_v57 = vmul.f32 %v8677_v9, %v8677_v9  ;;  %v2717_v52 = vsel %vm497_vm4, %v2685_v0, 0.0 }
 0x351   : > { %v2617_v2 = vadd.f32 %v2616_v11, %v2615_v47  ;;  %v2722_v4 = vsel %vm497_vm4, %v2688_v58, 0.0 }
 0x352   : > { %v2718_v54 = vsel %vm497_vm4, %v2686_v57, 0.0 }
 0x353   : > { %v2619_v43 = vadd.f32 %v2618_v38, %v2617_v2  ;;  %v2719_v35 = vadd.f32 %v2718_v54, %v2717_v52 }
 0x354   : > { %v8696_v45 = vpop.f32.mrb[4].mxu0 }
 0x355   : > { %v2721_v1 = vadd.f32 %v2720_v59, %v2719_v35  ;;  %v8698_v41 = vpop.f32.mrb[5].mxu0  ;;  %v2621_v36 = vadd.f32 %v2620_v28, %v2619_v43  ;;  %v2691_v60 = vmul.f32 %v8696_v45, %v8696_v45  ;;  %v2626_v29 = vsel %vm497_vm4, %v8696_v45, 0.0 }
 0x356   : > { %v2622_v48 = vsel %vm497_vm4, %v8698_v41, 0.0  ;;  %v2689_v46 = vmul.f32 %v8698_v41, %v8698_v41  ;;  %v8705_v56 = vpop.f32.mrb[6].mxu0 }
 0x357   : > { %v2623_v20 = vadd.f32 %v2622_v48, %v2621_v36  ;;  %v2723_v15 = vadd.f32 %v2722_v4, %v2721_v1  ;;  %v8709_v34 = vpop.f32.mrb[7].mxu0  ;;  %v2692_v19 = vmul.f32 %v8705_v56, %v8705_v56  ;;  %v2728_v3 = vsel %vm497_vm4, %v2691_v60, 0.0 }
 0x358   : > { %v2724_v21 = vsel %vm497_vm4, %v2689_v46, 0.0  ;;  %v2624_v10 = vsel %vm497_vm4, %v8709_v34, 0.0  ;;  %v2690_v49 = vmul.f32 %v8709_v34, %v8709_v34  ;;  %v2628_v51 = vsel %vm497_vm4, %v8705_v56, 0.0 }
 0x359   : > { %v2725_v40 = vadd.f32 %v2724_v21, %v2723_v15  ;;  %v2625_v33 = vadd.f32 %v2624_v10, %v2623_v20  ;;  %v2730_v22 = vsel %vm497_vm4, %v2692_v19, 0.0 }
 0x35a   : > { %v2726_v17 = vsel %vm497_vm4, %v2690_v49, 0.0 }
 0x35b   : > { %v2627_v44 = vadd.f32 %v2626_v29, %v2625_v33  ;;  %v2727_v37 = vadd.f32 %v2726_v17, %v2725_v40 }
 0x35c   : > { %v8730_v18 = vpop.f32.mrb[8].mxu0 }
 0x35d   : > { %v2729_v50 = vadd.f32 %v2728_v3, %v2727_v37  ;;  %v8732_v63 = vpop.f32.mrb[9].mxu0  ;;  %v2629_v7 = vadd.f32 %v2628_v51, %v2627_v44  ;;  %v2695_v62 = vmul.f32 %v8730_v18, %v8730_v18  ;;  %v2634_v26 = vsel %vm497_vm4, %v8730_v18, 0.0 }
 0x35e   : > { %v2630_v32 = vsel %vm497_vm4, %v8732_v63, 0.0  ;;  %v2693_v8 = vmul.f32 %v8732_v63, %v8732_v63  ;;  %v8739_v31 = vpop.f32.mrb[10].mxu0 }
 0x35f   : > { %v2631_v23 = vadd.f32 %v2630_v32, %v2629_v7  ;;  %v2731_v5 = vadd.f32 %v2730_v22, %v2729_v50  ;;  %v8741_v24 = vpop.f32.mrb[11].mxu0  ;;  %v2696_v0 = vmul.f32 %v8739_v31, %v8739_v31  ;;  %v2736_v57 = vsel %vm497_vm4, %v2695_v62, 0.0 }
 0x360   : > { %v2732_v61 = vsel %vm497_vm4, %v2693_v8, 0.0  ;;  %v2632_v25 = vsel %vm497_vm4, %v8741_v24, 0.0  ;;  %v2694_v30 = vmul.f32 %v8741_v24, %v8741_v24  ;;  %v2636_v2 = vsel %vm497_vm4, %v8739_v31, 0.0 }
 0x361   : > { %v2733_v12 = vadd.f32 %v2732_v61, %v2731_v5  ;;  %v2633_v53 = vadd.f32 %v2632_v25, %v2631_v23  ;;  %v2738_v43 = vsel %vm497_vm4, %v2696_v0, 0.0 }
 0x362   : > { %v2734_v42 = vsel %vm497_vm4, %v2694_v30, 0.0 }
 0x363   : > { %v2635_v47 = vadd.f32 %v2634_v26, %v2633_v53  ;;  %v2735_v11 = vadd.f32 %v2734_v42, %v2733_v12 }
 0x364   : > { %v8758_v38 = vpop.f32.mrb[12].mxu0 }
 0x365   : > { %v2737_v52 = vadd.f32 %v2736_v57, %v2735_v11  ;;  %v8760_v58 = vpop.f32.mrb[13].mxu0  ;;  %v2637_v54 = vadd.f32 %v2636_v2, %v2635_v47  ;;  %v2699_v4 = vmul.f32 %v8758_v38, %v8758_v38  ;;  %v2642_v60 = vsel %vm497_vm4, %v8758_v38, 0.0 }
 0x366   : > { %v2638_v35 = vsel %vm497_vm4, %v8760_v58, 0.0  ;;  %v2697_v59 = vmul.f32 %v8760_v58, %v8760_v58  ;;  %v8767_v28 = vpop.f32.mrb[14].mxu0 }
 0x367   : > { %v2639_v1 = vadd.f32 %v2638_v35, %v2637_v54  ;;  %v2739_v36 = vadd.f32 %v2738_v43, %v2737_v52  ;;  %v8769_v13 = vpop.f32.mrb[15].mxu0  ;;  %v2700_v21 = vmul.f32 %v8767_v28, %v8767_v28  ;;  %v2744_v33 = vsel %vm497_vm4, %v2699_v4, 0.0 }
 0x368   : > { %v2740_v48 = vsel %vm497_vm4, %v2697_v59, 0.0  ;;  %v2640_v46 = vsel %vm497_vm4, %v8769_v13, 0.0  ;;  %v2698_v14 = vmul.f32 %v8769_v13, %v8769_v13  ;;  %v2644_v29 = vsel %vm497_vm4, %v8767_v28, 0.0 }
 0x369   : > { %v2741_v20 = vadd.f32 %v2740_v48, %v2739_v36  ;;  %v2641_v15 = vadd.f32 %v2640_v46, %v2639_v1  ;;  %v2746_v3 = vsel %vm497_vm4, %v2700_v21, 0.0 }
 0x36a   : > { %v2742_v10 = vsel %vm497_vm4, %v2698_v14, 0.0 }
 0x36b   : > { %v2643_v49 = vadd.f32 %v2642_v60, %v2641_v15  ;;  %v2743_v40 = vadd.f32 %v2742_v10, %v2741_v20 }
 0x36c   : > { %v8786_v19 = vpop.f32.mrb[16].mxu0 }
 0x36d   : > { %v2745_v17 = vadd.f32 %v2744_v33, %v2743_v40  ;;  %v8788_v44 = vpop.f32.mrb[17].mxu0  ;;  %v2645_v37 = vadd.f32 %v2644_v29, %v2643_v49  ;;  %v2703_v23 = vmul.f32 %v8786_v19, %v8786_v19  ;;  %v2650_v12 = vsel %vm497_vm4, %v8786_v19, 0.0 }
 0x36e   : > { %v2646_v51 = vsel %vm497_vm4, %v8788_v44, 0.0  ;;  %v2701_v50 = vmul.f32 %v8788_v44, %v8788_v44  ;;  %v8795_v7 = vpop.f32.mrb[18].mxu0 }
 0x36f   : > { %v2647_v22 = vadd.f32 %v2646_v51, %v2645_v37  ;;  %v2747_v32 = vadd.f32 %v2746_v3, %v2745_v17  ;;  %v8797_v8 = vpop.f32.mrb[19].mxu0  ;;  %v2704_v53 = vmul.f32 %v8795_v7, %v8795_v7  ;;  %v2752_v47 = vsel %vm497_vm4, %v2703_v23, 0.0 }
 0x370   : > { %v2748_v5 = vsel %vm497_vm4, %v2701_v50, 0.0  ;;  %v2648_v62 = vsel %vm497_vm4, %v8797_v8, 0.0  ;;  %v2702_v61 = vmul.f32 %v8797_v8, %v8797_v8  ;;  %v2652_v11 = vsel %vm497_vm4, %v8795_v7, 0.0 }
 0x371   : > { %v2749_v25 = vadd.f32 %v2748_v5, %v2747_v32  ;;  %v2649_v30 = vadd.f32 %v2648_v62, %v2647_v22  ;;  %v2754_v43 = vsel %vm497_vm4, %v2704_v53, 0.0 }
 0x372   : > { %v2750_v26 = vsel %vm497_vm4, %v2702_v61, 0.0 }
 0x373   : > { %v2651_v0 = vadd.f32 %v2650_v12, %v2649_v30  ;;  %v2751_v42 = vadd.f32 %v2750_v26, %v2749_v25 }
 0x374   : > { %v8814_v57 = vpop.f32.mrb[20].mxu0 }
 0x375   : > { %v2753_v2 = vadd.f32 %v2752_v47, %v2751_v42  ;;  %v8816_v52 = vpop.f32.mrb[21].mxu0  ;;  %v2653_v54 = vadd.f32 %v2652_v11, %v2651_v0  ;;  %v2707_v46 = vmul.f32 %v8814_v57, %v8814_v57  ;;  %v2658_v10 = vsel %vm497_vm4, %v8814_v57, 0.0 }
 0x376   : > { %v2654_v35 = vsel %vm497_vm4, %v8816_v52, 0.0  ;;  %v2705_v59 = vmul.f32 %v8816_v52, %v8816_v52  ;;  %v8823_v1 = vpop.f32.mrb[22].mxu0 }
 0x377   : > { %v2655_v36 = vadd.f32 %v2654_v35, %v2653_v54  ;;  %v2755_v4 = vadd.f32 %v2754_v43, %v2753_v2  ;;  %v8825_v48 = vpop.f32.mrb[23].mxu0  ;;  %v2708_v49 = vmul.f32 %v8823_v1, %v8823_v1  ;;  %v2760_v17 = vsel %vm497_vm4, %v2707_v46, 0.0 }
 0x378   : > { %v2756_v14 = vsel %vm497_vm4, %v2705_v59, 0.0  ;;  %v2656_v20 = vsel %vm497_vm4, %v8825_v48, 0.0  ;;  %v2706_v15 = vmul.f32 %v8825_v48, %v8825_v48  ;;  %v2660_v37 = vsel %vm497_vm4, %v8823_v1, 0.0 }
 0x379   : > { %v2757_v60 = vadd.f32 %v2756_v14, %v2755_v4  ;;  %v2657_v21 = vadd.f32 %v2656_v20, %v2655_v36  ;;  %v2762_v32 = vsel %vm497_vm4, %v2708_v49, 0.0 }
 0x37a   : > { %v2758_v40 = vsel %vm497_vm4, %v2706_v15, 0.0 }
 0x37b   : > { %v2659_v33 = vadd.f32 %v2658_v10, %v2657_v21  ;;  %v2759_v29 = vadd.f32 %v2758_v40, %v2757_v60 }
 0x37c   : > { %v8842_v3 = vpop.f32.mrb[24].mxu0 }
 0x37d   : > { %v2761_v51 = vadd.f32 %v2760_v17, %v2759_v29  ;;  %v8844_v50 = vpop.f32.mrb[25].mxu0  ;;  %v2661_v22 = vadd.f32 %v2660_v37, %v2659_v33  ;;  %v2711_v12 = vmul.f32 %v8842_v3, %v8842_v3  ;;  %v2666_v11 = vsel %vm497_vm4, %v8842_v3, 0.0 }
 0x37e   : > { %v2662_v23 = vsel %vm497_vm4, %v8844_v50, 0.0  ;;  %v2709_v5 = vmul.f32 %v8844_v50, %v8844_v50  ;;  %v8851_v62 = vpop.f32.mrb[26].mxu0 }
 0x37f   : > { %v2663_v61 = vadd.f32 %v2662_v23, %v2661_v22  ;;  %v2763_v25 = vadd.f32 %v2762_v32, %v2761_v51  ;;  %v8853_v30 = vpop.f32.mrb[27].mxu0  ;;  %v2712_v2 = vmul.f32 %v8851_v62, %v8851_v62  ;;  %v2768_v59 = vsel %vm497_vm4, %v2711_v12, 0.0 }
 0x380   : > { %v2764_v53 = vsel %vm497_vm4, %v2709_v5, 0.0  ;;  %v2664_v26 = vsel %vm497_vm4, %v8853_v30, 0.0  ;;  %v2710_v0 = vmul.f32 %v8853_v30, %v8853_v30  ;;  %v2668_v36 = vsel %vm497_vm4, %v8851_v62, 0.0 }
 0x381   : > { %v2765_v42 = vadd.f32 %v2764_v53, %v2763_v25  ;;  %v2665_v47 = vadd.f32 %v2664_v26, %v2663_v61  ;;  %v2770_v15 = vsel %vm497_vm4, %v2712_v2, 0.0 }
 0x382   : > { %v2766_v54 = vsel %vm497_vm4, %v2710_v0, 0.0 }
 0x383   : > { %v2667_v43 = vadd.f32 %v2666_v11, %v2665_v47  ;;  %v2767_v35 = vadd.f32 %v2766_v54, %v2765_v42 }
 0x384   : > { %v8870_v4 = vpop.f32.mrb[28].mxu0 }
 0x385   : > { %v2769_v46 = vadd.f32 %v2768_v59, %v2767_v35  ;;  %v8872_v14 = vpop.f32.mrb[29].mxu0  ;;  %v2669_v20 = vadd.f32 %v2668_v36, %v2667_v43  ;;  %v2715_v29 = vmul.f32 %v8870_v4, %v8870_v4  ;;  %v2674_v23 = vsel %vm497_vm4, %v8870_v4, 0.0 }
 0x386   : > { %v2670_v60 = vsel %vm497_vm4, %v8872_v14, 0.0  ;;  %v2713_v21 = vmul.f32 %v8872_v14, %v8872_v14  ;;  %v8879_v10 = vpop.f32.mrb[30].mxu0 }
 0x387   : > { %v2671_v49 = vadd.f32 %v2670_v60, %v2669_v20  ;;  %v2771_v40 = vadd.f32 %v2770_v15, %v2769_v46  ;;  %v8881_v33 = vpop.f32.mrb[31].mxu0  ;;  %v2716_v5 = vmul.f32 %v8879_v10, %v8879_v10  ;;  %v2776_v53 = vsel %vm497_vm4, %v2715_v29, 0.0 }
 0x388   : > { %v2772_v17 = vsel %vm497_vm4, %v2713_v21, 0.0  ;;  %v2672_v37 = vsel %vm497_vm4, %v8881_v33, 0.0  ;;  %v2714_v51 = vmul.f32 %v8881_v33, %v8881_v33  ;;  %v2676_v26 = vsel %vm497_vm4, %v8879_v10, 0.0 }
 0x389   : > { %v2773_v22 = vadd.f32 %v2772_v17, %v2771_v40  ;;  %v2673_v32 = vadd.f32 %v2672_v37, %v2671_v49  ;;  %v2778_v47 = vsel %vm497_vm4, %v2716_v5, 0.0 }
 0x38a   : > { %v2774_v61 = vsel %vm497_vm4, %v2714_v51, 0.0 }
 0x38b   : > { %v2675_v25 = vadd.f32 %v2674_v23, %v2673_v32  ;;  %v2775_v12 = vadd.f32 %v2774_v61, %v2773_v22 }
 0x38d   : > { %v2677_v0 = vadd.f32 %v2676_v26, %v2675_v25  ;;  %v2777_v42 = vadd.f32 %v2776_v53, %v2775_v12 }
 0x38f   : > { %v2678_v11 = vrot.slane %v2677_v0, 4  ;;  %v2779_v2 = vadd.f32 %v2778_v47, %v2777_v42 }
 0x391   : > { %v2679_v54 = vadd.f32 %v2678_v11, %v2677_v0  ;;  %v2780_v43 = vrot.slane %v2779_v2, 4 }
 0x393   : > { %v2680_v35 = vrot.slane %v2679_v54, 2  ;;  %v2781_v59 = vadd.f32 %v2780_v43, %v2779_v2 }
 0x395   : > { %v2681_v36 = vadd.f32 %v2680_v35, %v2679_v54  ;;  %v2782_v46 = vrot.slane %v2781_v59, 2 }
 0x397   : > { %v2682_v20 = vrot.slane %v2681_v36, 1  ;;  %v2783_v15 = vadd.f32 %v2782_v46, %v2781_v59 }
 0x399   : > { %v2683_v60 = vadd.f32 %v2682_v20, %v2681_v36  ;;  %v2784_v21 = vrot.slane %v2783_v15, 1 }
 0x39b   : > { %v8899_v49 = vmul.f32 0.00390625, %v2683_v60  ;;  %v2785_v40 = vadd.f32 %v2784_v21, %v2783_v15 }
 0x39d   : > { %v2786_v29 = vmul.f32 0.00390625, %v2785_v40  ;;  %v2787_v17 = vmul.f32 %v8899_v49, %v8899_v49  ;;  %v2817_v37 = vsub.f32 %v8872_v14, %v8899_v49  ;;  %v2818_v51 = vsub.f32 %v8881_v33, %v8899_v49 }
 0x39e   : > { %v2789_v22 = vsub.f32 %v8671_v39, %v8899_v49  ;;  %v2790_v32 = vsub.f32 %v8677_v9, %v8899_v49  ;;  %v2791_v23 = vsub.f32 %v8669_v55, %v8899_v49  ;;  %v2792_v5 = vsub.f32 %v8675_v6, %v8899_v49 }
 0x39f   : > { %v2788_v61 = vsub.f32 %v2786_v29, %v2787_v17  ;;  %v2793_v25 = vsub.f32 %v8698_v41, %v8899_v49  ;;  %v2794_v14 = vsub.f32 %v8709_v34, %v8899_v49  ;;  %v2795_v33 = vsub.f32 %v8696_v45, %v8899_v49 }
 0x3a0   : > { %v2796_v39 = vsub.f32 %v8705_v56, %v8899_v49  ;;  %v2797_v9 = vsub.f32 %v8732_v63, %v8899_v49  ;;  %v2798_v55 = vsub.f32 %v8741_v24, %v8899_v49  ;;  %v2799_v6 = vsub.f32 %v8730_v18, %v8899_v49 }
 0x3a1   : > { %v2821_v12 = vadd.f32 1e-05, %v2788_v61  ;;  %v2800_v41 = vsub.f32 %v8739_v31, %v8899_v49  ;;  %v2801_v34 = vsub.f32 %v8760_v58, %v8899_v49  ;;  %v2802_v45 = vsub.f32 %v8769_v13, %v8899_v49 }
 0x3a2   : > { %v2803_v56 = vsub.f32 %v8758_v38, %v8899_v49  ;;  %v2804_v63 = vsub.f32 %v8767_v28, %v8899_v49  ;;  %v2805_v24 = vsub.f32 %v8788_v44, %v8899_v49  ;;  %v2806_v18 = vsub.f32 %v8797_v8, %v8899_v49 }
 0x3a3   : > { %7483 = vrsqrt.f32 %v2821_v12  ;;  %v2807_v31 = vsub.f32 %v8786_v19, %v8899_v49  ;;  %v2808_v58 = vsub.f32 %v8795_v7, %v8899_v49  ;;  %v2809_v13 = vsub.f32 %v8816_v52, %v8899_v49 }
 0x3a4   : > { %v2810_v38 = vsub.f32 %v8825_v48, %v8899_v49  ;;  %v2811_v28 = vsub.f32 %v8814_v57, %v8899_v49  ;;  %v2812_v44 = vsub.f32 %v8823_v1, %v8899_v49  ;;  %v2813_v8 = vsub.f32 %v8844_v50, %v8899_v49 }
 0x3a5   : > { %v2814_v19 = vsub.f32 %v8853_v30, %v8899_v49  ;;  %v2815_v7 = vsub.f32 %v8842_v3, %v8899_v49  ;;  %v2816_v52 = vsub.f32 %v8851_v62, %v8899_v49  ;;  %v2819_v48 = vsub.f32 %v8870_v4, %v8899_v49 }
 0x3a6   : > { %v2820_v57 = vsub.f32 %v8879_v10, %v8899_v49 }
 0x3ad   : > { %v7484_v53 = vpop.eup %7483 }
 0x3ae   : > { %v2851_v1 = vmul.f32 %v7484_v53, %v2817_v37  ;;  %v2852_v26 = vmul.f32 %v7484_v53, %v2818_v51  ;;  %v8967_v0 = vmul.f32 %v7484_v53, %v2789_v22  ;;  %v8969_v50 = vmul.f32 %v7484_v53, %v2790_v32 }
 0x3af   : > { %v8971_v30 = vmul.f32 %v7484_v53, %v2791_v23  ;;  %v2826_v42 = vmul.f32 %v7484_v53, %v2792_v5  ;;  %v2827_v3 = vmul.f32 %v7484_v53, %v2793_v25  ;;  %v2828_v47 = vmul.f32 %v7484_v53, %v2794_v14 }
 0x3b0   : > { %v2883_v11 = vmax.f32 %v2851_v1, 0.0  ;;  %v2884_v62 = vmax.f32 %v2852_v26, 0.0  ;;  %v2829_v2 = vmul.f32 %v7484_v53, %v2795_v33  ;;  %v2830_v54 = vmul.f32 %v7484_v53, %v2796_v39 }
 0x3b1   : > { %v2831_v4 = vmul.f32 %v7484_v53, %v2797_v9  ;;  %v2832_v43 = vmul.f32 %v7484_v53, %v2798_v55  ;;  %v2833_v35 = vmul.f32 %v7484_v53, %v2799_v6  ;;  %v2834_v10 = vmul.f32 %v7484_v53, %v2800_v41 }
 0x3b2   : > { %v8973_v59 = vpack.c.bf16 %v2884_v62, %v2883_v11  ;;  %v2835_v36 = vmul.f32 %v7484_v53, %v2801_v34  ;;  %v2836_v46 = vmul.f32 %v7484_v53, %v2802_v45  ;;  %v2837_v20 = vmul.f32 %v7484_v53, %v2803_v56 }
 0x3b3   : > { %v2838_v15 = vmul.f32 %v7484_v53, %v2804_v63  ;;  %v2839_v60 = vmul.f32 %v7484_v53, %v2805_v24  ;;  %v2840_v21 = vmul.f32 %v7484_v53, %v2806_v18  ;;  %v2841_v49 = vmul.f32 %v7484_v53, %v2807_v31 }
 0x3b4   : > { %v2842_v40 = vmul.f32 %v7484_v53, %v2808_v58  ;;  %v2843_v29 = vmul.f32 %v7484_v53, %v2809_v13  ;;  %v2844_v17 = vmul.f32 %v7484_v53, %v2810_v38  ;;  %v2845_v37 = vmul.f32 %v7484_v53, %v2811_v28 }
 0x3b5   : > { %v2846_v51 = vmul.f32 %v7484_v53, %v2812_v44  ;;  %v2847_v22 = vmul.f32 %v7484_v53, %v2813_v8  ;;  %v2848_v32 = vmul.f32 %v7484_v53, %v2814_v19  ;;  %v2849_v23 = vmul.f32 %v7484_v53, %v2815_v7 }
 0x3b6   : > { %v2850_v5 = vmul.f32 %v7484_v53, %v2816_v52  ;;  %v2853_v61 = vmul.f32 %v7484_v53, %v2819_v48  ;;  %v2854_v25 = vmul.f32 %v7484_v53, %v2820_v57  ;;  %v2855_v14 = vmax.f32 %v8967_v0, 0.0 }
 0x3b7   : > { %v2856_v33 = vmax.f32 %v8969_v50, 0.0  ;;  %v2857_v39 = vmax.f32 %v8971_v30, 0.0  ;;  %v2858_v9 = vmax.f32 %v2826_v42, 0.0  ;;  %v2859_v55 = vmax.f32 %v2827_v3, 0.0 }
 0x3b8   : > { %v2860_v6 = vmax.f32 %v2828_v47, 0.0  ;;  %v2861_v12 = vmax.f32 %v2829_v2, 0.0  ;;  %v2862_v41 = vmax.f32 %v2830_v54, 0.0  ;;  %v2863_v34 = vmax.f32 %v2831_v4, 0.0 }
 0x3b9   : > { %v2864_v45 = vmax.f32 %v2832_v43, 0.0  ;;  %v2865_v56 = vmax.f32 %v2833_v35, 0.0  ;;  %v2866_v63 = vmax.f32 %v2834_v10, 0.0  ;;  %v2867_v24 = vmax.f32 %v2835_v36, 0.0 }
 0x3ba   : > { %v2868_v18 = vmax.f32 %v2836_v46, 0.0  ;;  %v2869_v31 = vmax.f32 %v2837_v20, 0.0  ;;  %v2870_v58 = vmax.f32 %v2838_v15, 0.0  ;;  %v2871_v13 = vmax.f32 %v2839_v60, 0.0 }
 0x3bb   : > { %v2872_v38 = vmax.f32 %v2840_v21, 0.0  ;;  %v2873_v28 = vmax.f32 %v2841_v49, 0.0  ;;  %v2874_v44 = vmax.f32 %v2842_v40, 0.0  ;;  %v2875_v8 = vmax.f32 %v2843_v29, 0.0 }
 0x3bc   : > { %v2876_v19 = vmax.f32 %v2844_v17, 0.0  ;;  %v2877_v7 = vmax.f32 %v2845_v37, 0.0  ;;  %v2878_v52 = vmax.f32 %v2846_v51, 0.0  ;;  %v2879_v48 = vmax.f32 %v2847_v22, 0.0 }
 0x3bd   : > { %v2880_v57 = vmax.f32 %v2848_v32, 0.0  ;;  %v2881_v53 = vmax.f32 %v2849_v23, 0.0  ;;  %v2882_v1 = vmax.f32 %v2850_v5, 0.0  ;;  %v2885_v26 = vmax.f32 %v2853_v61, 0.0 }
 0x3be   : > { %v2886_v0 = vmax.f32 %v2854_v25, 0.0  ;;  %v2887_v50 = vpack.c.bf16 %v2856_v33, %v2855_v14  ;;  %v2888_v30 = vpack.c.bf16 %v2858_v9, %v2857_v39  ;;  %v2889_v42 = vpack.c.bf16 %v2860_v6, %v2859_v55 }
 0x3bf   : > { %v8978_v3 = vpack.c.bf16 %v2862_v41, %v2861_v12  ;;  %v8980_v47 = vpack.c.bf16 %v2864_v45, %v2863_v34  ;;  %v8982_v11 = vpack.c.bf16 %v2866_v63, %v2865_v56  ;;  %v8984_v62 = vpack.c.bf16 %v2868_v18, %v2867_v24  ;;  %v9018_v12 = vld [vmem:[#allocation7 + $0xc] sm:$0x3] }
 0x3c0   : > { %v8986_v2 = vpack.c.bf16 %v2870_v58, %v2869_v31  ;;  %v8988_v54 = vpack.c.bf16 %v2872_v38, %v2871_v13  ;;  %v8990_v4 = vpack.c.bf16 %v2874_v44, %v2873_v28  ;;  %v8992_v43 = vpack.c.bf16 %v2876_v19, %v2875_v8 }
 0x3c1   : > { %v8994_v35 = vpack.c.bf16 %v2878_v52, %v2877_v7  ;;  %v8996_v10 = vpack.c.bf16 %v2880_v57, %v2879_v48  ;;  %v8998_v36 = vpack.c.bf16 %v2882_v1, %v2881_v53  ;;  %v9000_v46 = vpack.c.bf16 %v2886_v0, %v2885_v26 }
 0x3c2   : > { %v2907_v20 = vshrl.u32 %v2888_v30, 16  ;;  %v2904_v15 = vshrl.u32 %v2887_v50, 16  ;;  %v2910_v60 = vshrl.u32 %v2889_v42, 16  ;;  %v2972_v49 = vshll.u32 %v2888_v30, 16 }
 0x3c3   : > { %v2968_v37 = vshll.u32 %v2887_v50, 16  ;;  %v2976_v51 = vshll.u32 %v2889_v42, 16  ;;  %v2913_v22 = vshrl.u32 %v8978_v3, 16  ;;  %v2916_v32 = vshrl.u32 %v8980_v47, 16 }
 0x3c4   : > { %v2971_v21 = vrot.slane %v2907_v20, 7  ;;  %v2967_v40 = vrot.slane %v2904_v15, 7  ;;  %v2975_v29 = vrot.slane %v2910_v60, 7  ;;  %v2980_v61 = vshll.u32 %v8978_v3, 16 }
 0x3c5   : > { %v3063_v14 = vrot.slane %v2968_v37, 7  ;;  %v3064_v33 = vrot.slane %v2972_v49, 7  ;;  %v3343_v9 = vsel %vm546_vm0, %v8723_v16, 0  ;;  %v2979_v55 = vrot.slane %v2913_v22, 7 }
 0x3c6   : > { %v2974_v17 = vor.u32 %v2972_v49, %v2971_v21  ;;  %v2978_v23 = vor.u32 %v2976_v51, %v2975_v29  ;;  %v2970_v5 = vor.u32 %v2968_v37, %v2967_v40  ;;  %v2984_v6 = vshll.u32 %v8980_v47, 16 }
 0x3c7   : > { %v2983_v41 = vrot.slane %v2916_v32, 7  ;;  %v3065_v34 = vrot.slane %v2976_v51, 7  ;;  %v2919_v56 = vshrl.u32 %v8982_v11, 16  ;;  %v2988_v16 = vshll.u32 %v8982_v11, 16 }
 0x3c8   : > { %v9007_v25 = vsel %vm7930_vm3, %v2907_v20, %v2974_v17  ;;  %v9011_v39 = vsel %vm7930_vm3, %v2904_v15, %v2970_v5  ;;  %v9024_v45 = vsel %vm7930_vm3, %v2910_v60, %v2978_v23  ;;  %v3066_v63 = vrot.slane %v2980_v61, 7 }
 0x3c9   : > { %6576 = vmatprep.mubr.msk.bf16.mxu1 %vm497_vm4, %v9011_v39  ;;  %v2922_v24 = vshrl.u32 %v8984_v62, 16  ;;  %v9035_v18 = vsel %vm7930_vm3, %v2971_v21, %v3064_v33  ;;  %v9039_v31 = vsel %vm7930_vm3, %v2967_v40, %v3063_v14  ;;  %v2982_v58 = vor.u32 %v2980_v61, %v2979_v55 }
 0x3ca   : > { %6577 = vmatmul.mubr.msk.bf16.vlgmr.msra.gmra.mrb[0].mxu1 %vm497_vm4, %v9007_v25  ;;  %v2992_v13 = vshll.u32 %v8984_v62, 16  ;;  %v3067_v38 = vrot.slane %v2984_v6, 7  ;;  %v2925_v28 = vshrl.u32 %v8986_v2, 16  ;;  %v2986_v44 = vor.u32 %v2984_v6, %v2983_v41 }
 0x3cb   : > { %6609 = vmatpush3.bf16.msra.mxu1 %v3343_v9  ;;  %6580 = vmatprep.mubr.msk.bf16.mxu1 %vm497_vm4, %v9024_v45  ;;  %v9045_v8 = vsel %vm7930_vm3, %v2975_v29, %v3065_v34  ;;  %v2987_v19 = vrot.slane %v2919_v56, 7  ;;  %v2996_v7 = vshll.u32 %v8986_v2, 16  ;;  %v3068_v52 = vrot.slane %v2988_v16, 7 }
 0x3cc   : > { %7403 = vmatprep.subr.msk.bf16.mxu1 %vm546_vm0, %v9018_v12  ;;  %v9050_v48 = vsel %vm7930_vm3, %v2979_v55, %v3066_v63  ;;  %v2928_v57 = vshrl.u32 %v8988_v54, 16  ;;  %v2991_v53 = vrot.slane %v2922_v24, 7  ;;  %v3000_v1 = vshll.u32 %v8988_v54, 16 }
 0x3cd   : > { %v3069_v26 = vrot.slane %v2992_v13, 7  ;;  %v9056_v0 = vsel %vm7930_vm3, %v2913_v22, %v2982_v58  ;;  %v9060_v50 = vsel %vm7930_vm3, %v2983_v41, %v3067_v38  ;;  %v2931_v30 = vshrl.u32 %v8990_v4, 16 }
 0x3ce   : > { %v9067_v42 = vsel %vm7930_vm3, %v2916_v32, %v2986_v44  ;;  %v2995_v3 = vrot.slane %v2925_v28, 7  ;;  %v3004_v47 = vshll.u32 %v8990_v4, 16  ;;  %v3070_v11 = vrot.slane %v2996_v7, 7 }
 0x3cf   : > { %v9074_v62 = vsel %vm7930_vm3, %v2987_v19, %v3068_v52  ;;  %v2934_v2 = vshrl.u32 %v8992_v43, 16  ;;  %v2990_v54 = vor.u32 %v2988_v16, %v2987_v19  ;;  %v2999_v20 = vrot.slane %v2928_v57, 7 }
 0x3d0   : > { %v3008_v15 = vshll.u32 %v8992_v43, 16  ;;  %v3071_v60 = vrot.slane %v3000_v1, 7  ;;  %v9080_v21 = vsel %vm7930_vm3, %v2991_v53, %v3069_v26  ;;  %v2937_v4 = vshrl.u32 %v8994_v35, 16 }
 0x3d1   : > { %v2994_v49 = vor.u32 %v2992_v13, %v2991_v53  ;;  %v3003_v40 = vrot.slane %v2931_v30, 7  ;;  %v3012_v29 = vshll.u32 %v8994_v35, 16  ;;  %v3072_v17 = vrot.slane %v3004_v47, 7 }
 0x3d2   : > { %6581 = vmatmul.mubr.msk.bf16.gmra.mrb[4].mxu1 %vm497_vm4, %v9056_v0  ;;  %v9086_v37 = vsel %vm7930_vm3, %v2995_v3, %v3070_v11  ;;  %v2940_v51 = vshrl.u32 %v8996_v10, 16  ;;  %v3007_v22 = vrot.slane %v2934_v2, 7  ;;  %v3016_v43 = vshll.u32 %v8996_v10, 16 }
 0x3d3   : > { %6584 = vmatprep.mubr.msk.bf16.mxu1 %vm497_vm4, %v9067_v42  ;;  %v3073_v32 = vrot.slane %v3008_v15, 7  ;;  %v9092_v23 = vsel %vm7930_vm3, %v2919_v56, %v2990_v54  ;;  %v9096_v5 = vsel %vm7930_vm3, %v2999_v20, %v3071_v60  ;;  %v2943_v35 = vshrl.u32 %v8998_v36, 16 }
 0x3d4   : > { %v9103_v61 = vsel %vm7930_vm3, %v2922_v24, %v2994_v49  ;;  %v3011_v14 = vrot.slane %v2937_v4, 7  ;;  %v3020_v10 = vshll.u32 %v8998_v36, 16  ;;  %v3074_v33 = vrot.slane %v3012_v29, 7 }
 0x3d5   : > { %v9110_v9 = vsel %vm7930_vm3, %v3003_v40, %v3072_v17  ;;  %v2946_v55 = vshrl.u32 %v8973_v59, 16  ;;  %v3024_v6 = vshll.u32 %v8973_v59, 16  ;;  %v2998_v41 = vor.u32 %v2996_v7, %v2995_v3 }
 0x3d6   : > { %v3015_v34 = vrot.slane %v2940_v51, 7  ;;  %v3075_v56 = vrot.slane %v3016_v43, 7  ;;  %v9116_v16 = vsel %vm7930_vm3, %v3007_v22, %v3073_v32  ;;  %v2949_v36 = vshrl.u32 %v9000_v46, 16 }
 0x3d7   : > { %v3002_v63 = vor.u32 %v3000_v1, %v2999_v20  ;;  %v3019_v24 = vrot.slane %v2943_v35, 7  ;;  %v3028_v58 = vshll.u32 %v9000_v46, 16  ;;  %v3076_v13 = vrot.slane %v3020_v10, 7 }
 0x3d8   : > { %v9122_v38 = vsel %vm7930_vm3, %v3011_v14, %v3074_v33  ;;  %v3023_v44 = vrot.slane %v2946_v55, 7  ;;  %v3077_v59 = vrot.slane %v3024_v6, 7  ;;  %v9126_v19 = vsel %vm7930_vm3, %v2925_v28, %v2998_v41 }
 0x3d9   : > { %v9130_v7 = vsel %vm7930_vm3, %v3015_v34, %v3075_v56  ;;  %v9136_v46 = vsel %vm7930_vm3, %v2928_v57, %v3002_v63  ;;  %v3027_v52 = vrot.slane %v2949_v36, 7  ;;  %v3078_v53 = vrot.slane %v3028_v58, 7 }
 0x3da   : > { %6585 = vmatmul.mubr.msk.bf16.gmra.mrb[8].mxu1 %vm497_vm4, %v9092_v23  ;;  %v9142_v28 = vsel %vm7930_vm3, %v3019_v24, %v3076_v13  ;;  %v3006_v1 = vor.u32 %v3004_v47, %v3003_v40  ;;  %v9146_v26 = vsel %vm7930_vm3, %v3023_v44, %v3077_v59  ;;  %v3010_v3 = vor.u32 %v3008_v15, %v3007_v22  ;;  %v9280_v59 = vld [vmem:[#allocation7 + $0xe] sm:$0x3] }
 0x3db   : > { %6588 = vmatprep.mubr.msk.bf16.mxu1 %vm497_vm4, %v9103_v61  ;;  %v9150_v11 = vsel %vm7930_vm3, %v3027_v52, %v3078_v53  ;;  %v3014_v47 = vor.u32 %v3012_v29, %v3011_v14  ;;  %v3018_v20 = vor.u32 %v3016_v43, %v3015_v34  ;;  %v3026_v60 = vor.u32 %v3024_v6, %v3023_v44 }
 0x3dc   : > { %v9154_v57 = vsel %vm7930_vm3, %v2931_v30, %v3006_v1  ;;  %v9160_v54 = vsel %vm7930_vm3, %v2934_v2, %v3010_v3  ;;  %v3022_v2 = vor.u32 %v3020_v10, %v3019_v24  ;;  %v3030_v40 = vor.u32 %v3028_v58, %v3027_v52 }
 0x3dd   : > { %v9166_v15 = vsel %vm7930_vm3, %v2937_v4, %v3014_v47  ;;  %v9172_v30 = vsel %vm7930_vm3, %v2940_v51, %v3018_v20  ;;  %v9184_v4 = vsel %vm7930_vm3, %v2946_v55, %v3026_v60  ;;  %v3509_v17 = vsel %vm546_vm0, %v9018_v12, 0  ;;  %v3881_v51 = vld [vmem:[#allocation7 + $0x2] sm:$0x3]  ;;  %v4124_v12 = vld [vmem:[#allocation7 + $0x8] sm:$0x3] }
 0x3de   : > { %v9178_v49 = vsel %vm7930_vm3, %v2943_v35, %v3022_v2  ;;  %v9190_v29 = vsel %vm7930_vm3, %v2949_v36, %v3030_v40  ;;  %v3928_v27 = vsel %vm546_vm0, %v3881_v51, 0  ;;  %v3706_v22 = vshll.u32 %v9007_v25, 16 }
 0x3df   : > { %v3704_v32 = vshrl.u32 %v9007_v25, 16  ;;  %v3711_v35 = vshll.u32 %v9035_v18, 16  ;;  %v3717_v14 = vshll.u32 %v9011_v39, 16  ;;  %v3715_v41 = vshrl.u32 %v9011_v39, 16 }
 0x3e0   : > { %v3708_v43 = vrot.slane %v3706_v22, 1  ;;  %v3722_v34 = vshll.u32 %v9039_v31, 16  ;;  %v3728_v36 = vshll.u32 %v9024_v45, 16  ;;  %v3739_v63 = vshll.u32 %v9056_v0, 16 }
 0x3e1   : > { %v3713_v33 = vrot.slane %v3711_v35, 1  ;;  %v3719_v55 = vrot.slane %v3717_v14, 1  ;;  %v4129_v58 = vsel %vm546_vm0, %v4124_v12, 0  ;;  %v3726_v53 = vshrl.u32 %v9024_v45, 16 }
 0x3e2   : > { %6589 = vmatmul.mubr.msk.bf16.gmra.mrb[12].mxu1 %vm497_vm4, %v9126_v19  ;;  %v3709_v10 = vor.u32 %v3708_v43, %v3704_v32  ;;  %v3724_v24 = vrot.slane %v3722_v34, 1  ;;  %v3730_v44 = vrot.slane %v3728_v36, 1  ;;  %v3741_v52 = vrot.slane %v3739_v63, 1 }
 0x3e3   : > { %6592 = vmatprep.mubr.msk.bf16.mxu1 %vm497_vm4, %v9136_v46  ;;  %v3720_v56 = vor.u32 %v3719_v55, %v3715_v41  ;;  %v3733_v1 = vshll.u32 %v9045_v8, 16  ;;  %v3737_v3 = vshrl.u32 %v9056_v0, 16  ;;  %v3744_v47 = vshll.u32 %v9050_v48, 16 }
 0x3e4   : > { %v9268_v6 = vsel %vm1073_vm5, %v3709_v10, %v3713_v33  ;;  %v3731_v20 = vor.u32 %v3730_v44, %v3726_v53  ;;  %v3750_v2 = vshll.u32 %v9067_v42, 16  ;;  %v3761_v40 = vshll.u32 %v9092_v23, 16 }
 0x3e5   : > { %v9278_v13 = vsel %vm1073_vm5, %v3720_v56, %v3724_v24  ;;  %v3742_v60 = vor.u32 %v3741_v52, %v3737_v3  ;;  %v3748_v32 = vshrl.u32 %v9067_v42, 16  ;;  %v3755_v35 = vshll.u32 %v9060_v50, 16 }
 0x3e6   : > { %v3763_v43 = vrot.slane %v3761_v40, 1  ;;  %v3759_v14 = vshrl.u32 %v9092_v23, 16  ;;  %v3766_v10 = vshll.u32 %v9074_v62, 16  ;;  %v3772_v55 = vshll.u32 %v9103_v61, 16 }
 0x3e7   : > { %v3783_v34 = vshll.u32 %v9126_v19, 16  ;;  %v3757_v56 = vrot.slane %v3755_v35, 1  ;;  %v3770_v52 = vshrl.u32 %v9103_v61, 16  ;;  %v3777_v53 = vshll.u32 %v9080_v21, 16 }
 0x3e8   : > { %v3764_v41 = vor.u32 %v3763_v43, %v3759_v14  ;;  %v3768_v36 = vrot.slane %v3766_v10, 1  ;;  %v3774_v24 = vrot.slane %v3772_v55, 1  ;;  %v3788_v3 = vshll.u32 %v9086_v37, 16 }
 0x3e9   : > { %v3785_v44 = vrot.slane %v3783_v34, 1  ;;  %v3779_v40 = vrot.slane %v3777_v53, 1  ;;  %v3792_v35 = vshrl.u32 %v9136_v46, 16  ;;  %v3799_v14 = vshll.u32 %v9096_v5, 16 }
 0x3ea   : > { %6593 = vmatmul.mubr.msk.bf16.gmra.mrb[16].mxu1 %vm497_vm4, %v9154_v57  ;;  %v3803_v10 = vshrl.u32 %v9154_v57, 16 }
 0x3eb   : > { %6596 = vmatprep.mubr.msk.bf16.mxu1 %vm497_vm4, %v9160_v54 }
 0x3f2   : > { %6597 = vmatmul.mubr.msk.bf16.gmra.mrb[20].mxu1 %vm497_vm4, %v9166_v15 }
 0x3f3   : > { %6600 = vmatprep.mubr.msk.bf16.mxu1 %vm497_vm4, %v9172_v30 }
 0x3fa   : > { %6601 = vmatmul.mubr.msk.bf16.gmra.mrb[24].mxu1 %vm497_vm4, %v9178_v49 }
 0x3fb   : > { %6604 = vmatprep.mubr.msk.bf16.mxu1 %vm497_vm4, %v9184_v4 }
 0x402   : > { %6605 = vmatmul.mubr.msk.bf16.gmra.mrb[28].mxu1 %vm497_vm4, %v9190_v29 }
 0x403   : > { %6610 = vmatprep.mubr.msk.bf16.mxu1 %vm497_vm4, %v9007_v25 }
 0x40a   : > { %6611 = vmatmul.mubr.msk.bf16.vlgmr.msra.gmra.mrb[0].mxu1 %vm497_vm4, %v9011_v39 }
 0x40b   : > { %6643 = vmatpush3.bf16.msra.mxu1 %v3509_v17  ;;  %6614 = vmatprep.mubr.msk.bf16.mxu1 %vm497_vm4, %v9007_v25  ;;  %v3735_v17 = vrot.slane %v3733_v1, 1  ;;  %v3781_v1 = vshrl.u32 %v9126_v19, 16 }
 0x40c   : > { %7404 = vmatprep.subr.msk.bf16.mxu1 %vm546_vm0, %v3881_v51  ;;  %v3746_v51 = vrot.slane %v3744_v47, 1  ;;  %v3775_v47 = vor.u32 %v3774_v24, %v3770_v52 }
 0x40e   : > { %v9300_v22 = vsel %vm1073_vm5, %v3742_v60, %v3746_v51  ;;  %v3805_v60 = vshll.u32 %v9154_v57, 16  ;;  %v9327_v51 = vsel %vm1073_vm5, %v3775_v47, %v3779_v40  ;;  %v3821_v47 = vshll.u32 %v9116_v16, 16 }
 0x40f   : > { %v3838_v40 = vshll.u32 %v9172_v30, 16 }
 0x412   : > { %6615 = vmatmul.mubr.msk.bf16.gmra.mrb[4].mxu1 %vm497_vm4, %v9024_v45 }
 0x413   : > { %6618 = vmatprep.mubr.msk.bf16.mxu1 %vm497_vm4, %v9056_v0 }
 0x41a   : > { %6619 = vmatmul.mubr.msk.bf16.gmra.mrb[8].mxu1 %vm497_vm4, %v9067_v42 }
 0x41b   : > { %6622 = vmatprep.mubr.msk.bf16.mxu1 %vm497_vm4, %v9092_v23 }
 0x422   : > { %6623 = vmatmul.mubr.msk.bf16.gmra.mrb[12].mxu1 %vm497_vm4, %v9103_v61 }
 0x423   : > { %6626 = vmatprep.mubr.msk.bf16.mxu1 %vm497_vm4, %v9126_v19 }
 0x42a   : > { %6627 = vmatmul.mubr.msk.bf16.gmra.mrb[16].mxu1 %vm497_vm4, %v9136_v46 }
 0x42b   : > { %6630 = vmatprep.mubr.msk.bf16.mxu1 %vm497_vm4, %v9154_v57 }
 0x432   : > { %6631 = vmatmul.mubr.msk.bf16.gmra.mrb[20].mxu1 %vm497_vm4, %v9160_v54 }
 0x433   : > { %6634 = vmatprep.mubr.msk.bf16.mxu1 %vm497_vm4, %v9166_v15 }
 0x43a   : > { %6635 = vmatmul.mubr.msk.bf16.gmra.mrb[24].mxu1 %vm497_vm4, %v9172_v30 }
 0x43b   : > { %6638 = vmatprep.mubr.msk.bf16.mxu1 %vm497_vm4, %v9178_v49 }
 0x442   : > { %6639 = vmatmul.mubr.msk.bf16.gmra.mrb[28].mxu1 %vm497_vm4, %v9184_v4 }
 0x443   : > { %6644 = vmatprep.mubr.msk.bf16.mxu1 %vm497_vm4, %v9007_v25 }
 0x44a   : > { %6645 = vmatmul.mubr.msk.bf16.vlgmr.msra.gmra.mrb[0].mxu1 %vm497_vm4, %v9024_v45 }
 0x44b   : > { %6677 = vmatpush3.bf16.msra.mxu1 %v3928_v27  ;;  %6648 = vmatprep.mubr.msk.bf16.mxu1 %vm497_vm4, %v9056_v0  ;;  %v9295_v27 = vsel %vm1073_vm5, %v3731_v20, %v3735_v17  ;;  %v3794_v20 = vshll.u32 %v9136_v46, 16  ;;  %v3790_v17 = vrot.slane %v3788_v3, 1  ;;  %v3814_v3 = vshrl.u32 %v9160_v54, 16 }
 0x44c   : > { %7405 = vmatprep.subr.msk.bf16.mxu1 %vm546_vm0, %v4124_v12  ;;  %v3752_v12 = vrot.slane %v3750_v2, 1  ;;  %v3786_v2 = vor.u32 %v3785_v44, %v3781_v1 }
 0x44e   : > { %v3753_v33 = vor.u32 %v3752_v12, %v3748_v32  ;;  %v3796_v12 = vrot.slane %v3794_v20, 1  ;;  %v9332_v43 = vsel %vm1073_vm5, %v3786_v2, %v3790_v17  ;;  %v3807_v32 = vrot.slane %v3805_v60, 1 }
 0x44f   : > { %v3825_v20 = vshrl.u32 %v9166_v15, 16  ;;  %v3832_v2 = vshll.u32 %v9122_v38, 16 }
 0x450   : > { %v9311_v63 = vsel %vm1073_vm5, %v3753_v33, %v3757_v56  ;;  %v3810_v33 = vshll.u32 %v9110_v9, 16  ;;  %v3797_v55 = vor.u32 %v3796_v12, %v3792_v35  ;;  %v3808_v34 = vor.u32 %v3807_v32, %v3803_v10 }
 0x451   : > { %v3827_v56 = vshll.u32 %v9166_v15, 16  ;;  %v3849_v12 = vshll.u32 %v9178_v49, 16  ;;  %v3823_v32 = vrot.slane %v3821_v47, 1  ;;  %v3834_v35 = vrot.slane %v3832_v2, 1 }
 0x452   : > { %6649 = vmatmul.mubr.msk.bf16.gmra.mrb[4].mxu1 %vm497_vm4, %v9067_v42  ;;  %v3812_v24 = vrot.slane %v3810_v33, 1  ;;  %v3840_v10 = vrot.slane %v3838_v40, 1  ;;  %v3858_v40 = vshrl.u32 %v9184_v4, 16 }
 0x453   : > { %6652 = vmatprep.mubr.msk.bf16.mxu1 %vm497_vm4, %v9092_v23  ;;  %v3829_v1 = vrot.slane %v3827_v56, 1  ;;  %v3847_v56 = vshrl.u32 %v9178_v49, 16 }
 0x454   : > { %v9348_v53 = vsel %vm1073_vm5, %v3808_v34, %v3812_v24  ;;  %v3843_v34 = vshll.u32 %v9130_v7, 16 }
 0x455   : > { %v3830_v17 = vor.u32 %v3829_v1, %v3825_v20 }
 0x457   : > { %v9364_v33 = vsel %vm1073_vm5, %v3830_v17, %v3834_v35  ;;  %v3865_v17 = vshll.u32 %v9146_v26, 16 }
 0x45a   : > { %6653 = vmatmul.mubr.msk.bf16.gmra.mrb[8].mxu1 %vm497_vm4, %v9103_v61 }
 0x45b   : > { %6656 = vmatprep.mubr.msk.bf16.mxu1 %vm497_vm4, %v9126_v19 }
 0x462   : > { %6657 = vmatmul.mubr.msk.bf16.gmra.mrb[12].mxu1 %vm497_vm4, %v9136_v46 }
 0x463   : > { %6660 = vmatprep.mubr.msk.bf16.mxu1 %vm497_vm4, %v9154_v57 }
 0x46a   : > { %6661 = vmatmul.mubr.msk.bf16.gmra.mrb[16].mxu1 %vm497_vm4, %v9160_v54 }
 0x46b   : > { %6664 = vmatprep.mubr.msk.bf16.mxu1 %vm497_vm4, %v9166_v15 }
 0x472   : > { %6665 = vmatmul.mubr.msk.bf16.gmra.mrb[20].mxu1 %vm497_vm4, %v9172_v30 }
 0x473   : > { %6668 = vmatprep.mubr.msk.bf16.mxu1 %vm497_vm4, %v9178_v49 }
 0x47a   : > { %6669 = vmatmul.mubr.msk.bf16.gmra.mrb[24].mxu1 %vm497_vm4, %v9184_v4 }
 0x47b   : > { %6672 = vmatprep.mubr.msk.bf16.mxu1 %vm497_vm4, %v9190_v29 }
 0x482   : > { %6673 = vmatmul.mubr.msk.bf16.gmra.mrb[28].mxu1 %vm497_vm4, %v9184_v4 }
 0x483   : > { %6678 = vmatprep.mubr.msk.bf16.mxu1 %vm497_vm4, %v9268_v6 }
 0x48a   : > { %6679 = vmatmul.mubr.msk.bf16.vlgmr.msra.gmra.mrb[0].mxu1 %vm497_vm4, %v9278_v13 }
 0x48b   : > { %6711 = vmatpush3.bf16.msra.mxu1 %v4129_v58  ;;  %6682 = vmatprep.mubr.msk.bf16.mxu1 %vm497_vm4, %v9268_v6  ;;  %v9316_v58 = vsel %vm1073_vm5, %v3764_v41, %v3768_v36  ;;  %v3816_v41 = vshll.u32 %v9160_v54, 16  ;;  %v3801_v36 = vrot.slane %v3799_v14, 1 }
 0x48c   : > { %7406 = vmatprep.subr.msk.bf16.mxu1 %vm546_vm0, %v9280_v59 }
 0x48d   : > { %v9343_v44 = vsel %vm1073_vm5, %v3797_v55, %v3801_v36  ;;  %v3818_v52 = vrot.slane %v3816_v41, 1  ;;  %v3851_v55 = vrot.slane %v3849_v12, 1  ;;  %v3836_v41 = vshrl.u32 %v9172_v30, 16 }
 0x48e   : > { %v3854_v36 = vshll.u32 %v9142_v28, 16 }
 0x48f   : > { %v3819_v60 = vor.u32 %v3818_v52, %v3814_v3  ;;  %v3841_v24 = vor.u32 %v3840_v10, %v3836_v41  ;;  %v3860_v52 = vshll.u32 %v9184_v4, 16  ;;  %v3852_v1 = vor.u32 %v3851_v55, %v3847_v56  ;;  %v4603_v55 = vld [vmem:[#allocation7 + $0x4] sm:$0x3] }
 0x490   : > { %v3845_v3 = vrot.slane %v3843_v34, 1  ;;  %v3856_v47 = vrot.slane %v3854_v36, 1  ;;  %v4327_v10 = vsel %vm546_vm0, %v9280_v59, 0  ;;  %v3869_v41 = vshrl.u32 %v9190_v29, 16 }
 0x491   : > { %v9359_v14 = vsel %vm1073_vm5, %v3819_v60, %v3823_v32  ;;  %v3862_v2 = vrot.slane %v3860_v52, 1  ;;  %v3867_v32 = vrot.slane %v3865_v17, 1  ;;  %v3876_v34 = vshll.u32 %v9150_v11, 16 }
 0x492   : > { %6683 = vmatmul.mubr.msk.bf16.gmra.mrb[4].mxu1 %vm497_vm4, %v9295_v27  ;;  %v3846_v20 = vsel %vm1073_vm5, %v3841_v24, %v3845_v3  ;;  %v3857_v60 = vsel %vm1073_vm5, %v3852_v1, %v3856_v47  ;;  %v4650_v52 = vsel %vm546_vm0, %v4603_v55, 0  ;;  %v4846_v1 = vld [vmem:[#allocation7 + $0xa] sm:$0x3]  ;;  %v4587_v17 = vrot.slane %v9166_v15, 1 }
 0x493   : > { %6686 = vmatprep.mubr.msk.bf16.mxu1 %vm497_vm4, %v9300_v22  ;;  %v3863_v12 = vor.u32 %v3862_v2, %v3858_v40  ;;  %v3878_v36 = vrot.slane %v3876_v34, 1  ;;  %v4578_v2 = vrot.slane %v9136_v46, 1  ;;  %v4584_v40 = vrot.slane %v9160_v54, 1 }
 0x494   : > { %v4585_v46 = vrot.slane %v9116_v16, 1  ;;  %v4591_v54 = vrot.slane %v9130_v7, 1  ;;  %v4594_v15 = vrot.slane %v9142_v28, 1  ;;  %v4599_v28 = vrot.slane %v9190_v29, 1 }
 0x495   : > { %v3868_v35 = vsel %vm1073_vm5, %v3863_v12, %v3867_v32  ;;  %v4590_v12 = vrot.slane %v9172_v30, 1  ;;  %v4593_v32 = vrot.slane %v9178_v49, 1 }
 0x497   : > { %v4592_v16 = vsel %vm1924_vm6, %v4590_v12, %v4591_v54 }
 0x49a   : > { %6687 = vmatmul.mubr.msk.bf16.gmra.mrb[8].mxu1 %vm497_vm4, %v9311_v63 }
 0x49b   : > { %6690 = vmatprep.mubr.msk.bf16.mxu1 %vm497_vm4, %v9316_v58 }
 0x4a2   : > { %6691 = vmatmul.mubr.msk.bf16.gmra.mrb[12].mxu1 %vm497_vm4, %v9327_v51 }
 0x4a3   : > { %6694 = vmatprep.mubr.msk.bf16.mxu1 %vm497_vm4, %v9332_v43 }
 0x4aa   : > { %6695 = vmatmul.mubr.msk.bf16.gmra.mrb[16].mxu1 %vm497_vm4, %v9343_v44 }
 0x4ab   : > { %6698 = vmatprep.mubr.msk.bf16.mxu1 %vm497_vm4, %v9348_v53 }
 0x4b2   : > { %6699 = vmatmul.mubr.msk.bf16.gmra.mrb[20].mxu1 %vm497_vm4, %v9359_v14 }
 0x4b3   : > { %6702 = vmatprep.mubr.msk.bf16.mxu1 %vm497_vm4, %v9364_v33 }
 0x4ba   : > { %6703 = vmatmul.mubr.msk.bf16.gmra.mrb[24].mxu1 %vm497_vm4, %v3846_v20 }
 0x4bb   : > { %6706 = vmatprep.mubr.msk.bf16.mxu1 %vm497_vm4, %v3857_v60 }
 0x4c2   : > { %6707 = vmatmul.mubr.msk.bf16.gmra.mrb[28].mxu1 %vm497_vm4, %v3868_v35 }
 0x4c3   : > { %6712 = vmatprep.mubr.msk.bf16.mxu1 %vm497_vm4, %v9278_v13  ;;  %v3871_v13 = vshll.u32 %v9190_v29, 16 }
 0x4c5   : > { %v3873_v59 = vrot.slane %v3871_v13, 1 }
 0x4c7   : > { %v3874_v56 = vor.u32 %v3873_v59, %v3869_v41 }
 0x4c9   : > { %v3879_v24 = vsel %vm1073_vm5, %v3874_v56, %v3878_v36 }
 0x4ca   : > { %6713 = vmatmul.mubr.msk.bf16.vlgmr.msra.gmra.mrb[0].mxu1 %vm497_vm4, %v9268_v6 }
 0x4cb   : > { %6745 = vmatpush3.bf16.msra.mxu1 %v4327_v10  ;;  %6716 = vmatprep.mubr.msk.bf16.mxu1 %vm497_vm4, %v9295_v27  ;;  %v4597_v10 = vrot.slane %v9146_v26, 1  ;;  %v4600_v26 = vrot.slane %v9150_v11, 1 }
 0x4cc   : > { %7407 = vmatprep.subr.msk.bf16.mxu1 %vm546_vm0, %v4603_v55 }
 0x4cd   : > { %v4601_v49 = vsel %vm1924_vm6, %v4599_v28, %v4600_v26 }
 0x4d2   : > { %6717 = vmatmul.mubr.msk.bf16.gmra.mrb[4].mxu1 %vm497_vm4, %v9300_v22 }
 0x4d3   : > { %6720 = vmatprep.mubr.msk.bf16.mxu1 %vm497_vm4, %v9311_v63 }
 0x4da   : > { %6721 = vmatmul.mubr.msk.bf16.gmra.mrb[8].mxu1 %vm497_vm4, %v9316_v58 }
 0x4db   : > { %6724 = vmatprep.mubr.msk.bf16.mxu1 %vm497_vm4, %v9327_v51 }
 0x4e2   : > { %6725 = vmatmul.mubr.msk.bf16.gmra.mrb[12].mxu1 %vm497_vm4, %v9332_v43 }
 0x4e3   : > { %6728 = vmatprep.mubr.msk.bf16.mxu1 %vm497_vm4, %v9343_v44 }
 0x4ea   : > { %6729 = vmatmul.mubr.msk.bf16.gmra.mrb[16].mxu1 %vm497_vm4, %v9348_v53 }
 0x4eb   : > { %6732 = vmatprep.mubr.msk.bf16.mxu1 %vm497_vm4, %v9359_v14 }
 0x4f2   : > { %6733 = vmatmul.mubr.msk.bf16.gmra.mrb[20].mxu1 %vm497_vm4, %v9364_v33 }
 0x4f3   : > { %6736 = vmatprep.mubr.msk.bf16.mxu1 %vm497_vm4, %v3846_v20 }
 0x4fa   : > { %6737 = vmatmul.mubr.msk.bf16.gmra.mrb[24].mxu1 %vm497_vm4, %v3857_v60 }
 0x4fb   : > { %6740 = vmatprep.mubr.msk.bf16.mxu1 %vm497_vm4, %v3868_v35 }
 0x502   : > { %6741 = vmatmul.mubr.msk.bf16.gmra.mrb[28].mxu1 %vm497_vm4, %v3879_v24 }
 0x503   : > { %6746 = vmatprep.mubr.msk.bf16.mxu1 %vm497_vm4, %v9268_v6  ;;  %v4554_v6 = vrot.slane %v9007_v25, 1  ;;  %v4560_v25 = vrot.slane %v9024_v45, 1  ;;  %v4566_v45 = vrot.slane %v9067_v42, 1  ;;  %v4572_v42 = vrot.slane %v9103_v61, 1 }
 0x504   : > { %v4579_v61 = vrot.slane %v9096_v5, 1  ;;  %v4586_v5 = vsel %vm1924_vm6, %v4584_v40, %v4585_v46 }
 0x50a   : > { %6747 = vmatmul.mubr.msk.bf16.vlgmr.msra.gmra.mrb[0].mxu1 %vm497_vm4, %v9295_v27  ;;  %v4555_v27 = vrot.slane %v9035_v18, 1  ;;  %v4563_v18 = vrot.slane %v9056_v0, 1  ;;  %v4569_v0 = vrot.slane %v9092_v23, 1  ;;  %v4575_v23 = vrot.slane %v9126_v19, 1 }
 0x50b   : > { %6779 = vmatpush3.bf16.msra.mxu1 %v4650_v52  ;;  %6750 = vmatprep.mubr.msk.bf16.mxu1 %vm497_vm4, %v9300_v22  ;;  %v4582_v19 = vrot.slane %v9110_v9, 1 }
 0x50c   : > { %7408 = vmatprep.subr.msk.bf16.mxu1 %vm546_vm0, %v4846_v1  ;;  %v9448_v22 = vsel %vm1924_vm6, %v4554_v6, %v4555_v27 }
 0x512   : > { %6751 = vmatmul.mubr.msk.bf16.gmra.mrb[4].mxu1 %vm497_vm4, %v9311_v63  ;;  %v4557_v63 = vrot.slane %v9011_v39, 1  ;;  %v4561_v39 = vrot.slane %v9045_v8, 1  ;;  %v4567_v8 = vrot.slane %v9060_v50, 1  ;;  %v4573_v50 = vrot.slane %v9080_v21, 1 }
 0x513   : > { %6754 = vmatprep.mubr.msk.bf16.mxu1 %vm497_vm4, %v9316_v58  ;;  %v4558_v58 = vrot.slane %v9039_v31, 1  ;;  %v4564_v31 = vrot.slane %v9050_v48, 1  ;;  %v4570_v48 = vrot.slane %v9074_v62, 1  ;;  %v4576_v62 = vrot.slane %v9086_v37, 1 }
 0x514   : > { %v4574_v47 = vsel %vm1924_vm6, %v4572_v42, %v4573_v50  ;;  %v4580_v21 = vsel %vm1924_vm6, %v4578_v2, %v4579_v61 }
 0x515   : > { %v9484_v3 = vsel %vm1924_vm6, %v4569_v0, %v4570_v48 }
 0x51a   : > { %6755 = vmatmul.mubr.msk.bf16.gmra.mrb[8].mxu1 %vm497_vm4, %v9327_v51  ;;  %v4851_v51 = vsel %vm546_vm0, %v4846_v1, 0 }
 0x51b   : > { %6758 = vmatprep.mubr.msk.bf16.mxu1 %vm497_vm4, %v9332_v43  ;;  %v4559_v43 = vsel %vm1924_vm6, %v4557_v63, %v4558_v58 }
 0x522   : > { %6759 = vmatmul.mubr.msk.bf16.gmra.mrb[12].mxu1 %vm497_vm4, %v9343_v44  ;;  %v5047_v44 = vld [vmem:[#allocation7 + $0x10] sm:$0x3] }
 0x523   : > { %6762 = vmatprep.mubr.msk.bf16.mxu1 %vm497_vm4, %v9348_v53  ;;  %v9465_v53 = vsel %vm1924_vm6, %v4560_v25, %v4561_v39  ;;  %v5049_v7 = vsel %vm546_vm0, %v5047_v44, 0 }
 0x52a   : > { %6763 = vmatmul.mubr.msk.bf16.gmra.mrb[16].mxu1 %vm497_vm4, %v9359_v14  ;;  %v9470_v14 = vsel %vm1924_vm6, %v4563_v18, %v4564_v31 }
 0x52b   : > { %6766 = vmatprep.mubr.msk.bf16.mxu1 %vm497_vm4, %v9364_v33  ;;  %v9479_v33 = vsel %vm1924_vm6, %v4566_v45, %v4567_v8 }
 0x532   : > { %6767 = vmatmul.mubr.msk.bf16.gmra.mrb[20].mxu1 %vm497_vm4, %v3846_v20  ;;  %v4577_v20 = vsel %vm1924_vm6, %v4575_v23, %v4576_v62 }
 0x533   : > { %6770 = vmatprep.mubr.msk.bf16.mxu1 %vm497_vm4, %v3857_v60  ;;  %v4581_v60 = vrot.slane %v9154_v57, 1  ;;  %v4588_v57 = vrot.slane %v9122_v38, 1  ;;  %v4595_v38 = vsel %vm1924_vm6, %v4593_v32, %v4594_v15 }
 0x535   : > { %v4583_v37 = vsel %vm1924_vm6, %v4581_v60, %v4582_v19  ;;  %v4589_v9 = vsel %vm1924_vm6, %v4587_v17, %v4588_v57 }
 0x53a   : > { %6771 = vmatmul.mubr.msk.bf16.gmra.mrb[24].mxu1 %vm497_vm4, %v3868_v35 }
 0x53b   : > { %6774 = vmatprep.mubr.msk.bf16.mxu1 %vm497_vm4, %v3879_v24 }
 0x542   : > { %6775 = vmatmul.mubr.msk.bf16.gmra.mrb[28].mxu1 %vm497_vm4, %v3868_v35  ;;  %v4596_v35 = vrot.slane %v9184_v4, 1 }
 0x543   : > { %6780 = vmatprep.mubr.msk.bf16.mxu1 %vm497_vm4, %v9448_v22 }
 0x544   : > { %v4598_v30 = vsel %vm1924_vm6, %v4596_v35, %v4597_v10 }
 0x54a   : > { %6781 = vmatmul.mubr.msk.bf16.vlgmr.msra.gmra.mrb[0].mxu1 %vm497_vm4, %v4559_v43 }
 0x54b   : > { %6813 = vmatpush3.bf16.msra.mxu1 %v4851_v51  ;;  %6784 = vmatprep.mubr.msk.bf16.mxu1 %vm497_vm4, %v9448_v22 }
 0x54c   : > { %7409 = vmatprep.subr.msk.bf16.mxu1 %vm546_vm0, %v5047_v44 }
 0x552   : > { %6785 = vmatmul.mubr.msk.bf16.gmra.mrb[4].mxu1 %vm497_vm4, %v9465_v53 }
 0x553   : > { %6788 = vmatprep.mubr.msk.bf16.mxu1 %vm497_vm4, %v9470_v14 }
 0x55a   : > { %6789 = vmatmul.mubr.msk.bf16.gmra.mrb[8].mxu1 %vm497_vm4, %v9479_v33 }
 0x55b   : > { %6792 = vmatprep.mubr.msk.bf16.mxu1 %vm497_vm4, %v9484_v3 }
 0x562   : > { %6793 = vmatmul.mubr.msk.bf16.gmra.mrb[12].mxu1 %vm497_vm4, %v4574_v47 }
 0x563   : > { %6796 = vmatprep.mubr.msk.bf16.mxu1 %vm497_vm4, %v4577_v20 }
 0x56a   : > { %6797 = vmatmul.mubr.msk.bf16.gmra.mrb[16].mxu1 %vm497_vm4, %v4580_v21 }
 0x56b   : > { %6800 = vmatprep.mubr.msk.bf16.mxu1 %vm497_vm4, %v4583_v37 }
 0x572   : > { %6801 = vmatmul.mubr.msk.bf16.gmra.mrb[20].mxu1 %vm497_vm4, %v4586_v5 }
 0x573   : > { %6804 = vmatprep.mubr.msk.bf16.mxu1 %vm497_vm4, %v4589_v9 }
 0x57a   : > { %6805 = vmatmul.mubr.msk.bf16.gmra.mrb[24].mxu1 %vm497_vm4, %v4592_v16 }
 0x57b   : > { %6808 = vmatprep.mubr.msk.bf16.mxu1 %vm497_vm4, %v4595_v38 }
 0x582   : > { %6809 = vmatmul.mubr.msk.bf16.gmra.mrb[28].mxu1 %vm497_vm4, %v4598_v30 }
 0x583   : > { %6814 = vmatprep.mubr.msk.bf16.mxu1 %vm497_vm4, %v4559_v43 }
 0x58a   : > { %6815 = vmatmul.mubr.msk.bf16.vlgmr.msra.gmra.mrb[0].mxu1 %vm497_vm4, %v9448_v22 }
 0x58b   : > { %6847 = vmatpush3.bf16.msra.mxu1 %v5049_v7  ;;  %6818 = vmatprep.mubr.msk.bf16.mxu1 %vm497_vm4, %v9465_v53 }
 0x592   : > { %6819 = vmatmul.mubr.msk.bf16.gmra.mrb[4].mxu1 %vm497_vm4, %v9470_v14 }
 0x593   : > { %6822 = vmatprep.mubr.msk.bf16.mxu1 %vm497_vm4, %v9479_v33 }
 0x59a   : > { %6823 = vmatmul.mubr.msk.bf16.gmra.mrb[8].mxu1 %vm497_vm4, %v9484_v3 }
 0x59b   : > { %6826 = vmatprep.mubr.msk.bf16.mxu1 %vm497_vm4, %v4574_v47 }
 0x5a2   : > { %6827 = vmatmul.mubr.msk.bf16.gmra.mrb[12].mxu1 %vm497_vm4, %v4577_v20 }
 0x5a3   : > { %6830 = vmatprep.mubr.msk.bf16.mxu1 %vm497_vm4, %v4580_v21 }
 0x5aa   : > { %6831 = vmatmul.mubr.msk.bf16.gmra.mrb[16].mxu1 %vm497_vm4, %v4583_v37 }
 0x5ab   : > { %6834 = vmatprep.mubr.msk.bf16.mxu1 %vm497_vm4, %v4586_v5 }
 0x5b2   : > { %6835 = vmatmul.mubr.msk.bf16.gmra.mrb[20].mxu1 %vm497_vm4, %v4589_v9 }
 0x5b3   : > { %6838 = vmatprep.mubr.msk.bf16.mxu1 %vm497_vm4, %v4592_v16 }
 0x5ba   : > { %6839 = vmatmul.mubr.msk.bf16.gmra.mrb[24].mxu1 %vm497_vm4, %v4595_v38 }
 0x5bb   : > { %6842 = vmatprep.mubr.msk.bf16.mxu1 %vm497_vm4, %v4598_v30 }
 0x5c2   : > { %6843 = vmatmul.mubr.msk.bf16.gmra.mrb[28].mxu1 %vm497_vm4, %v4601_v49 }
 0x5c3   : > { %6848 = vmatprep.mubr.msk.bf16.mxu1 %vm497_vm4, %v9448_v22 }
 0x5ca   : > { %6849 = vmatmul.mubr.msk.bf16.vlgmr.msra.gmra.mrb[0].mxu1 %vm497_vm4, %v9465_v53 }
 0x5cb   : > { %6852 = vmatprep.mubr.msk.bf16.mxu1 %vm497_vm4, %v9470_v14 }
 0x5d2   : > { %6853 = vmatmul.mubr.msk.bf16.gmra.mrb[4].mxu1 %vm497_vm4, %v9479_v33 }
 0x5d3   : > { %6856 = vmatprep.mubr.msk.bf16.mxu1 %vm497_vm4, %v9484_v3 }
 0x5da   : > { %6857 = vmatmul.mubr.msk.bf16.gmra.mrb[8].mxu1 %vm497_vm4, %v4574_v47 }
 0x5db   : > { %6860 = vmatprep.mubr.msk.bf16.mxu1 %vm497_vm4, %v4577_v20 }
 0x5e2   : > { %6861 = vmatmul.mubr.msk.bf16.gmra.mrb[12].mxu1 %vm497_vm4, %v4580_v21 }
 0x5e3   : > { %6864 = vmatprep.mubr.msk.bf16.mxu1 %vm497_vm4, %v4583_v37 }
 0x5ea   : > { %6865 = vmatmul.mubr.msk.bf16.gmra.mrb[16].mxu1 %vm497_vm4, %v4586_v5 }
 0x5eb   : > { %6868 = vmatprep.mubr.msk.bf16.mxu1 %vm497_vm4, %v4589_v9 }
 0x5f2   : > { %6869 = vmatmul.mubr.msk.bf16.gmra.mrb[20].mxu1 %vm497_vm4, %v4592_v16 }
 0x5f3   : > { %6872 = vmatprep.mubr.msk.bf16.mxu1 %vm497_vm4, %v4595_v38 }
 0x5fa   : > { %6873 = vmatmul.mubr.msk.bf16.gmra.mrb[24].mxu1 %vm497_vm4, %v4598_v30 }
 0x5fb   : > { %6876 = vmatprep.mubr.msk.bf16.mxu1 %vm497_vm4, %v4601_v49 }
 0x602   : > { %6877 = vmatmul.mubr.msk.bf16.gmra.mrb[28].mxu1 %vm497_vm4, %v4598_v30 }
 0x69d   : > { %v9570_v11 = vpop.f32.mrb[0].mxu1 }
 0x69e   : > { %v9572_v4 = vpop.f32.mrb[1].mxu1  ;;  %v5316_v59 = vmul.f32 %v9570_v11, %v9570_v11  ;;  %v5247_v24 = vsel %vm497_vm4, %v9570_v11, 0.0 }
 0x69f   : > { %v5314_v29 = vmul.f32 %v9572_v4, %v9572_v4  ;;  %v9576_v55 = vpop.f32.mrb[2].mxu1  ;;  %v5244_v41 = vsel %vm497_vm4, %v9572_v4, 0.0 }
 0x6a0   : > { %v9578_v13 = vpop.f32.mrb[3].mxu1  ;;  %v5317_v1 = vmul.f32 %v9576_v55, %v9576_v55  ;;  %v5349_v63 = vsel %vm497_vm4, %v5316_v59, 0.0  ;;  %v5249_v58 = vsel %vm497_vm4, %v9576_v55, 0.0 }
 0x6a1   : > { %v5245_v34 = vsel %vm497_vm4, %v9578_v13, 0.0  ;;  %v5315_v56 = vmul.f32 %v9578_v13, %v9578_v13  ;;  %v5346_v52 = vsel %vm497_vm4, %v5314_v29, 0.0 }
 0x6a2   : > { %v5246_v36 = vadd.f32 %v5245_v34, %v5244_v41  ;;  %v5351_v18 = vsel %vm497_vm4, %v5317_v1, 0.0 }
 0x6a3   : > { %v5347_v6 = vsel %vm497_vm4, %v5315_v56, 0.0 }
 0x6a4   : > { %v5248_v27 = vadd.f32 %v5247_v24, %v5246_v36  ;;  %v5348_v22 = vadd.f32 %v5347_v6, %v5346_v52 }
 0x6a5   : > { %v9597_v51 = vpop.f32.mrb[4].mxu1 }
 0x6a6   : > { %v5350_v43 = vadd.f32 %v5349_v63, %v5348_v22  ;;  %v9599_v44 = vpop.f32.mrb[5].mxu1  ;;  %v5250_v25 = vadd.f32 %v5249_v58, %v5248_v27  ;;  %v5320_v8 = vmul.f32 %v9597_v51, %v9597_v51  ;;  %v5255_v50 = vsel %vm497_vm4, %v9597_v51, 0.0 }
 0x6a7   : > { %v5251_v39 = vsel %vm497_vm4, %v9599_v44, 0.0  ;;  %v5318_v31 = vmul.f32 %v9599_v44, %v9599_v44  ;;  %v9606_v53 = vpop.f32.mrb[6].mxu1 }
 0x6a8   : > { %v5252_v14 = vadd.f32 %v5251_v39, %v5250_v25  ;;  %v5352_v45 = vadd.f32 %v5351_v18, %v5350_v43  ;;  %v9608_v0 = vpop.f32.mrb[7].mxu1  ;;  %v5321_v62 = vmul.f32 %v9606_v53, %v9606_v53  ;;  %v5357_v60 = vsel %vm497_vm4, %v5320_v8, 0.0 }
 0x6a9   : > { %v5353_v48 = vsel %vm497_vm4, %v5318_v31, 0.0  ;;  %v5253_v33 = vsel %vm497_vm4, %v9608_v0, 0.0  ;;  %v5319_v3 = vmul.f32 %v9608_v0, %v9608_v0  ;;  %v5257_v61 = vsel %vm497_vm4, %v9606_v53, 0.0 }
 0x6aa   : > { %v5354_v42 = vadd.f32 %v5353_v48, %v5352_v45  ;;  %v5254_v23 = vadd.f32 %v5253_v33, %v5252_v14  ;;  %v5359_v17 = vsel %vm497_vm4, %v5321_v62, 0.0 }
 0x6ab   : > { %v5355_v47 = vsel %vm497_vm4, %v5319_v3, 0.0 }
 0x6ac   : > { %v5256_v20 = vadd.f32 %v5255_v50, %v5254_v23  ;;  %v5356_v2 = vadd.f32 %v5355_v47, %v5354_v42 }
 0x6ad   : > { %v9625_v19 = vpop.f32.mrb[8].mxu1 }
 0x6ae   : > { %v5358_v21 = vadd.f32 %v5357_v60, %v5356_v2  ;;  %v9627_v37 = vpop.f32.mrb[9].mxu1  ;;  %v5258_v40 = vadd.f32 %v5257_v61, %v5256_v20  ;;  %v5324_v54 = vmul.f32 %v9625_v19, %v9625_v19  ;;  %v5263_v30 = vsel %vm497_vm4, %v9625_v19, 0.0 }
 0x6af   : > { %v5259_v46 = vsel %vm497_vm4, %v9627_v37, 0.0  ;;  %v5322_v57 = vmul.f32 %v9627_v37, %v9627_v37  ;;  %v9634_v5 = vpop.f32.mrb[10].mxu1 }
 0x6b0   : > { %v5260_v9 = vadd.f32 %v5259_v46, %v5258_v40  ;;  %v5360_v12 = vadd.f32 %v5359_v17, %v5358_v21  ;;  %v9636_v32 = vpop.f32.mrb[11].mxu1  ;;  %v5325_v7 = vmul.f32 %v9634_v5, %v9634_v5  ;;  %v5365_v29 = vsel %vm497_vm4, %v5324_v54, 0.0 }
 0x6b1   : > { %v5361_v15 = vsel %vm497_vm4, %v5322_v57, 0.0  ;;  %v5261_v16 = vsel %vm497_vm4, %v9636_v32, 0.0  ;;  %v5323_v38 = vmul.f32 %v9636_v32, %v9636_v32  ;;  %v5265_v59 = vsel %vm497_vm4, %v9634_v5, 0.0 }
 0x6b2   : > { %v5362_v35 = vadd.f32 %v5361_v15, %v5360_v12  ;;  %v5262_v10 = vadd.f32 %v5261_v16, %v5260_v9  ;;  %v5367_v24 = vsel %vm497_vm4, %v5325_v7, 0.0 }
 0x6b3   : > { %v5363_v28 = vsel %vm497_vm4, %v5323_v38, 0.0 }
 0x6b4   : > { %v5264_v26 = vadd.f32 %v5263_v30, %v5262_v10  ;;  %v5364_v49 = vadd.f32 %v5363_v28, %v5362_v35 }
 0x6b5   : > { %v9653_v41 = vpop.f32.mrb[12].mxu1 }
 0x6b6   : > { %v5366_v34 = vadd.f32 %v5365_v29, %v5364_v49  ;;  %v9655_v56 = vpop.f32.mrb[13].mxu1  ;;  %v5266_v36 = vadd.f32 %v5265_v59, %v5264_v26  ;;  %v5328_v58 = vmul.f32 %v9653_v41, %v9653_v41  ;;  %v5271_v14 = vsel %vm497_vm4, %v9653_v41, 0.0 }
 0x6b7   : > { %v5267_v52 = vsel %vm497_vm4, %v9655_v56, 0.0  ;;  %v5326_v1 = vmul.f32 %v9655_v56, %v9655_v56  ;;  %v9662_v6 = vpop.f32.mrb[14].mxu1 }
 0x6b8   : > { %v5268_v27 = vadd.f32 %v5267_v52, %v5266_v36  ;;  %v5368_v22 = vadd.f32 %v5367_v24, %v5366_v34  ;;  %v9664_v63 = vpop.f32.mrb[15].mxu1  ;;  %v5329_v45 = vmul.f32 %v9662_v6, %v9662_v6  ;;  %v5373_v3 = vsel %vm497_vm4, %v5328_v58, 0.0 }
 0x6b9   : > { %v5369_v43 = vsel %vm497_vm4, %v5326_v1, 0.0  ;;  %v5269_v25 = vsel %vm497_vm4, %v9664_v63, 0.0  ;;  %v5327_v18 = vmul.f32 %v9664_v63, %v9664_v63  ;;  %v5273_v42 = vsel %vm497_vm4, %v9662_v6, 0.0 }
 0x6ba   : > { %v5370_v39 = vadd.f32 %v5369_v43, %v5368_v22  ;;  %v5270_v31 = vadd.f32 %v5269_v25, %v5268_v27  ;;  %v5375_v20 = vsel %vm497_vm4, %v5329_v45, 0.0 }
 0x6bb   : > { %v5371_v8 = vsel %vm497_vm4, %v5327_v18, 0.0 }
 0x6bc   : > { %v5272_v48 = vadd.f32 %v5271_v14, %v5270_v31  ;;  %v5372_v33 = vadd.f32 %v5371_v8, %v5370_v39 }
 0x6bd   : > { %v9681_v23 = vpop.f32.mrb[16].mxu1 }
 0x6be   : > { %v5374_v50 = vadd.f32 %v5373_v3, %v5372_v33  ;;  %v9683_v62 = vpop.f32.mrb[17].mxu1  ;;  %v5274_v47 = vadd.f32 %v5273_v42, %v5272_v48  ;;  %v5332_v46 = vmul.f32 %v9681_v23, %v9681_v23  ;;  %v5279_v16 = vsel %vm497_vm4, %v9681_v23, 0.0 }
 0x6bf   : > { %v5275_v2 = vsel %vm497_vm4, %v9683_v62, 0.0  ;;  %v5330_v60 = vmul.f32 %v9683_v62, %v9683_v62  ;;  %v9690_v61 = vpop.f32.mrb[18].mxu1 }
 0x6c0   : > { %v5276_v21 = vadd.f32 %v5275_v2, %v5274_v47  ;;  %v5376_v40 = vadd.f32 %v5375_v20, %v5374_v50  ;;  %v9692_v17 = vpop.f32.mrb[19].mxu1  ;;  %v5333_v38 = vmul.f32 %v9690_v61, %v9690_v61  ;;  %v5381_v7 = vsel %vm497_vm4, %v5332_v46, 0.0 }
 0x6c1   : > { %v5377_v57 = vsel %vm497_vm4, %v5330_v60, 0.0  ;;  %v5277_v9 = vsel %vm497_vm4, %v9692_v17, 0.0  ;;  %v5331_v12 = vmul.f32 %v9692_v17, %v9692_v17  ;;  %v5281_v28 = vsel %vm497_vm4, %v9690_v61, 0.0 }
 0x6c2   : > { %v5378_v54 = vadd.f32 %v5377_v57, %v5376_v40  ;;  %v5278_v15 = vadd.f32 %v5277_v9, %v5276_v21  ;;  %v5383_v34 = vsel %vm497_vm4, %v5333_v38, 0.0 }
 0x6c3   : > { %v5379_v35 = vsel %vm497_vm4, %v5331_v12, 0.0 }
 0x6c4   : > { %v5280_v10 = vadd.f32 %v5279_v16, %v5278_v15  ;;  %v5380_v30 = vadd.f32 %v5379_v35, %v5378_v54 }
 0x6c5   : > { %v9709_v26 = vpop.f32.mrb[20].mxu1 }
 0x6c6   : > { %v5382_v49 = vadd.f32 %v5381_v7, %v5380_v30  ;;  %v9711_v29 = vpop.f32.mrb[21].mxu1  ;;  %v5282_v59 = vadd.f32 %v5281_v28, %v5280_v10  ;;  %v5336_v58 = vmul.f32 %v9709_v26, %v9709_v26  ;;  %v5287_v14 = vsel %vm497_vm4, %v9709_v26, 0.0 }
 0x6c7   : > { %v5283_v36 = vsel %vm497_vm4, %v9711_v29, 0.0  ;;  %v5334_v24 = vmul.f32 %v9711_v29, %v9711_v29  ;;  %v9718_v52 = vpop.f32.mrb[22].mxu1 }
 0x6c8   : > { %v5284_v1 = vadd.f32 %v5283_v36, %v5282_v59  ;;  %v5384_v27 = vadd.f32 %v5383_v34, %v5382_v49  ;;  %v9720_v22 = vpop.f32.mrb[23].mxu1  ;;  %v5337_v45 = vmul.f32 %v9718_v52, %v9718_v52  ;;  %v5389_v3 = vsel %vm497_vm4, %v5336_v58, 0.0 }
 0x6c9   : > { %v5385_v43 = vsel %vm497_vm4, %v5334_v24, 0.0  ;;  %v5285_v25 = vsel %vm497_vm4, %v9720_v22, 0.0  ;;  %v5335_v18 = vmul.f32 %v9720_v22, %v9720_v22  ;;  %v5289_v42 = vsel %vm497_vm4, %v9718_v52, 0.0 }
 0x6ca   : > { %v5386_v39 = vadd.f32 %v5385_v43, %v5384_v27  ;;  %v5286_v31 = vadd.f32 %v5285_v25, %v5284_v1  ;;  %v5391_v60 = vsel %vm497_vm4, %v5337_v45, 0.0 }
 0x6cb   : > { %v5387_v8 = vsel %vm497_vm4, %v5335_v18, 0.0 }
 0x6cc   : > { %v5288_v48 = vadd.f32 %v5287_v14, %v5286_v31  ;;  %v5388_v33 = vadd.f32 %v5387_v8, %v5386_v39 }
 0x6cd   : > { %v9737_v50 = vpop.f32.mrb[24].mxu1 }
 0x6ce   : > { %v5390_v47 = vadd.f32 %v5389_v3, %v5388_v33  ;;  %v9739_v20 = vpop.f32.mrb[25].mxu1  ;;  %v5290_v2 = vadd.f32 %v5289_v42, %v5288_v48  ;;  %v5340_v54 = vmul.f32 %v9737_v50, %v9737_v50  ;;  %v5295_v30 = vsel %vm497_vm4, %v9737_v50, 0.0 }
 0x6cf   : > { %v5291_v21 = vsel %vm497_vm4, %v9739_v20, 0.0  ;;  %v5338_v40 = vmul.f32 %v9739_v20, %v9739_v20  ;;  %v9746_v46 = vpop.f32.mrb[26].mxu1 }
 0x6d0   : > { %v5292_v57 = vadd.f32 %v5291_v21, %v5290_v2  ;;  %v5392_v9 = vadd.f32 %v5391_v60, %v5390_v47  ;;  %v9748_v12 = vpop.f32.mrb[27].mxu1  ;;  %v5341_v7 = vmul.f32 %v9746_v46, %v9746_v46  ;;  %v5397_v34 = vsel %vm497_vm4, %v5340_v54, 0.0 }
 0x6d1   : > { %v5393_v15 = vsel %vm497_vm4, %v5338_v40, 0.0  ;;  %v5293_v16 = vsel %vm497_vm4, %v9748_v12, 0.0  ;;  %v5339_v38 = vmul.f32 %v9748_v12, %v9748_v12  ;;  %v5297_v36 = vsel %vm497_vm4, %v9746_v46, 0.0 }
 0x6d2   : > { %v5394_v35 = vadd.f32 %v5393_v15, %v5392_v9  ;;  %v5294_v10 = vadd.f32 %v5293_v16, %v5292_v57  ;;  %v5399_v43 = vsel %vm497_vm4, %v5341_v7, 0.0 }
 0x6d3   : > { %v5395_v28 = vsel %vm497_vm4, %v5339_v38, 0.0 }
 0x6d4   : > { %v5296_v49 = vadd.f32 %v5295_v30, %v5294_v10  ;;  %v5396_v59 = vadd.f32 %v5395_v28, %v5394_v35 }
 0x6d5   : > { %v9765_v24 = vpop.f32.mrb[28].mxu1 }
 0x6d6   : > { %v5398_v1 = vadd.f32 %v5397_v34, %v5396_v59  ;;  %v9767_v27 = vpop.f32.mrb[29].mxu1  ;;  %v5298_v58 = vadd.f32 %v5297_v36, %v5296_v49  ;;  %v5344_v8 = vmul.f32 %v9765_v24, %v9765_v24  ;;  %v5303_v2 = vsel %vm497_vm4, %v9765_v24, 0.0 }
 0x6d7   : > { %v5299_v25 = vsel %vm497_vm4, %v9767_v27, 0.0  ;;  %v5342_v18 = vmul.f32 %v9767_v27, %v9767_v27  ;;  %v9774_v39 = vpop.f32.mrb[30].mxu1 }
 0x6d8   : > { %v5300_v31 = vadd.f32 %v5299_v25, %v5298_v58  ;;  %v5400_v14 = vadd.f32 %v5399_v43, %v5398_v1  ;;  %v9776_v45 = vpop.f32.mrb[31].mxu1  ;;  %v5345_v60 = vmul.f32 %v9774_v39, %v9774_v39  ;;  %v5405_v9 = vsel %vm497_vm4, %v5344_v8, 0.0 }
 0x6d9   : > { %v5401_v48 = vsel %vm497_vm4, %v5342_v18, 0.0  ;;  %v5301_v33 = vsel %vm497_vm4, %v9776_v45, 0.0  ;;  %v5343_v3 = vmul.f32 %v9776_v45, %v9776_v45  ;;  %v5305_v54 = vsel %vm497_vm4, %v9774_v39, 0.0 }
 0x6da   : > { %v5402_v42 = vadd.f32 %v5401_v48, %v5400_v14  ;;  %v5302_v47 = vadd.f32 %v5301_v33, %v5300_v31  ;;  %v5407_v38 = vsel %vm497_vm4, %v5345_v60, 0.0 }
 0x6db   : > { %v5403_v21 = vsel %vm497_vm4, %v5343_v3, 0.0 }
 0x6dc   : > { %v5304_v40 = vadd.f32 %v5303_v2, %v5302_v47  ;;  %v5404_v57 = vadd.f32 %v5403_v21, %v5402_v42 }
 0x6de   : > { %v5306_v15 = vadd.f32 %v5305_v54, %v5304_v40  ;;  %v5406_v16 = vadd.f32 %v5405_v9, %v5404_v57 }
 0x6e0   : > { %v5307_v35 = vrot.slane %v5306_v15, 4  ;;  %v5408_v10 = vadd.f32 %v5407_v38, %v5406_v16 }
 0x6e2   : > { %v5308_v30 = vadd.f32 %v5307_v35, %v5306_v15  ;;  %v5409_v7 = vrot.slane %v5408_v10, 4 }
 0x6e4   : > { %v5309_v28 = vrot.slane %v5308_v30, 2  ;;  %v5410_v49 = vadd.f32 %v5409_v7, %v5408_v10 }
 0x6e6   : > { %v5310_v59 = vadd.f32 %v5309_v28, %v5308_v30  ;;  %v5411_v34 = vrot.slane %v5410_v49, 2 }
 0x6e8   : > { %v5311_v36 = vrot.slane %v5310_v59, 1  ;;  %v5412_v1 = vadd.f32 %v5411_v34, %v5410_v49 }
 0x6ea   : > { %v5312_v58 = vadd.f32 %v5311_v36, %v5310_v59  ;;  %v5413_v43 = vrot.slane %v5412_v1, 1 }
 0x6ec   : > { %v9794_v25 = vmul.f32 0.00390625, %v5312_v58  ;;  %v5414_v18 = vadd.f32 %v5413_v43, %v5412_v1 }
 0x6ee   : > { %v5415_v31 = vmul.f32 0.00390625, %v5414_v18  ;;  %v5416_v14 = vmul.f32 %v9794_v25, %v9794_v25  ;;  %v5447_v8 = vsub.f32 %v9776_v45, %v9794_v25  ;;  %v5418_v48 = vsub.f32 %v9572_v4, %v9794_v25 }
 0x6ef   : > { %v5419_v33 = vsub.f32 %v9578_v13, %v9794_v25  ;;  %v5420_v3 = vsub.f32 %v9570_v11, %v9794_v25  ;;  %v5421_v42 = vsub.f32 %v9576_v55, %v9794_v25  ;;  %v5422_v47 = vsub.f32 %v9599_v44, %v9794_v25 }
 0x6f0   : > { %v5417_v2 = vsub.f32 %v5415_v31, %v5416_v14  ;;  %v5423_v60 = vsub.f32 %v9608_v0, %v9794_v25  ;;  %v5424_v45 = vsub.f32 %v9597_v51, %v9794_v25  ;;  %v5425_v4 = vsub.f32 %v9606_v53, %v9794_v25 }
 0x6f1   : > { %v5426_v13 = vsub.f32 %v9627_v37, %v9794_v25  ;;  %v5427_v11 = vsub.f32 %v9636_v32, %v9794_v25  ;;  %v5428_v55 = vsub.f32 %v9625_v19, %v9794_v25  ;;  %v5429_v44 = vsub.f32 %v9634_v5, %v9794_v25 }
 0x6f2   : > { %v5450_v21 = vadd.f32 1e-05, %v5417_v2  ;;  %v5430_v0 = vsub.f32 %v9655_v56, %v9794_v25  ;;  %v5431_v51 = vsub.f32 %v9664_v63, %v9794_v25  ;;  %v5432_v53 = vsub.f32 %v9653_v41, %v9794_v25 }
 0x6f3   : > { %v5433_v37 = vsub.f32 %v9662_v6, %v9794_v25  ;;  %v5434_v32 = vsub.f32 %v9683_v62, %v9794_v25  ;;  %v5435_v19 = vsub.f32 %v9692_v17, %v9794_v25  ;;  %v5436_v5 = vsub.f32 %v9681_v23, %v9794_v25 }
 0x6f4   : > { %7485 = vrsqrt.f32 %v5450_v21  ;;  %v5437_v56 = vsub.f32 %v9690_v61, %v9794_v25  ;;  %v5438_v63 = vsub.f32 %v9711_v29, %v9794_v25  ;;  %v5439_v41 = vsub.f32 %v9720_v22, %v9794_v25 }
 0x6f5   : > { %v5440_v6 = vsub.f32 %v9709_v26, %v9794_v25  ;;  %v5441_v62 = vsub.f32 %v9718_v52, %v9794_v25  ;;  %v5442_v17 = vsub.f32 %v9739_v20, %v9794_v25  ;;  %v5443_v23 = vsub.f32 %v9748_v12, %v9794_v25 }
 0x6f6   : > { %v5444_v61 = vsub.f32 %v9737_v50, %v9794_v25  ;;  %v5445_v29 = vsub.f32 %v9746_v46, %v9794_v25  ;;  %v5446_v22 = vsub.f32 %v9767_v27, %v9794_v25  ;;  %v5448_v26 = vsub.f32 %v9765_v24, %v9794_v25  ;;  %v7487_v46 = vld [vmem:[%s7885_s30 + $0xe8] sm:$0xff] }
 0x6f7   : > { %v5449_v52 = vsub.f32 %v9774_v39, %v9794_v25 }
 0x6fe   : > { %v7486_v20 = vpop.eup %7485 }
 0x6ff   : > { %v5481_v40 = vmul.f32 %v7486_v20, %v5447_v8  ;;  %v5452_v57 = vmul.f32 %v7486_v20, %v5418_v48  ;;  %v5453_v12 = vmul.f32 %v7486_v20, %v5419_v33  ;;  %v5454_v9 = vmul.f32 %v7486_v20, %v5420_v3 }
 0x700   : > { %v5455_v54 = vmul.f32 %v7486_v20, %v5421_v42  ;;  %v5456_v50 = vmul.f32 %v7486_v20, %v5422_v47  ;;  %v5457_v15 = vmul.f32 %v7486_v20, %v5423_v60  ;;  %v5458_v16 = vmul.f32 %v7486_v20, %v5424_v45  ;;  %v7488_v47 = vld [vmem:[%s7885_s30] sm:$0xff]  ;;  %v7489_v60 = vld [vmem:[%s7885_s30 + $0x8] sm:$0xff] }
 0x701   : > { %v5513_v38 = vadd.f32 %v7487_v46, %v5481_v40  ;;  %v5459_v35 = vmul.f32 %v7486_v20, %v5425_v4  ;;  %v5460_v27 = vmul.f32 %v7486_v20, %v5426_v13  ;;  %v5461_v10 = vmul.f32 %v7486_v20, %v5427_v11  ;;  %v7490_v4 = vld [vmem:[%s7885_s30 + $0x10] sm:$0xff]  ;;  %v7491_v11 = vld [vmem:[%s7885_s30 + $0x18] sm:$0xff] }
 0x702   : > { %v5462_v30 = vmul.f32 %v7486_v20, %v5428_v55  ;;  %v5463_v24 = vmul.f32 %v7486_v20, %v5429_v44  ;;  %v5464_v7 = vmul.f32 %v7486_v20, %v5430_v0  ;;  %v5465_v28 = vmul.f32 %v7486_v20, %v5431_v51  ;;  %v7492_v44 = vld [vmem:[%s7885_s30 + $0x20] sm:$0xff]  ;;  %v7493_v0 = vld [vmem:[%s7885_s30 + $0x28] sm:$0xff]  ;;  %v7503_v40 = vld [vmem:[%s7885_s30 + $0x78] sm:$0xff] }
 0x703   : > { %5545 = vst.msk [vmem:[%s9865_s18 + $0xe8] sm:$0xff] %vm497_vm4, %v5513_v38  ;;  %v5466_v39 = vmul.f32 %v7486_v20, %v5432_v53  ;;  %v5467_v49 = vmul.f32 %v7486_v20, %v5433_v37  ;;  %v5468_v59 = vmul.f32 %v7486_v20, %v5434_v32  ;;  %v5469_v34 = vmul.f32 %v7486_v20, %v5435_v19  ;;  %v7494_v53 = vld [vmem:[%s7885_s30 + $0x30] sm:$0xff]  ;;  %v7495_v32 = vld [vmem:[%s7885_s30 + $0x38] sm:$0xff] }
 0x704   : > { %v5470_v36 = vmul.f32 %v7486_v20, %v5436_v5  ;;  %v9869_v1 = vmul.f32 %v7486_v20, %v5437_v56  ;;  %v9871_v58 = vmul.f32 %v7486_v20, %v5438_v63  ;;  %v9873_v43 = vmul.f32 %v7486_v20, %v5439_v41  ;;  %v7496_v5 = vld [vmem:[%s7885_s30 + $0x40] sm:$0xff]  ;;  %v7497_v63 = vld [vmem:[%s7885_s30 + $0x48] sm:$0xff]  ;;  %v7507_v46 = vld [vmem:[%s7885_s30 + $0x98] sm:$0xff] }
 0x705   : > { %v9875_v25 = vmul.f32 %v7486_v20, %v5440_v6  ;;  %v9877_v18 = vmul.f32 %v7486_v20, %v5441_v62  ;;  %v9879_v31 = vmul.f32 %v7486_v20, %v5442_v17  ;;  %v9881_v14 = vmul.f32 %v7486_v20, %v5443_v23  ;;  %v7498_v6 = vld [vmem:[%s7885_s30 + $0x50] sm:$0xff]  ;;  %v7499_v17 = vld [vmem:[%s7885_s30 + $0x58] sm:$0xff] }
 0x706   : > { %v9883_v8 = vmul.f32 %v7486_v20, %v5444_v61  ;;  %v9885_v48 = vmul.f32 %v7486_v20, %v5445_v29  ;;  %v9887_v33 = vmul.f32 %v7486_v20, %v5446_v22  ;;  %v9889_v3 = vmul.f32 %v7486_v20, %v5448_v26  ;;  %v7500_v61 = vld [vmem:[%s7885_s30 + $0x60] sm:$0xff]  ;;  %v7501_v22 = vld [vmem:[%s7885_s30 + $0x68] sm:$0xff] }
 0x707   : > { %v9891_v42 = vmul.f32 %v7486_v20, %v5449_v52  ;;  %v5484_v2 = vadd.f32 %v7488_v47, %v5452_v57  ;;  %v5485_v45 = vadd.f32 %v7489_v60, %v5453_v12  ;;  %v5486_v13 = vadd.f32 %v7490_v4, %v5454_v9  ;;  %v7502_v52 = vld [vmem:[%s7885_s30 + $0x70] sm:$0xff]  ;;  %v7504_v12 = vld [vmem:[%s7885_s30 + $0x80] sm:$0xff]  ;;  %v7518_v47 = vld [vmem:[%s7885_s30 + $0xf8] sm:$0xff] }
 0x708   : > { %v5487_v55 = vadd.f32 %v7491_v11, %v5455_v54  ;;  %v5488_v21 = vadd.f32 %v7492_v44, %v5456_v50  ;;  %v5489_v51 = vadd.f32 %v7493_v0, %v5457_v15  ;;  %v5490_v37 = vadd.f32 %v7494_v53, %v5458_v16  ;;  %v7505_v54 = vld [vmem:[%s7885_s30 + $0x88] sm:$0xff]  ;;  %v7506_v15 = vld [vmem:[%s7885_s30 + $0x90] sm:$0xff] }
 0x709   : > { %v5491_v19 = vadd.f32 %v7495_v32, %v5459_v35  ;;  %v5492_v56 = vadd.f32 %v7496_v5, %v5460_v27  ;;  %v5493_v41 = vadd.f32 %v7497_v63, %v5461_v10  ;;  %v5494_v62 = vadd.f32 %v7498_v6, %v5462_v30  ;;  %5516 = vst.msk [vmem:[%s9865_s18] sm:$0xff] %vm497_vm4, %v5484_v2  ;;  %v7508_v35 = vld [vmem:[%s7885_s30 + $0xa0] sm:$0xff]  ;;  %v7509_v10 = vld [vmem:[%s7885_s30 + $0xa8] sm:$0xff] }
 0x70a   : > { %5517 = vst.msk [vmem:[%s9865_s18 + $0x8] sm:$0xff] %vm497_vm4, %v5485_v45  ;;  %5518 = vst.msk [vmem:[%s9865_s18 + $0x10] sm:$0xff] %vm497_vm4, %v5486_v13  ;;  %v5495_v23 = vadd.f32 %v7499_v17, %v5463_v24  ;;  %v5496_v29 = vadd.f32 %v7500_v61, %v5464_v7  ;;  %v5497_v26 = vadd.f32 %v7501_v22, %v5465_v28  ;;  %v7510_v24 = vld [vmem:[%s7885_s30 + $0xb0] sm:$0xff]  ;;  %v7511_v28 = vld [vmem:[%s7885_s30 + $0xb8] sm:$0xff] }
 0x70b   : > { %v5498_v20 = vadd.f32 %v7502_v52, %v5466_v39  ;;  %5519 = vst.msk [vmem:[%s9865_s18 + $0x18] sm:$0xff] %vm497_vm4, %v5487_v55  ;;  %5520 = vst.msk [vmem:[%s9865_s18 + $0x20] sm:$0xff] %vm497_vm4, %v5488_v21  ;;  %v5499_v57 = vadd.f32 %v7503_v40, %v5467_v49  ;;  %v5500_v9 = vadd.f32 %v7504_v12, %v5468_v59  ;;  %v7512_v49 = vld [vmem:[%s7885_s30 + $0xc0] sm:$0xff] }
 0x70c   : > { %5521 = vst.msk [vmem:[%s9865_s18 + $0x28] sm:$0xff] %vm497_vm4, %v5489_v51  ;;  %5522 = vst.msk [vmem:[%s9865_s18 + $0x30] sm:$0xff] %vm497_vm4, %v5490_v37  ;;  %v5501_v50 = vadd.f32 %v7505_v54, %v5469_v34  ;;  %v5502_v16 = vadd.f32 %v7506_v15, %v5470_v36  ;;  %v5503_v38 = vadd.f32 %v7507_v46, %v9869_v1  ;;  %v7513_v34 = vld [vmem:[%s7885_s30 + $0xc8] sm:$0xff]  ;;  %v7514_v1 = vld [vmem:[%s7885_s30 + $0xd0] sm:$0xff] }
 0x70d   : > { %5523 = vst.msk [vmem:[%s9865_s18 + $0x38] sm:$0xff] %vm497_vm4, %v5491_v19  ;;  %5524 = vst.msk [vmem:[%s9865_s18 + $0x40] sm:$0xff] %vm497_vm4, %v5492_v56  ;;  %v5504_v27 = vadd.f32 %v7508_v35, %v9871_v58  ;;  %v5505_v30 = vadd.f32 %v7509_v10, %v9873_v43  ;;  %v5506_v7 = vadd.f32 %v7510_v24, %v9875_v25  ;;  %v7515_v43 = vld [vmem:[%s7885_s30 + $0xd8] sm:$0xff] }
 0x70e   : > { %5525 = vst.msk [vmem:[%s9865_s18 + $0x48] sm:$0xff] %vm497_vm4, %v5493_v41  ;;  %5526 = vst.msk [vmem:[%s9865_s18 + $0x50] sm:$0xff] %vm497_vm4, %v5494_v62  ;;  %v5507_v39 = vadd.f32 %v7511_v28, %v9877_v18  ;;  %v5508_v59 = vadd.f32 %v7512_v49, %v9879_v31  ;;  %v5509_v36 = vadd.f32 %v7513_v34, %v9881_v14  ;;  %v7516_v18 = vld [vmem:[%s7885_s30 + $0xe0] sm:$0xff]  ;;  %v7517_v14 = vld [vmem:[%s7885_s30 + $0xf0] sm:$0xff] }
 0x70f   : > { %5527 = vst.msk [vmem:[%s9865_s18 + $0x58] sm:$0xff] %vm497_vm4, %v5495_v23  ;;  %5528 = vst.msk [vmem:[%s9865_s18 + $0x60] sm:$0xff] %vm497_vm4, %v5496_v29  ;;  %v5510_v58 = vadd.f32 %v7514_v1, %v9883_v8  ;;  %v5511_v25 = vadd.f32 %v7515_v43, %v9885_v48  ;;  %v5512_v31 = vadd.f32 %v7516_v18, %v9887_v33 }
 0x710   : > { %5529 = vst.msk [vmem:[%s9865_s18 + $0x68] sm:$0xff] %vm497_vm4, %v5497_v26  ;;  %5530 = vst.msk [vmem:[%s9865_s18 + $0x70] sm:$0xff] %vm497_vm4, %v5498_v20  ;;  %v5514_v8 = vadd.f32 %v7517_v14, %v9889_v3  ;;  %v5515_v2 = vadd.f32 %v7518_v47, %v9891_v42 }
 0x711   : > { %5531 = vst.msk [vmem:[%s9865_s18 + $0x78] sm:$0xff] %vm497_vm4, %v5499_v57  ;;  %5532 = vst.msk [vmem:[%s9865_s18 + $0x80] sm:$0xff] %vm497_vm4, %v5500_v9 }
 0x712   : > { %5533 = vst.msk [vmem:[%s9865_s18 + $0x88] sm:$0xff] %vm497_vm4, %v5501_v50  ;;  %5534 = vst.msk [vmem:[%s9865_s18 + $0x90] sm:$0xff] %vm497_vm4, %v5502_v16 }
 0x713   : > { %5535 = vst.msk [vmem:[%s9865_s18 + $0x98] sm:$0xff] %vm497_vm4, %v5503_v38  ;;  %5536 = vst.msk [vmem:[%s9865_s18 + $0xa0] sm:$0xff] %vm497_vm4, %v5504_v27 }
 0x714   : > { %5537 = vst.msk [vmem:[%s9865_s18 + $0xa8] sm:$0xff] %vm497_vm4, %v5505_v30  ;;  %5538 = vst.msk [vmem:[%s9865_s18 + $0xb0] sm:$0xff] %vm497_vm4, %v5506_v7 }
 0x715   : > { %5539 = vst.msk [vmem:[%s9865_s18 + $0xb8] sm:$0xff] %vm497_vm4, %v5507_v39  ;;  %5540 = vst.msk [vmem:[%s9865_s18 + $0xc0] sm:$0xff] %vm497_vm4, %v5508_v59 }
 0x716   : > { %5541 = vst.msk [vmem:[%s9865_s18 + $0xc8] sm:$0xff] %vm497_vm4, %v5509_v36  ;;  %5542 = vst.msk [vmem:[%s9865_s18 + $0xd0] sm:$0xff] %vm497_vm4, %v5510_v58 }
 0x717   : > { %5543 = vst.msk [vmem:[%s9865_s18 + $0xd8] sm:$0xff] %vm497_vm4, %v5511_v25  ;;  %5544 = vst.msk [vmem:[%s9865_s18 + $0xe0] sm:$0xff] %vm497_vm4, %v5512_v31 }
 0x718   : > { %5546 = vst.msk [vmem:[%s9865_s18 + $0xf0] sm:$0xff] %vm497_vm4, %v5514_v8  ;;  %5547 = vst.msk [vmem:[%s9865_s18 + $0xf8] sm:$0xff] %vm497_vm4, %v5515_v2 }
 0x719   : > { %7618 = shalt.err (!%p7615_p2)
}
 0x71a   : > { %s7619_s25 = scalar_lea.hbm %s9973_s27, 4096  ;;  %s7623_s21 = scalar_lea.hbm %s10056_s3, 8192 }
 0x71b   : > { %p7620_p13 = scmp.ne.s32.totalorder %s9973_s27, %s7619_s25  ;;  %p7624_p4 = scmp.lt.u32.totalorder %s9973_s27, %s10056_s3 }
 0x71c   : > { %p7625_p5 = scmp.lt.u32.totalorder %s7623_s21, %s7619_s25  ;;  %p7627_p11 = scmp.lt.u32.totalorder %s7619_s25, %s9973_s27 }
 0x71d   : > { %p7621_p6 = pnand %p7620_p13, %p10095_p0 }
 0x71e   : > { %p7626_p8 = por %p7625_p5, %p7624_p4 }
 0x71f   : > { %p7622_p10 = pneg %p7621_p6 }
 0x720   : > { %p7628_p1 = por %p7627_p11, %p7626_p8 }
 0x722   : > { %p7629_p3 = pnand %p7628_p1, %p7622_p10 }
 0x724   : > { %7632 = shalt.err (!%p7629_p3)
}
 0x725   : > { %s7685_s30 = smov 128   ;;  %s7686_s18 = smov 8  }
 0x726   : > { %7420 = dma.vmem_to_hbm [thread:$0]  (%p10095_p0), %s9977_s17, 4096, %s9973_s27, %s5549_s16, %s7685_s30, %s7685_s30, %s7686_s18  }
 0x727 PF: > { %s5577_s20 = sand.u32 1, %s7663_s12   ;;  %p10096_p7 = scmp.ne.s32.totalorder %s10072_s19, 0 }
 0x728   : > { %p10097_p9 = scmp.ge.s32.totalorder %s7675_s15, 2  ;;  %s5578_s24 = scalar_lea.sflag [#allocation4], %s5577_s20 }
 0x72a   : > { %p7434_p12 = pnand %p10097_p9, %p10096_p7 }
 0x72c   : > { %7658 = dma.done.wait (!%p7434_p12), %s5578_s24, 4096  }
 0x72d   : > { %7660 = vsyncadd (!%p7434_p12), %s5578_s24, 4294963200  ;;  %p17_p2 = scmp.ge.s32.totalorder %s7817_s4, 4   ;;  %s10098_s12 = smov %s7667_s13 }
 0x72e   : > { %s10099_s13 = smov %s7671_s14  ;;  %s10100_s14 = smov %s7833_s9 }
 0x72f   : > { %s10101_s15 = smov %s7817_s4  ;;  %19 = sbr.rel (!%p17_p2) target bundleno = 6 (0x6), region = 101 }
 0x736   :  { %5583 = vsyncpa [#allocation3], 1 }
 0x737   :  { %5585 = vsyncpa [#allocation3 + $0x1], 1 }
 0x738   :  { %5586 = vsyncpa [#allocation6], 1 }
 0x739   :  { %5587 = vsyncpa [#allocation4], 1 }
 0x73a   :  { %5589 = vsyncpa [#allocation4 + $0x1], 1 }

</bundles_post_ra>
